<compile_context>
chip_gen: v7x
topology: tpu7x:2x2x1
jax: 0.10.0
libtpu: 0.0.40
codegen_flags: <defaults>
</compile_context>

<pallas_src>
import functools

import jax
import jax.numpy as jnp
from jax.experimental import pallas as pl
from jax.experimental.pallas import tpu as pltpu

MXU_DTYPE = jnp.bfloat16   # MXU-native input dtype on v6e/v7x; accumulation stays f32
ACT_DTYPE = jnp.bfloat16   # activation / staging dtype across the whole block chain


@functools.lru_cache(maxsize=None)
def _vmem_cap_bytes():
    """~75% of physical per-core VMEM (96 MiB v5e/v6e, 48 MiB v7x); safe fallback."""
    try:
        return int(pltpu.get_tpu_info().vmem_capacity_bytes) * 3 // 4
    except Exception:
        return 48 * 1024 * 1024


# --------------------------------------------------------------------------- #
# Pallas kernels: one fused residual block per pallas_call
# --------------------------------------------------------------------------- #
def _conv3x3(src_pad, w_ref, h, w, cp):
    """sum_{kh,kw} window(kh,kw) @ W[kh*3+kw] -> (h*w, cp) f32 accumulator.

    The kw (sublane) shift is hoisted: 3 shifted loads of the halo-padded bf16
    staging buffer, then kh is a leading-dim slice of the already-loaded value.
    """
    acc = jnp.zeros((h * w, cp), jnp.float32)
    for kw in range(3):
        shifted = src_pad[:, kw:kw + w, :]                 # (h+2, w, cp) bf16
        for kh in range(3):
            tap = shifted[kh:kh + h].reshape(h * w, cp)    # leading-dim slice
            acc = acc + jnp.dot(tap, w_ref[kh * 3 + kw],
                                preferred_element_type=jnp.float32)
    return acc


def _zero_halo(buf, h, w, cp):
    """Zero only the 1-pixel border of a (h+2, w+2, cp) staging scratch.

    The interior is fully overwritten every step, so a full memset (a whole extra
    vector-store pass per step) is never needed.
    """
    zrow = jnp.zeros((1, w + 2, cp), buf.dtype)
    zcol = jnp.zeros((h + 2, 1, cp), buf.dtype)
    buf[0:1, :, :] = zrow
    buf[h + 1:h + 2, :, :] = zrow
    buf[:, 0:1, :] = zcol
    buf[:, w + 1:w + 2, :] = zcol


def _res_block_skipconv_kernel(x_ref, w1_ref, b1_ref, w2_ref, b2_ref, ws_ref, bs_ref,
                               o_ref, x_pad, h1_pad):
    """relu(conv2(relu(conv1(x))) + x @ Ws + bs), all stages resident in VMEM."""
    h, w, cp = o_ref.shape[1], o_ref.shape[2], o_ref.shape[3]

    _zero_halo(x_pad, h, w, cp)
    _zero_halo(h1_pad, h, w, cp)

    # Halo pad happens here in VMEM: only the (h, w, cp) interior crossed HBM.
    x_pad[1:h + 1, 1:w + 1, :] = x_ref[0]

    # conv1 + bias + relu
    acc1 = _conv3x3(x_pad, w1_ref, h, w, cp)
    h1 = jnp.maximum(acc1 + b1_ref[...], 0.0)
    h1_pad[1:h + 1, 1:w + 1, :] = h1.reshape(h, w, cp).astype(h1_pad.dtype)

    # conv2 + bias
    acc2 = _conv3x3(h1_pad, w2_ref, h, w, cp)

    # 1x1-conv skip + residual relu
    xin = x_ref[0].reshape(h * w, cp)
    skip = jnp.dot(xin, ws_ref[...], preferred_element_type=jnp.float32) + bs_ref[...]
    out = jnp.maximum(acc2 + b2_ref[...] + skip, 0.0)
    o_ref[0] = out.reshape(h, w, cp).astype(o_ref.dtype)


def _res_block_identity_kernel(x_ref, w1_ref, b1_ref, w2_ref, b2_ref,
                               o_ref, x_pad, h1_pad):
    """relu(conv2(relu(conv1(x))) + x): identity skip is a VPU add (no eye matmul)."""
    h, w, cp = o_ref.shape[1], o_ref.shape[2], o_ref.shape[3]

    _zero_halo(x_pad, h, w, cp)
    _zero_halo(h1_pad, h, w, cp)

    x_pad[1:h + 1, 1:w + 1, :] = x_ref[0]

    acc1 = _conv3x3(x_pad, w1_ref, h, w, cp)
    h1 = jnp.maximum(acc1 + b1_ref[...], 0.0)
    h1_pad[1:h + 1, 1:w + 1, :] = h1.reshape(h, w, cp).astype(h1_pad.dtype)

    acc2 = _conv3x3(h1_pad, w2_ref, h, w, cp)

    skip = x_ref[0].reshape(h * w, cp).astype(jnp.float32)
    out = jnp.maximum(acc2 + b2_ref[...] + skip, 0.0)
    o_ref[0] = out.reshape(h, w, cp).astype(o_ref.dtype)


# --------------------------------------------------------------------------- #
# JAX glue: weight packing, nearest interpolation, wrapper around pallas_call
# --------------------------------------------------------------------------- #
def _w3x3_to_taps(w, cp):
    """(Cout, Cin, 3, 3) -> (9, CP, CP) bf16 tap matrices, tap t = kh*3 + kw."""
    cout, cin = w.shape[0], w.shape[1]
    m = jnp.transpose(w, (2, 3, 1, 0)).reshape(9, cin, cout)
    return jnp.pad(m, ((0, 0), (0, cp - cin), (0, cp - cout))).astype(MXU_DTYPE)


def _pad_bias(b, cp):
    return jnp.pad(b, (0, cp - b.shape[0])).reshape(1, cp).astype(jnp.float32)


def _interpolate_nearest_nhwc(x, out_size):
    """PyTorch F.interpolate(mode='nearest') on NHWC: src = floor(dst*in/out)."""
    _, h, w, _ = x.shape
    ih = (jnp.arange(out_size) * h) // out_size
    iw = (jnp.arange(out_size) * w) // out_size
    return x[:, ih[:, None], iw[None, :], :]


def _interpolate_nearest_nchw(x, out_size):
    _, _, h, w = x.shape
    ih = (jnp.arange(out_size) * h) // out_size
    iw = (jnp.arange(out_size) * w) // out_size
    return x[:, :, ih[:, None], iw[None, :]]


def _residual_block_pallas(p, x_nhwc, cp):
    """x_nhwc: (N, H, W, CP) bf16, channel-padded. Returns same shape/dtype
    (padded channels stay exactly zero through the chain)."""
    n, h, w, _ = x_nhwc.shape
    cout, cin = p["w1"].shape[0], p["w1"].shape[1]

    w1 = _w3x3_to_taps(p["w1"], cp)
    w2 = _w3x3_to_taps(p["w2"], cp)
    b1 = _pad_bias(p["b1"], cp)
    b2 = _pad_bias(p["b2"], cp)

    x_spec = pl.BlockSpec((1, h, w, cp), lambda b: (b, 0, 0, 0))
    w_spec = pl.BlockSpec((9, cp, cp), lambda b: (0, 0, 0))
    v_spec = pl.BlockSpec((1, cp), lambda b: (0, 0))
    out_spec = pl.BlockSpec((1, h, w, cp), lambda b: (b, 0, 0, 0))

    if "ws" in p:   # 1x1-conv skip branch
        ws = jnp.pad(p["ws"].reshape(cout, cin).T,
                     ((0, cp - cin), (0, cp - cout))).astype(MXU_DTYPE)
        bs = _pad_bias(p["bs"], cp)
        kernel = _res_block_skipconv_kernel
        args = (x_nhwc, w1, b1, w2, b2, ws, bs)
        in_specs = [x_spec, w_spec, v_spec, w_spec, v_spec,
                    pl.BlockSpec((cp, cp), lambda b: (0, 0)), v_spec]
        n_dots = 19
    else:           # identity skip: plain VPU add inside the kernel (no eye matmul)
        kernel = _res_block_identity_kernel
        args = (x_nhwc, w1, b1, w2, b2)
        in_specs = [x_spec, w_spec, v_spec, w_spec, v_spec]
        n_dots = 18

    # Honest VMEM budget: double-buffered x/out blocks + params, two halo-padded bf16
    # staging scratches, plus f32 in-kernel temporaries (acc / h1 / skip / tap views).
    act_bytes = h * w * cp * 2
    pad_bytes = (h + 2) * (w + 2) * cp * 2
    w_bytes = sum(int(a.size) * a.dtype.itemsize for a in args[1:])
    tmp_bytes = 8 * h * w * cp * 4
    vmem_need = 4 * act_bytes + 2 * w_bytes + 2 * pad_bytes + tmp_bytes
    vmem_limit = int(min(_vmem_cap_bytes(), max(2 * vmem_need, 16 * 1024 * 1024)))

    flops = 2 * n * h * w * cp * cp * n_dots
    bytes_accessed = n * 2 * act_bytes + w_bytes

    return pl.pallas_call(
        kernel,
        out_shape=jax.ShapeDtypeStruct((n, h, w, cp), ACT_DTYPE),
        grid=(n,),
        in_specs=in_specs,
        out_specs=out_spec,
        scratch_shapes=[pltpu.VMEM((h + 2, w + 2, cp), ACT_DTYPE),   # x staging
                        pltpu.VMEM((h + 2, w + 2, cp), ACT_DTYPE)],  # h1 staging
        compiler_params=pltpu.CompilerParams(
            dimension_semantics=("parallel",),
            vmem_limit_bytes=vmem_limit),
        cost_estimate=pl.CostEstimate(flops=int(flops), transcendentals=0,
                                      bytes_accessed=int(bytes_accessed)),
    )(*args)


# --------------------------------------------------------------------------- #
# UpScale: init + forward (Pallas) + pure-JAX reference
# --------------------------------------------------------------------------- #
def upscale_init(key, in_f, out_f, in_size, out_size, n_blocks=None):
    assert in_size < out_size, "It should only be used for upscaling"
    n_blocks = n_blocks if n_blocks is not None else out_size // (in_size * 2) + 1
    sizes = [int(in_size * ((n_blocks - b) / n_blocks) + out_size * (b / n_blocks))
             for b in range(n_blocks + 1)]
    fs = [int(in_f * ((n_blocks - b) / n_blocks) + out_f * (b / n_blocks))
          for b in range(n_blocks + 1)]

    def unif(k, shape, fan_in):
        bound = 1.0 / (fan_in ** 0.5)
        return jax.random.uniform(k, shape, jnp.float32, -bound, bound)

    params = []
    for b in range(n_blocks):
        cin, cout = fs[b], fs[b + 1]
        key, k1, k2, k3, k4, k5, k6 = jax.random.split(key, 7)
        p = {
            "w1": unif(k1, (cout, cin, 3, 3), cin * 9),
            "b1": unif(k2, (cout,), cin * 9),
            "w2": unif(k3, (cout, cout, 3, 3), cout * 9),
            "b2": unif(k4, (cout,), cout * 9),
        }
        if cin != cout:
            p["ws"] = unif(k5, (cout, cin, 1, 1), cin)
            p["bs"] = unif(k6, (cout,), cin)
        params.append(p)
    cfg = {
        "n_blocks": n_blocks, "sizes": sizes, "fs": fs,
        # late-binding lambda bug: every interpolate goes to the final size
        "interp_size": sizes[-1],
        # lane-aligned channel width used throughout the Pallas path
        "cp": 128 * ((max(fs) + 127) // 128),
    }
    return params, cfg


def upscale_forward(params, cfg, x_nchw):
    cp = cfg["cp"]
    in_f = x_nchw.shape[1]
    s = cfg["interp_size"]
    # NHWC + lane-pad channels + bf16, once; activations stay bf16 NHWC across blocks.
    x = jnp.transpose(x_nchw, (0, 2, 3, 1)).astype(ACT_DTYPE)
    x = jnp.pad(x, ((0, 0), (0, 0), (0, 0), (0, cp - in_f)))
    for p in params:
        # Late-binding lambda => every interpolate targets sizes[-1]; after the first
        # block the activation is already that size, so the gather is an identity and
        # is skipped entirely (removes a full HBM read+write per block).
        if x.shape[1] != s or x.shape[2] != s:
            x = _interpolate_nearest_nhwc(x, s)
        x = _residual_block_pallas(p, x, cp)
    out_f = cfg["fs"][-1]
    return jnp.transpose(x[..., :out_f].astype(jnp.float32), (0, 3, 1, 2))


# pure-JAX f32 reference (for a correctness check only; the Pallas path runs the
# matmuls and inter-block activations in bf16 -- accepted precision contract).
def _ref_conv(x, w, b, pad):
    y = jax.lax.conv_general_dilated(
        x, w, (1, 1), [(pad, pad), (pad, pad)],
        dimension_numbers=("NCHW", "OIHW", "NCHW"))
    return y + b[None, :, None, None]


def upscale_reference(params, cfg, x_nchw):
    x = x_nchw
    for p in params:
        x = _interpolate_nearest_nchw(x, cfg["interp_size"])
        h = jax.nn.relu(_ref_conv(x, p["w1"], p["b1"], 1))
        h = _ref_conv(h, p["w2"], p["b2"], 1)
        skip = _ref_conv(x, p["ws"], p["bs"], 0) if "ws" in p else x
        x = jax.nn.relu(h + skip)
    return x


if __name__ == "__main__":
    key = jax.random.PRNGKey(0)
    kx, kp, kx2, kp2 = jax.random.split(key, 4)

    # --- test 1: channel-growing upscale (1x1-conv skip kernel) ---------------- #
    n, in_f, out_f, in_size, out_size = 2, 4, 8, 8, 16   # n_blocks=2, fs=[4,6,8]
    x = jax.random.normal(kx, (n, in_f, in_size, in_size), dtype=jnp.float32)
    params, cfg = upscale_init(kp, in_f, out_f, in_size, out_size)

    fwd = jax.jit(lambda prm, inp: upscale_forward(prm, cfg, inp))
    y = jax.block_until_ready(fwd(params, x))
    assert y.shape == (n, out_f, out_size, out_size), y.shape

    y_ref = jax.block_until_ready(upscale_reference(params, cfg, x))
    if not bool(jnp.allclose(y, y_ref, atol=4e-2, rtol=4e-2)):
        raise AssertionError(
            f"skip-conv path mismatch vs reference, "
            f"max abs diff {float(jnp.max(jnp.abs(y - y_ref)))}")

    # --- test 2: constant-channel upscale (identity-skip / VPU-add kernel) ----- #
    n2, f2, in_size2, out_size2 = 1, 4, 8, 16            # fs=[4,4,4] -> identity skip
    x2 = jax.random.normal(kx2, (n2, f2, in_size2, in_size2), dtype=jnp.float32)
    params2, cfg2 = upscale_init(kp2, f2, f2, in_size2, out_size2)

    fwd2 = jax.jit(lambda prm, inp: upscale_forward(prm, cfg2, inp))
    y2 = jax.block_until_ready(fwd2(params2, x2))
    assert y2.shape == (n2, f2, out_size2, out_size2), y2.shape

    y2_ref = jax.block_until_ready(upscale_reference(params2, cfg2, x2))
    if not bool(jnp.allclose(y2, y2_ref, atol=4e-2, rtol=4e-2)):
        raise AssertionError(
            f"identity-skip path mismatch vs reference, "
            f"max abs diff {float(jnp.max(jnp.abs(y2 - y2_ref)))}")

    print("KERNEL_OK")
</pallas_src>

<mosaic_0001>
module attributes {stable_mosaic.version = 11 : i64} {
  func.func @_res_block_skipconv_kernel(%arg0: i32, %arg1: memref<1x16x16x128xbf16, #tpu.memory_space<vmem>>, %arg2: memref<9x128x128xbf16, #tpu.memory_space<vmem>>, %arg3: memref<1x128xf32, #tpu.memory_space<vmem>>, %arg4: memref<9x128x128xbf16, #tpu.memory_space<vmem>>, %arg5: memref<1x128xf32, #tpu.memory_space<vmem>>, %arg6: memref<128x128xbf16, #tpu.memory_space<vmem>>, %arg7: memref<1x128xf32, #tpu.memory_space<vmem>>, %arg8: memref<1x16x16x128xbf16, #tpu.memory_space<vmem>>, %arg9: memref<18x18x128xbf16, #tpu.memory_space<vmem>>, %arg10: memref<18x18x128xbf16, #tpu.memory_space<vmem>>) attributes {dimension_semantics = [#tpu.dimension_semantics<parallel>], iteration_bounds = array<i64: 2>, scalar_prefetch = 0 : i64, scratch_operands = 2 : i64, tpu.core_type = #tpu.core_type<tc>, window_params = [{transform_indices = @transform_0, window_bounds = array<i64: 1, 16, 16, 128>}, {pipeline_mode = #tpu.pipeline_mode<synchronous>, transform_indices = @transform_1, window_bounds = array<i64: 9, 128, 128>}, {pipeline_mode = #tpu.pipeline_mode<synchronous>, transform_indices = @transform_2, window_bounds = array<i64: 1, 128>}, {pipeline_mode = #tpu.pipeline_mode<synchronous>, transform_indices = @transform_3, window_bounds = array<i64: 9, 128, 128>}, {pipeline_mode = #tpu.pipeline_mode<synchronous>, transform_indices = @transform_4, window_bounds = array<i64: 1, 128>}, {pipeline_mode = #tpu.pipeline_mode<synchronous>, transform_indices = @transform_5, window_bounds = array<i64: 128, 128>}, {pipeline_mode = #tpu.pipeline_mode<synchronous>, transform_indices = @transform_6, window_bounds = array<i64: 1, 128>}, {transform_indices = @transform_7, window_bounds = array<i64: 1, 16, 16, 128>}]} {
    %cst = arith.constant 0.000000e+00 : bf16
    %0 = vector.broadcast %cst : bf16 to vector<1x18x128xbf16>
    %cst_0 = arith.constant 0.000000e+00 : bf16
    %1 = vector.broadcast %cst_0 : bf16 to vector<18x1x128xbf16>
    %c0 = arith.constant 0 : index
    %c0_1 = arith.constant 0 : index
    %c0_2 = arith.constant 0 : index
    %2 = vector.load %arg9[%c0, %c0_1, %c0_2] : memref<18x18x128xbf16, #tpu.memory_space<vmem>>, vector<1x18x128xbf16>
    tpu.vector_store %arg9[%c0, %c0_1, %c0_2], %0 {strides = array<i32>} : memref<18x18x128xbf16, #tpu.memory_space<vmem>>, vector<1x18x128xbf16>,
    %c17 = arith.constant 17 : index
    %c0_3 = arith.constant 0 : index
    %c0_4 = arith.constant 0 : index
    %3 = vector.load %arg9[%c17, %c0_3, %c0_4] : memref<18x18x128xbf16, #tpu.memory_space<vmem>>, vector<1x18x128xbf16>
    tpu.vector_store %arg9[%c17, %c0_3, %c0_4], %0 {strides = array<i32>} : memref<18x18x128xbf16, #tpu.memory_space<vmem>>, vector<1x18x128xbf16>,
    %c0_5 = arith.constant 0 : index
    %c0_6 = arith.constant 0 : index
    %c0_7 = arith.constant 0 : index
    %4 = vector.load %arg9[%c0_5, %c0_6, %c0_7] : memref<18x18x128xbf16, #tpu.memory_space<vmem>>, vector<18x1x128xbf16>
    tpu.vector_store %arg9[%c0_5, %c0_6, %c0_7], %1 {strides = array<i32>} : memref<18x18x128xbf16, #tpu.memory_space<vmem>>, vector<18x1x128xbf16>,
    %c0_8 = arith.constant 0 : index
    %c17_9 = arith.constant 17 : index
    %c0_10 = arith.constant 0 : index
    %5 = vector.load %arg9[%c0_8, %c17_9, %c0_10] : memref<18x18x128xbf16, #tpu.memory_space<vmem>>, vector<18x1x128xbf16>
    tpu.vector_store %arg9[%c0_8, %c17_9, %c0_10], %1 {strides = array<i32>} : memref<18x18x128xbf16, #tpu.memory_space<vmem>>, vector<18x1x128xbf16>,
    %cst_11 = arith.constant 0.000000e+00 : bf16
    %6 = vector.broadcast %cst_11 : bf16 to vector<1x18x128xbf16>
    %cst_12 = arith.constant 0.000000e+00 : bf16
    %7 = vector.broadcast %cst_12 : bf16 to vector<18x1x128xbf16>
    %c0_13 = arith.constant 0 : index
    %c0_14 = arith.constant 0 : index
    %c0_15 = arith.constant 0 : index
    %8 = vector.load %arg10[%c0_13, %c0_14, %c0_15] : memref<18x18x128xbf16, #tpu.memory_space<vmem>>, vector<1x18x128xbf16>
    tpu.vector_store %arg10[%c0_13, %c0_14, %c0_15], %6 {strides = array<i32>} : memref<18x18x128xbf16, #tpu.memory_space<vmem>>, vector<1x18x128xbf16>,
    %c17_16 = arith.constant 17 : index
    %c0_17 = arith.constant 0 : index
    %c0_18 = arith.constant 0 : index
    %9 = vector.load %arg10[%c17_16, %c0_17, %c0_18] : memref<18x18x128xbf16, #tpu.memory_space<vmem>>, vector<1x18x128xbf16>
    tpu.vector_store %arg10[%c17_16, %c0_17, %c0_18], %6 {strides = array<i32>} : memref<18x18x128xbf16, #tpu.memory_space<vmem>>, vector<1x18x128xbf16>,
    %c0_19 = arith.constant 0 : index
    %c0_20 = arith.constant 0 : index
    %c0_21 = arith.constant 0 : index
    %10 = vector.load %arg10[%c0_19, %c0_20, %c0_21] : memref<18x18x128xbf16, #tpu.memory_space<vmem>>, vector<18x1x128xbf16>
    tpu.vector_store %arg10[%c0_19, %c0_20, %c0_21], %7 {strides = array<i32>} : memref<18x18x128xbf16, #tpu.memory_space<vmem>>, vector<18x1x128xbf16>,
    %c0_22 = arith.constant 0 : index
    %c17_23 = arith.constant 17 : index
    %c0_24 = arith.constant 0 : index
    %11 = vector.load %arg10[%c0_22, %c17_23, %c0_24] : memref<18x18x128xbf16, #tpu.memory_space<vmem>>, vector<18x1x128xbf16>
    tpu.vector_store %arg10[%c0_22, %c17_23, %c0_24], %7 {strides = array<i32>} : memref<18x18x128xbf16, #tpu.memory_space<vmem>>, vector<18x1x128xbf16>,
    %c0_25 = arith.constant 0 : index
    %c0_26 = arith.constant 0 : index
    %c0_27 = arith.constant 0 : index
    %c0_28 = arith.constant 0 : index
    %12 = vector.load %arg1[%c0_25, %c0_26, %c0_27, %c0_28] : memref<1x16x16x128xbf16, #tpu.memory_space<vmem>>, vector<1x16x16x128xbf16>
    %13 = vector.shape_cast %12 : vector<1x16x16x128xbf16> to vector<16x16x128xbf16>
    %c1 = arith.constant 1 : index
    %c1_29 = arith.constant 1 : index
    %c0_30 = arith.constant 0 : index
    %14 = vector.load %arg9[%c1, %c1_29, %c0_30] : memref<18x18x128xbf16, #tpu.memory_space<vmem>>, vector<16x16x128xbf16>
    tpu.vector_store %arg9[%c1, %c1_29, %c0_30], %13 {strides = array<i32>} : memref<18x18x128xbf16, #tpu.memory_space<vmem>>, vector<16x16x128xbf16>,
    %cst_31 = arith.constant 0.000000e+00 : f32
    %15 = vector.broadcast %cst_31 : f32 to vector<256x128xf32>
    %c0_32 = arith.constant 0 : index
    %c0_33 = arith.constant 0 : index
    %c0_34 = arith.constant 0 : index
    %16 = vector.load %arg9[%c0_32, %c0_33, %c0_34] : memref<18x18x128xbf16, #tpu.memory_space<vmem>>, vector<18x16x128xbf16>
    %17 = vector.extract_strided_slice %16 {offsets = [0, 0, 0], sizes = [16, 16, 128], strides = [1, 1, 1]} : vector<18x16x128xbf16> to vector<16x16x128xbf16>
    %18 = vector.shape_cast %17 : vector<16x16x128xbf16> to vector<256x128xbf16>
    %c0_35 = arith.constant 0 : index
    %c0_36 = arith.constant 0 : index
    %c0_37 = arith.constant 0 : index
    %19 = vector.load %arg2[%c0_35, %c0_36, %c0_37] : memref<9x128x128xbf16, #tpu.memory_space<vmem>>, vector<1x128x128xbf16>
    %20 = vector.shape_cast %19 : vector<1x128x128xbf16> to vector<128x128xbf16>
    %cst_38 = arith.constant dense<0.000000e+00> : vector<256x128xf32>
    %21 = tpu.matmul %18, %20, %cst_38 {dimension_numbers = #tpu.dot_dimension_numbers<[1], [0], [0], [1], [0, 0, 1, 1], [], []>} : vector<256x128xbf16>, vector<128x128xbf16>, vector<256x128xf32> -> vector<256x128xf32>
    %22 = arith.addf %15, %21 : vector<256x128xf32>
    %23 = vector.extract_strided_slice %16 {offsets = [1, 0, 0], sizes = [16, 16, 128], strides = [1, 1, 1]} : vector<18x16x128xbf16> to vector<16x16x128xbf16>
    %24 = vector.shape_cast %23 : vector<16x16x128xbf16> to vector<256x128xbf16>
    %c3 = arith.constant 3 : index
    %c0_39 = arith.constant 0 : index
    %c0_40 = arith.constant 0 : index
    %25 = vector.load %arg2[%c3, %c0_39, %c0_40] : memref<9x128x128xbf16, #tpu.memory_space<vmem>>, vector<1x128x128xbf16>
    %26 = vector.shape_cast %25 : vector<1x128x128xbf16> to vector<128x128xbf16>
    %cst_41 = arith.constant dense<0.000000e+00> : vector<256x128xf32>
    %27 = tpu.matmul %24, %26, %cst_41 {dimension_numbers = #tpu.dot_dimension_numbers<[1], [0], [0], [1], [0, 0, 1, 1], [], []>} : vector<256x128xbf16>, vector<128x128xbf16>, vector<256x128xf32> -> vector<256x128xf32>
    %28 = arith.addf %22, %27 : vector<256x128xf32>
    %29 = vector.extract_strided_slice %16 {offsets = [2, 0, 0], sizes = [16, 16, 128], strides = [1, 1, 1]} : vector<18x16x128xbf16> to vector<16x16x128xbf16>
    %30 = vector.shape_cast %29 : vector<16x16x128xbf16> to vector<256x128xbf16>
    %c6 = arith.constant 6 : index
    %c0_42 = arith.constant 0 : index
    %c0_43 = arith.constant 0 : index
    %31 = vector.load %arg2[%c6, %c0_42, %c0_43] : memref<9x128x128xbf16, #tpu.memory_space<vmem>>, vector<1x128x128xbf16>
    %32 = vector.shape_cast %31 : vector<1x128x128xbf16> to vector<128x128xbf16>
    %cst_44 = arith.constant dense<0.000000e+00> : vector<256x128xf32>
    %33 = tpu.matmul %30, %32, %cst_44 {dimension_numbers = #tpu.dot_dimension_numbers<[1], [0], [0], [1], [0, 0, 1, 1], [], []>} : vector<256x128xbf16>, vector<128x128xbf16>, vector<256x128xf32> -> vector<256x128xf32>
    %34 = arith.addf %28, %33 : vector<256x128xf32>
    %c0_45 = arith.constant 0 : index
    %c1_46 = arith.constant 1 : index
    %c0_47 = arith.constant 0 : index
    %35 = vector.load %arg9[%c0_45, %c1_46, %c0_47] : memref<18x18x128xbf16, #tpu.memory_space<vmem>>, vector<18x16x128xbf16>
    %36 = vector.extract_strided_slice %35 {offsets = [0, 0, 0], sizes = [16, 16, 128], strides = [1, 1, 1]} : vector<18x16x128xbf16> to vector<16x16x128xbf16>
    %37 = vector.shape_cast %36 : vector<16x16x128xbf16> to vector<256x128xbf16>
    %c1_48 = arith.constant 1 : index
    %c0_49 = arith.constant 0 : index
    %c0_50 = arith.constant 0 : index
    %38 = vector.load %arg2[%c1_48, %c0_49, %c0_50] : memref<9x128x128xbf16, #tpu.memory_space<vmem>>, vector<1x128x128xbf16>
    %39 = vector.shape_cast %38 : vector<1x128x128xbf16> to vector<128x128xbf16>
    %cst_51 = arith.constant dense<0.000000e+00> : vector<256x128xf32>
    %40 = tpu.matmul %37, %39, %cst_51 {dimension_numbers = #tpu.dot_dimension_numbers<[1], [0], [0], [1], [0, 0, 1, 1], [], []>} : vector<256x128xbf16>, vector<128x128xbf16>, vector<256x128xf32> -> vector<256x128xf32>
    %41 = arith.addf %34, %40 : vector<256x128xf32>
    %42 = vector.extract_strided_slice %35 {offsets = [1, 0, 0], sizes = [16, 16, 128], strides = [1, 1, 1]} : vector<18x16x128xbf16> to vector<16x16x128xbf16>
    %43 = vector.shape_cast %42 : vector<16x16x128xbf16> to vector<256x128xbf16>
    %c4 = arith.constant 4 : index
    %c0_52 = arith.constant 0 : index
    %c0_53 = arith.constant 0 : index
    %44 = vector.load %arg2[%c4, %c0_52, %c0_53] : memref<9x128x128xbf16, #tpu.memory_space<vmem>>, vector<1x128x128xbf16>
    %45 = vector.shape_cast %44 : vector<1x128x128xbf16> to vector<128x128xbf16>
    %cst_54 = arith.constant dense<0.000000e+00> : vector<256x128xf32>
    %46 = tpu.matmul %43, %45, %cst_54 {dimension_numbers = #tpu.dot_dimension_numbers<[1], [0], [0], [1], [0, 0, 1, 1], [], []>} : vector<256x128xbf16>, vector<128x128xbf16>, vector<256x128xf32> -> vector<256x128xf32>
    %47 = arith.addf %41, %46 : vector<256x128xf32>
    %48 = vector.extract_strided_slice %35 {offsets = [2, 0, 0], sizes = [16, 16, 128], strides = [1, 1, 1]} : vector<18x16x128xbf16> to vector<16x16x128xbf16>
    %49 = vector.shape_cast %48 : vector<16x16x128xbf16> to vector<256x128xbf16>
    %c7 = arith.constant 7 : index
    %c0_55 = arith.constant 0 : index
    %c0_56 = arith.constant 0 : index
    %50 = vector.load %arg2[%c7, %c0_55, %c0_56] : memref<9x128x128xbf16, #tpu.memory_space<vmem>>, vector<1x128x128xbf16>
    %51 = vector.shape_cast %50 : vector<1x128x128xbf16> to vector<128x128xbf16>
    %cst_57 = arith.constant dense<0.000000e+00> : vector<256x128xf32>
    %52 = tpu.matmul %49, %51, %cst_57 {dimension_numbers = #tpu.dot_dimension_numbers<[1], [0], [0], [1], [0, 0, 1, 1], [], []>} : vector<256x128xbf16>, vector<128x128xbf16>, vector<256x128xf32> -> vector<256x128xf32>
    %53 = arith.addf %47, %52 : vector<256x128xf32>
    %c0_58 = arith.constant 0 : index
    %c2 = arith.constant 2 : index
    %c0_59 = arith.constant 0 : index
    %54 = vector.load %arg9[%c0_58, %c2, %c0_59] : memref<18x18x128xbf16, #tpu.memory_space<vmem>>, vector<18x16x128xbf16>
    %55 = vector.extract_strided_slice %54 {offsets = [0, 0, 0], sizes = [16, 16, 128], strides = [1, 1, 1]} : vector<18x16x128xbf16> to vector<16x16x128xbf16>
    %56 = vector.shape_cast %55 : vector<16x16x128xbf16> to vector<256x128xbf16>
    %c2_60 = arith.constant 2 : index
    %c0_61 = arith.constant 0 : index
    %c0_62 = arith.constant 0 : index
    %57 = vector.load %arg2[%c2_60, %c0_61, %c0_62] : memref<9x128x128xbf16, #tpu.memory_space<vmem>>, vector<1x128x128xbf16>
    %58 = vector.shape_cast %57 : vector<1x128x128xbf16> to vector<128x128xbf16>
    %cst_63 = arith.constant dense<0.000000e+00> : vector<256x128xf32>
    %59 = tpu.matmul %56, %58, %cst_63 {dimension_numbers = #tpu.dot_dimension_numbers<[1], [0], [0], [1], [0, 0, 1, 1], [], []>} : vector<256x128xbf16>, vector<128x128xbf16>, vector<256x128xf32> -> vector<256x128xf32>
    %60 = arith.addf %53, %59 : vector<256x128xf32>
    %61 = vector.extract_strided_slice %54 {offsets = [1, 0, 0], sizes = [16, 16, 128], strides = [1, 1, 1]} : vector<18x16x128xbf16> to vector<16x16x128xbf16>
    %62 = vector.shape_cast %61 : vector<16x16x128xbf16> to vector<256x128xbf16>
    %c5 = arith.constant 5 : index
    %c0_64 = arith.constant 0 : index
    %c0_65 = arith.constant 0 : index
    %63 = vector.load %arg2[%c5, %c0_64, %c0_65] : memref<9x128x128xbf16, #tpu.memory_space<vmem>>, vector<1x128x128xbf16>
    %64 = vector.shape_cast %63 : vector<1x128x128xbf16> to vector<128x128xbf16>
    %cst_66 = arith.constant dense<0.000000e+00> : vector<256x128xf32>
    %65 = tpu.matmul %62, %64, %cst_66 {dimension_numbers = #tpu.dot_dimension_numbers<[1], [0], [0], [1], [0, 0, 1, 1], [], []>} : vector<256x128xbf16>, vector<128x128xbf16>, vector<256x128xf32> -> vector<256x128xf32>
    %66 = arith.addf %60, %65 : vector<256x128xf32>
    %67 = vector.extract_strided_slice %54 {offsets = [2, 0, 0], sizes = [16, 16, 128], strides = [1, 1, 1]} : vector<18x16x128xbf16> to vector<16x16x128xbf16>
    %68 = vector.shape_cast %67 : vector<16x16x128xbf16> to vector<256x128xbf16>
    %c8 = arith.constant 8 : index
    %c0_67 = arith.constant 0 : index
    %c0_68 = arith.constant 0 : index
    %69 = vector.load %arg2[%c8, %c0_67, %c0_68] : memref<9x128x128xbf16, #tpu.memory_space<vmem>>, vector<1x128x128xbf16>
    %70 = vector.shape_cast %69 : vector<1x128x128xbf16> to vector<128x128xbf16>
    %cst_69 = arith.constant dense<0.000000e+00> : vector<256x128xf32>
    %71 = tpu.matmul %68, %70, %cst_69 {dimension_numbers = #tpu.dot_dimension_numbers<[1], [0], [0], [1], [0, 0, 1, 1], [], []>} : vector<256x128xbf16>, vector<128x128xbf16>, vector<256x128xf32> -> vector<256x128xf32>
    %72 = arith.addf %66, %71 : vector<256x128xf32>
    %c0_70 = arith.constant 0 : index
    %c0_71 = arith.constant 0 : index
    %73 = vector.load %arg3[%c0_70, %c0_71] : memref<1x128xf32, #tpu.memory_space<vmem>>, vector<1x128xf32>
    %74 = vector.broadcast %73 : vector<1x128xf32> to vector<256x128xf32>
    %75 = arith.addf %72, %74 : vector<256x128xf32>
    %cst_72 = arith.constant 0.000000e+00 : f32
    %76 = vector.broadcast %cst_72 : f32 to vector<256x128xf32>
    %77 = arith.maximumf %75, %76 : vector<256x128xf32>
    %78 = vector.shape_cast %77 : vector<256x128xf32> to vector<16x16x128xf32>
    %79 = arith.truncf %78 : vector<16x16x128xf32> to vector<16x16x128xbf16>
    %c1_73 = arith.constant 1 : index
    %c1_74 = arith.constant 1 : index
    %c0_75 = arith.constant 0 : index
    %80 = vector.load %arg10[%c1_73, %c1_74, %c0_75] : memref<18x18x128xbf16, #tpu.memory_space<vmem>>, vector<16x16x128xbf16>
    tpu.vector_store %arg10[%c1_73, %c1_74, %c0_75], %79 {strides = array<i32>} : memref<18x18x128xbf16, #tpu.memory_space<vmem>>, vector<16x16x128xbf16>,
    %cst_76 = arith.constant 0.000000e+00 : f32
    %81 = vector.broadcast %cst_76 : f32 to vector<256x128xf32>
    %c0_77 = arith.constant 0 : index
    %c0_78 = arith.constant 0 : index
    %c0_79 = arith.constant 0 : index
    %82 = vector.load %arg10[%c0_77, %c0_78, %c0_79] : memref<18x18x128xbf16, #tpu.memory_space<vmem>>, vector<18x16x128xbf16>
    %83 = vector.extract_strided_slice %82 {offsets = [0, 0, 0], sizes = [16, 16, 128], strides = [1, 1, 1]} : vector<18x16x128xbf16> to vector<16x16x128xbf16>
    %84 = vector.shape_cast %83 : vector<16x16x128xbf16> to vector<256x128xbf16>
    %c0_80 = arith.constant 0 : index
    %c0_81 = arith.constant 0 : index
    %c0_82 = arith.constant 0 : index
    %85 = vector.load %arg4[%c0_80, %c0_81, %c0_82] : memref<9x128x128xbf16, #tpu.memory_space<vmem>>, vector<1x128x128xbf16>
    %86 = vector.shape_cast %85 : vector<1x128x128xbf16> to vector<128x128xbf16>
    %cst_83 = arith.constant dense<0.000000e+00> : vector<256x128xf32>
    %87 = tpu.matmul %84, %86, %cst_83 {dimension_numbers = #tpu.dot_dimension_numbers<[1], [0], [0], [1], [0, 0, 1, 1], [], []>} : vector<256x128xbf16>, vector<128x128xbf16>, vector<256x128xf32> -> vector<256x128xf32>
    %88 = arith.addf %81, %87 : vector<256x128xf32>
    %89 = vector.extract_strided_slice %82 {offsets = [1, 0, 0], sizes = [16, 16, 128], strides = [1, 1, 1]} : vector<18x16x128xbf16> to vector<16x16x128xbf16>
    %90 = vector.shape_cast %89 : vector<16x16x128xbf16> to vector<256x128xbf16>
    %c3_84 = arith.constant 3 : index
    %c0_85 = arith.constant 0 : index
    %c0_86 = arith.constant 0 : index
    %91 = vector.load %arg4[%c3_84, %c0_85, %c0_86] : memref<9x128x128xbf16, #tpu.memory_space<vmem>>, vector<1x128x128xbf16>
    %92 = vector.shape_cast %91 : vector<1x128x128xbf16> to vector<128x128xbf16>
    %cst_87 = arith.constant dense<0.000000e+00> : vector<256x128xf32>
    %93 = tpu.matmul %90, %92, %cst_87 {dimension_numbers = #tpu.dot_dimension_numbers<[1], [0], [0], [1], [0, 0, 1, 1], [], []>} : vector<256x128xbf16>, vector<128x128xbf16>, vector<256x128xf32> -> vector<256x128xf32>
    %94 = arith.addf %88, %93 : vector<256x128xf32>
    %95 = vector.extract_strided_slice %82 {offsets = [2, 0, 0], sizes = [16, 16, 128], strides = [1, 1, 1]} : vector<18x16x128xbf16> to vector<16x16x128xbf16>
    %96 = vector.shape_cast %95 : vector<16x16x128xbf16> to vector<256x128xbf16>
    %c6_88 = arith.constant 6 : index
    %c0_89 = arith.constant 0 : index
    %c0_90 = arith.constant 0 : index
    %97 = vector.load %arg4[%c6_88, %c0_89, %c0_90] : memref<9x128x128xbf16, #tpu.memory_space<vmem>>, vector<1x128x128xbf16>
    %98 = vector.shape_cast %97 : vector<1x128x128xbf16> to vector<128x128xbf16>
    %cst_91 = arith.constant dense<0.000000e+00> : vector<256x128xf32>
    %99 = tpu.matmul %96, %98, %cst_91 {dimension_numbers = #tpu.dot_dimension_numbers<[1], [0], [0], [1], [0, 0, 1, 1], [], []>} : vector<256x128xbf16>, vector<128x128xbf16>, vector<256x128xf32> -> vector<256x128xf32>
    %100 = arith.addf %94, %99 : vector<256x128xf32>
    %c0_92 = arith.constant 0 : index
    %c1_93 = arith.constant 1 : index
    %c0_94 = arith.constant 0 : index
    %101 = vector.load %arg10[%c0_92, %c1_93, %c0_94] : memref<18x18x128xbf16, #tpu.memory_space<vmem>>, vector<18x16x128xbf16>
    %102 = vector.extract_strided_slice %101 {offsets = [0, 0, 0], sizes = [16, 16, 128], strides = [1, 1, 1]} : vector<18x16x128xbf16> to vector<16x16x128xbf16>
    %103 = vector.shape_cast %102 : vector<16x16x128xbf16> to vector<256x128xbf16>
    %c1_95 = arith.constant 1 : index
    %c0_96 = arith.constant 0 : index
    %c0_97 = arith.constant 0 : index
    %104 = vector.load %arg4[%c1_95, %c0_96, %c0_97] : memref<9x128x128xbf16, #tpu.memory_space<vmem>>, vector<1x128x128xbf16>
    %105 = vector.shape_cast %104 : vector<1x128x128xbf16> to vector<128x128xbf16>
    %cst_98 = arith.constant dense<0.000000e+00> : vector<256x128xf32>
    %106 = tpu.matmul %103, %105, %cst_98 {dimension_numbers = #tpu.dot_dimension_numbers<[1], [0], [0], [1], [0, 0, 1, 1], [], []>} : vector<256x128xbf16>, vector<128x128xbf16>, vector<256x128xf32> -> vector<256x128xf32>
    %107 = arith.addf %100, %106 : vector<256x128xf32>
    %108 = vector.extract_strided_slice %101 {offsets = [1, 0, 0], sizes = [16, 16, 128], strides = [1, 1, 1]} : vector<18x16x128xbf16> to vector<16x16x128xbf16>
    %109 = vector.shape_cast %108 : vector<16x16x128xbf16> to vector<256x128xbf16>
    %c4_99 = arith.constant 4 : index
    %c0_100 = arith.constant 0 : index
    %c0_101 = arith.constant 0 : index
    %110 = vector.load %arg4[%c4_99, %c0_100, %c0_101] : memref<9x128x128xbf16, #tpu.memory_space<vmem>>, vector<1x128x128xbf16>
    %111 = vector.shape_cast %110 : vector<1x128x128xbf16> to vector<128x128xbf16>
    %cst_102 = arith.constant dense<0.000000e+00> : vector<256x128xf32>
    %112 = tpu.matmul %109, %111, %cst_102 {dimension_numbers = #tpu.dot_dimension_numbers<[1], [0], [0], [1], [0, 0, 1, 1], [], []>} : vector<256x128xbf16>, vector<128x128xbf16>, vector<256x128xf32> -> vector<256x128xf32>
    %113 = arith.addf %107, %112 : vector<256x128xf32>
    %114 = vector.extract_strided_slice %101 {offsets = [2, 0, 0], sizes = [16, 16, 128], strides = [1, 1, 1]} : vector<18x16x128xbf16> to vector<16x16x128xbf16>
    %115 = vector.shape_cast %114 : vector<16x16x128xbf16> to vector<256x128xbf16>
    %c7_103 = arith.constant 7 : index
    %c0_104 = arith.constant 0 : index
    %c0_105 = arith.constant 0 : index
    %116 = vector.load %arg4[%c7_103, %c0_104, %c0_105] : memref<9x128x128xbf16, #tpu.memory_space<vmem>>, vector<1x128x128xbf16>
    %117 = vector.shape_cast %116 : vector<1x128x128xbf16> to vector<128x128xbf16>
    %cst_106 = arith.constant dense<0.000000e+00> : vector<256x128xf32>
    %118 = tpu.matmul %115, %117, %cst_106 {dimension_numbers = #tpu.dot_dimension_numbers<[1], [0], [0], [1], [0, 0, 1, 1], [], []>} : vector<256x128xbf16>, vector<128x128xbf16>, vector<256x128xf32> -> vector<256x128xf32>
    %119 = arith.addf %113, %118 : vector<256x128xf32>
    %c0_107 = arith.constant 0 : index
    %c2_108 = arith.constant 2 : index
    %c0_109 = arith.constant 0 : index
    %120 = vector.load %arg10[%c0_107, %c2_108, %c0_109] : memref<18x18x128xbf16, #tpu.memory_space<vmem>>, vector<18x16x128xbf16>
    %121 = vector.extract_strided_slice %120 {offsets = [0, 0, 0], sizes = [16, 16, 128], strides = [1, 1, 1]} : vector<18x16x128xbf16> to vector<16x16x128xbf16>
    %122 = vector.shape_cast %121 : vector<16x16x128xbf16> to vector<256x128xbf16>
    %c2_110 = arith.constant 2 : index
    %c0_111 = arith.constant 0 : index
    %c0_112 = arith.constant 0 : index
    %123 = vector.load %arg4[%c2_110, %c0_111, %c0_112] : memref<9x128x128xbf16, #tpu.memory_space<vmem>>, vector<1x128x128xbf16>
    %124 = vector.shape_cast %123 : vector<1x128x128xbf16> to vector<128x128xbf16>
    %cst_113 = arith.constant dense<0.000000e+00> : vector<256x128xf32>
    %125 = tpu.matmul %122, %124, %cst_113 {dimension_numbers = #tpu.dot_dimension_numbers<[1], [0], [0], [1], [0, 0, 1, 1], [], []>} : vector<256x128xbf16>, vector<128x128xbf16>, vector<256x128xf32> -> vector<256x128xf32>
    %126 = arith.addf %119, %125 : vector<256x128xf32>
    %127 = vector.extract_strided_slice %120 {offsets = [1, 0, 0], sizes = [16, 16, 128], strides = [1, 1, 1]} : vector<18x16x128xbf16> to vector<16x16x128xbf16>
    %128 = vector.shape_cast %127 : vector<16x16x128xbf16> to vector<256x128xbf16>
    %c5_114 = arith.constant 5 : index
    %c0_115 = arith.constant 0 : index
    %c0_116 = arith.constant 0 : index
    %129 = vector.load %arg4[%c5_114, %c0_115, %c0_116] : memref<9x128x128xbf16, #tpu.memory_space<vmem>>, vector<1x128x128xbf16>
    %130 = vector.shape_cast %129 : vector<1x128x128xbf16> to vector<128x128xbf16>
    %cst_117 = arith.constant dense<0.000000e+00> : vector<256x128xf32>
    %131 = tpu.matmul %128, %130, %cst_117 {dimension_numbers = #tpu.dot_dimension_numbers<[1], [0], [0], [1], [0, 0, 1, 1], [], []>} : vector<256x128xbf16>, vector<128x128xbf16>, vector<256x128xf32> -> vector<256x128xf32>
    %132 = arith.addf %126, %131 : vector<256x128xf32>
    %133 = vector.extract_strided_slice %120 {offsets = [2, 0, 0], sizes = [16, 16, 128], strides = [1, 1, 1]} : vector<18x16x128xbf16> to vector<16x16x128xbf16>
    %134 = vector.shape_cast %133 : vector<16x16x128xbf16> to vector<256x128xbf16>
    %c8_118 = arith.constant 8 : index
    %c0_119 = arith.constant 0 : index
    %c0_120 = arith.constant 0 : index
    %135 = vector.load %arg4[%c8_118, %c0_119, %c0_120] : memref<9x128x128xbf16, #tpu.memory_space<vmem>>, vector<1x128x128xbf16>
    %136 = vector.shape_cast %135 : vector<1x128x128xbf16> to vector<128x128xbf16>
    %cst_121 = arith.constant dense<0.000000e+00> : vector<256x128xf32>
    %137 = tpu.matmul %134, %136, %cst_121 {dimension_numbers = #tpu.dot_dimension_numbers<[1], [0], [0], [1], [0, 0, 1, 1], [], []>} : vector<256x128xbf16>, vector<128x128xbf16>, vector<256x128xf32> -> vector<256x128xf32>
    %138 = arith.addf %132, %137 : vector<256x128xf32>
    %c0_122 = arith.constant 0 : index
    %c0_123 = arith.constant 0 : index
    %c0_124 = arith.constant 0 : index
    %c0_125 = arith.constant 0 : index
    %139 = vector.load %arg1[%c0_122, %c0_123, %c0_124, %c0_125] : memref<1x16x16x128xbf16, #tpu.memory_space<vmem>>, vector<1x16x16x128xbf16>
    %140 = vector.shape_cast %139 : vector<1x16x16x128xbf16> to vector<16x16x128xbf16>
    %141 = vector.shape_cast %140 : vector<16x16x128xbf16> to vector<256x128xbf16>
    %c0_126 = arith.constant 0 : index
    %c0_127 = arith.constant 0 : index
    %142 = vector.load %arg6[%c0_126, %c0_127] : memref<128x128xbf16, #tpu.memory_space<vmem>>, vector<128x128xbf16>
    %cst_128 = arith.constant dense<0.000000e+00> : vector<256x128xf32>
    %143 = tpu.matmul %141, %142, %cst_128 {dimension_numbers = #tpu.dot_dimension_numbers<[1], [0], [0], [1], [0, 0, 1, 1], [], []>} : vector<256x128xbf16>, vector<128x128xbf16>, vector<256x128xf32> -> vector<256x128xf32>
    %c0_129 = arith.constant 0 : index
    %c0_130 = arith.constant 0 : index
    %144 = vector.load %arg7[%c0_129, %c0_130] : memref<1x128xf32, #tpu.memory_space<vmem>>, vector<1x128xf32>
    %145 = vector.broadcast %144 : vector<1x128xf32> to vector<256x128xf32>
    %146 = arith.addf %143, %145 : vector<256x128xf32>
    %c0_131 = arith.constant 0 : index
    %c0_132 = arith.constant 0 : index
    %147 = vector.load %arg5[%c0_131, %c0_132] : memref<1x128xf32, #tpu.memory_space<vmem>>, vector<1x128xf32>
    %148 = vector.broadcast %147 : vector<1x128xf32> to vector<256x128xf32>
    %149 = arith.addf %138, %148 : vector<256x128xf32>
    %150 = arith.addf %149, %146 : vector<256x128xf32>
    %cst_133 = arith.constant 0.000000e+00 : f32
    %151 = vector.broadcast %cst_133 : f32 to vector<256x128xf32>
    %152 = arith.maximumf %150, %151 : vector<256x128xf32>
    %153 = vector.shape_cast %152 : vector<256x128xf32> to vector<16x16x128xf32>
    %154 = arith.truncf %153 : vector<16x16x128xf32> to vector<16x16x128xbf16>
    %c0_134 = arith.constant 0 : index
    %c0_135 = arith.constant 0 : index
    %c0_136 = arith.constant 0 : index
    %c0_137 = arith.constant 0 : index
    %155 = vector.load %arg8[%c0_134, %c0_135, %c0_136, %c0_137] : memref<1x16x16x128xbf16, #tpu.memory_space<vmem>>, vector<1x16x16x128xbf16>
    %156 = vector.shape_cast %155 : vector<1x16x16x128xbf16> to vector<16x16x128xbf16>
    %157 = vector.shape_cast %154 : vector<16x16x128xbf16> to vector<1x16x16x128xbf16>
    tpu.vector_store %arg8[%c0_134, %c0_135, %c0_136, %c0_137], %157 {strides = array<i32>} : memref<1x16x16x128xbf16, #tpu.memory_space<vmem>>, vector<1x16x16x128xbf16>,
    return
  }
  func.func @transform_0(%arg0: i32) -> (i32, i32, i32, i32) {
    %c0_i32 = arith.constant 0 : i32
    %c0_i32_0 = arith.constant 0 : i32
    %c0_i32_1 = arith.constant 0 : i32
    %c0_i32_2 = arith.constant 0 : i32
    return %arg0, %c0_i32, %c0_i32_0, %c0_i32_1 : i32, i32, i32, i32
  }
  func.func @transform_1(%arg0: i32) -> (i32, i32, i32) {
    %c0_i32 = arith.constant 0 : i32
    %c0_i32_0 = arith.constant 0 : i32
    %c0_i32_1 = arith.constant 0 : i32
    %c0_i32_2 = arith.constant 0 : i32
    return %c0_i32, %c0_i32_0, %c0_i32_1 : i32, i32, i32
  }
  func.func @transform_2(%arg0: i32) -> (i32, i32) {
    %c0_i32 = arith.constant 0 : i32
    %c0_i32_0 = arith.constant 0 : i32
    %c0_i32_1 = arith.constant 0 : i32
    return %c0_i32, %c0_i32_0 : i32, i32
  }
  func.func @transform_3(%arg0: i32) -> (i32, i32, i32) {
    %c0_i32 = arith.constant 0 : i32
    %c0_i32_0 = arith.constant 0 : i32
    %c0_i32_1 = arith.constant 0 : i32
    %c0_i32_2 = arith.constant 0 : i32
    return %c0_i32, %c0_i32_0, %c0_i32_1 : i32, i32, i32
  }
  func.func @transform_4(%arg0: i32) -> (i32, i32) {
    %c0_i32 = arith.constant 0 : i32
    %c0_i32_0 = arith.constant 0 : i32
    %c0_i32_1 = arith.constant 0 : i32
    return %c0_i32, %c0_i32_0 : i32, i32
  }
  func.func @transform_5(%arg0: i32) -> (i32, i32) {
    %c0_i32 = arith.constant 0 : i32
    %c0_i32_0 = arith.constant 0 : i32
    %c0_i32_1 = arith.constant 0 : i32
    return %c0_i32, %c0_i32_0 : i32, i32
  }
  func.func @transform_6(%arg0: i32) -> (i32, i32) {
    %c0_i32 = arith.constant 0 : i32
    %c0_i32_0 = arith.constant 0 : i32
    %c0_i32_1 = arith.constant 0 : i32
    return %c0_i32, %c0_i32_0 : i32, i32
  }
  func.func @transform_7(%arg0: i32) -> (i32, i32, i32, i32) {
    %c0_i32 = arith.constant 0 : i32
    %c0_i32_0 = arith.constant 0 : i32
    %c0_i32_1 = arith.constant 0 : i32
    %c0_i32_2 = arith.constant 0 : i32
    return %arg0, %c0_i32, %c0_i32_0, %c0_i32_1 : i32, i32, i32, i32
  }
}

</mosaic_0001>

<bundles_post_ra>
// kernel: _lambda_.2
= control target key start
LH: loop header
LB: loop body
LE: loop exit
PB: predicated region body
PF: predicated region fallthrough
CT: control target
= control target key end

     0   :  { %s11829_s24 = smov 0   ;;  %s14261_s0 = inlined_call_operand.vmem [shape: bf16[2,16,16,128], index: 0, kind: input, shape index: {}]   ;;  %s14262_s1 = inlined_call_operand.vmem [shape: bf16[9,128,128], index: 1, kind: input, shape index: {}]   ;;  %s14263_s2 = inlined_call_operand.vmem [shape: f32[1,128], index: 2, kind: input, shape index: {}]   ;;  %s14264_s3 = inlined_call_operand.vmem [shape: bf16[9,128,128], index: 3, kind: input, shape index: {}]   ;;  %s14265_s4 = inlined_call_operand.vmem [shape: f32[1,128], index: 4, kind: input, shape index: {}]   ;;  %s14266_s5 = inlined_call_operand.vmem [shape: bf16[128,128], index: 5, kind: input, shape index: {}]   ;;  %s14267_s6 = inlined_call_operand.vmem [shape: f32[1,128], index: 6, kind: input, shape index: {}]   ;;  %s14268_s7 = inlined_call_operand.vmem [shape: bf16[2,16,16,128], index: 7, kind: output, shape index: {}]  }
   0x1 LB: > { %s8726_s25 = sadd.s32 4294967295, %s11786_s24   ;;  %p8730_p0 = scmp.ge.s32.totalorder %s11786_s24, 1  ;;  %s11786_s24 = sphi %s11829_s24, %s17_s24  }
   0x2   : > { %p237_p1 = scmp.lt.s32.totalorder %s11786_s24, 3 }
   0x4   : > { %p238_p2 = pnand %p8730_p0, %p237_p1 }
   0x6   : > { %241 = sbr.rel (%p238_p2) target bundleno = 1665 (0x681), region = 48 }
   0xd   : > { %v11534_v0 = vld [vmem:[%s14262_s1 + $0xc0] sm:$0xff]   ;;  %p269_p3 = scmp.lt.s32.totalorder %s8726_s25, 1  ;;  %v11535_v1 = vld [vmem:[%s14262_s1 + $0xc8] sm:$0xff]   ;;  %v11536_v2 = vld [vmem:[%s14262_s1 + $0xd0] sm:$0xff]   ;;  %vm287_vm0 = vcmask 1040384   ;;  %v11788_v3 = vmov 0  }
   0xe   : > { %9989 = vmatprep.subr.bf16.mxu0 %v11534_v0  ;;  %280 = vst [vmem:[#allocation2] sm:$0xf] %v11788_v3  ;;  %281 = vst [vmem:[#allocation2 + $0x4] sm:$0xf] %v11788_v3  ;;  %v11537_v4 = vld [vmem:[%s14262_s1 + $0xd8] sm:$0xff]   ;;  %vm870_vm2 = vcmask 1043456  }
   0xf   : > { %s14374_s25 = smov (!%p269_p3, %s8726_s25), 1  ;;  %9990 = vmatpush3.bf16.msra.mxu0 %v11534_v0  ;;  %282 = vst [vmem:[#allocation2 + $0x8] sm:$0x1] %v11788_v3  ;;  %284 = vst [vmem:[#allocation2 + $0xcc] sm:$0xf] %v11788_v3  ;;  %v11538_v9 = vld [vmem:[%s14262_s1 + $0xe0] sm:$0xff]  }
  0x10   : > { %9991 = vmatprep.subr.bf16.mxu0 %v11535_v1  ;;  %s9372_s9 = sshll.u32 %s14374_s25, 7  ;;  %285 = vst [vmem:[#allocation2 + $0xd0] sm:$0xf] %v11788_v3  ;;  %286 = vst [vmem:[#allocation2 + $0xd4] sm:$0x1] %v11788_v3  ;;  %v14300_v11 = vmov 0 }
  0x11   : > { %s11854_s12 = scalar_lea.vmem %s14261_s0, %s9372_s9  ;;  %400 = vst [vmem:[#allocation3] sm:$0xf] %v11788_v3  ;;  %401 = vst [vmem:[#allocation3 + $0x4] sm:$0xf] %v11788_v3  ;;  %vm288_vm1 = vsmask.f32 256  ;;  %s14176_s14 = scalar_lea.vmem %s14268_s7, %s9372_s9 }
  0x12   : > { %402 = vst [vmem:[#allocation3 + $0x8] sm:$0x1] %v11788_v3  ;;  %404 = vst [vmem:[#allocation3 + $0xcc] sm:$0xf] %v11788_v3  ;;  %v293_v5 = vld [vmem:[#allocation2 + $0xc] sm:$0x1] }
  0x13   : > { %405 = vst [vmem:[#allocation3 + $0xd0] sm:$0xf] %v11788_v3  ;;  %406 = vst [vmem:[#allocation3 + $0xd4] sm:$0x1] %v11788_v3  ;;  %9992 = vmatpush3.bf16.msra.mxu0 %v11535_v1  ;;  %vm344_vm4 = vsmask.f32 7938 }
  0x14   : > { %9993 = vmatprep.subr.bf16.mxu0 %v11536_v2  ;;  %vm11861_vm3 = vmand %vm287_vm0, %vm288_vm1  ;;  %v349_v7 = vld [vmem:[#allocation2 + $0x14] sm:$0x1]  ;;  %v515_v8 = vld [vmem:[%s11854_s12] sm:$0xf]  ;;  %vm547_vm6 = vsmask.f32 4368 }
  0x15   : > { %v294_v10 = vsel %vm11861_vm3, 0, %v293_v5  ;;  %vm11873_vm5 = vmand %vm287_vm0, %vm344_vm4  ;;  %v516_v12 = vld [vmem:[%s11854_s12 + $0x4] sm:$0xf]  ;;  %v550_v13 = vshrl.u32 %v515_v8, 16  ;;  %v553_v15 = vshll.u32 %v515_v8, 16  ;;  %v14303_v27 = vmov 0 }
  0x16   : > { %v14301_v11 = vsel %vm11873_vm5, 4294967295, %v14300_v11  ;;  %295 = vst [vmem:[#allocation2 + $0xc] sm:$0x1] %v294_v10  ;;  %v350_v14 = vsel %vm11873_vm5, 0, %v349_v7  ;;  %v558_v16 = vshrl.u32 %v516_v12, 16  ;;  %v561_v17 = vshll.u32 %v516_v12, 16  ;;  %vm11886_vm7 = vmor %vm288_vm1, %vm547_vm6 }
  0x17   : > { %14302 = vst [vmem:[#allocation4_spill] sm:$0xff] %v14301_v11  ;;  %9994 = vmatpush3.bf16.msra.mxu0 %v11536_v2  ;;  %v296_v18 = vld [vmem:[#allocation2 + $0x18] sm:$0x1]  ;;  %351 = vst [vmem:[#allocation2 + $0x14] sm:$0x1] %v350_v14  ;;  %v552_v19 = vrot.slane %v550_v13, 7 }
  0x18   : > { %9995 = vmatprep.subr.bf16.mxu0 %v11537_v4  ;;  %v297_v20 = vsel %vm11861_vm3, 0, %v296_v18  ;;  %v517_v21 = vld [vmem:[%s11854_s12 + $0x8] sm:$0xf]  ;;  %v518_v22 = vld [vmem:[%s11854_s12 + $0xc] sm:$0xf]  ;;  %v560_v23 = vrot.slane %v558_v16, 7  ;;  %vm11898_vm8 = vmand %vm870_vm2, %vm344_vm4 }
  0x19   : > { %298 = vst [vmem:[#allocation2 + $0x18] sm:$0x1] %v297_v20  ;;  %v567_v24 = vshrl.u32 %v517_v21, 16  ;;  %v570_v25 = vshll.u32 %v517_v21, 16  ;;  %v575_v26 = vshrl.u32 %v518_v22, 16  ;;  %v14304_v27 = vsel %vm11886_vm7, 4294967295, %v14303_v27 }
  0x1a   : > { %14305 = vst [vmem:[#allocation5_spill] sm:$0xff] %v14304_v27  ;;  %v556_v28 = vrot.slane %v552_v19, 4  ;;  %v578_v29 = vshll.u32 %v518_v22, 16  ;;  %v299_v30 = vld [vmem:[#allocation2 + $0x24] sm:$0x1]  ;;  %v11539_v31 = vld [vmem:[%s14262_s1 + $0xe8] sm:$0xff]   ;;  %v555_v32 = vor.u32 %v553_v15, %v552_v19  ;;  %v563_v33 = vor.u32 %v561_v17, %v560_v23 }
  0x1b   : > { %9996 = vmatpush3.bf16.msra.mxu0 %v11537_v4  ;;  %v569_v34 = vrot.slane %v567_v24, 7  ;;  %v11893_v35 = vrot.slane %v575_v26, 7  ;;  %v519_v36 = vld [vmem:[%s11854_s12 + $0x10] sm:$0xf]  ;;  %v565_v37 = vrot.slane %v560_v23, 4  ;;  %v14306_v38 = vmov 0 }
  0x1c   : > { %9997 = vmatprep.subr.bf16.mxu0 %v11538_v9  ;;  %v14307_v38 = vsel %vm11898_vm8, 4294967295, %v14306_v38  ;;  %v300_v39 = vsel %vm11861_vm3, 0, %v299_v30  ;;  %v520_v40 = vld [vmem:[%s11854_s12 + $0x14] sm:$0xf]  ;;  %v584_v41 = vshrl.u32 %v519_v36, 16  ;;  %v587_v42 = vshll.u32 %v519_v36, 16 }
  0x1d   : > { %14308 = vst [vmem:[#allocation6_spill] sm:$0xff] %v14307_v38  ;;  %v564_v43 = vsel %vm11886_vm7, %v556_v28, %v563_v33  ;;  %v572_v44 = vor.u32 %v570_v25, %v569_v34  ;;  %v573_v45 = vrot.slane %v569_v34, 4  ;;  %v580_v46 = vor.u32 %v578_v29, %v11893_v35  ;;  %301 = vst [vmem:[#allocation2 + $0x24] sm:$0x1] %v300_v39  ;;  %v302_v47 = vld [vmem:[#allocation2 + $0x30] sm:$0x1] }
  0x1e   : > { %v521_v48 = vld [vmem:[%s11854_s12 + $0x18] sm:$0xf]  ;;  %v11540_v49 = vld [vmem:[%s14262_s1 + $0xf0] sm:$0xff]   ;;  %v872_v50 = vld [vmem:[#allocation2 + $0xc] sm:$0xf]  ;;  %v586_v51 = vrot.slane %v584_v41, 7 }
  0x1f   : > { %875 = vst [vmem:[#allocation2 + $0x10] sm:$0xf] %v564_v43  ;;  %v592_v52 = vshrl.u32 %v520_v40, 16  ;;  %v595_v53 = vshll.u32 %v520_v40, 16  ;;  %9998 = vmatpush3.bf16.msra.mxu0 %v11538_v9  ;;  %v873_v54 = vsel %vm11898_vm8, %v555_v32, %v872_v50  ;;  %v876_v55 = vld [vmem:[#allocation2 + $0x14] sm:$0x1]  ;;  %v581_v56 = vsel %vm11886_vm7, %v573_v45, %v580_v46 }
  0x20   : > { %v303_v57 = vsel %vm11861_vm3, 0, %v302_v47  ;;  %v522_v58 = vld [vmem:[%s11854_s12 + $0x1c] sm:$0xf]  ;;  %v601_v59 = vshrl.u32 %v521_v48, 16  ;;  %9999 = vmatprep.subr.bf16.mxu0 %v11539_v31  ;;  %874 = vst [vmem:[#allocation2 + $0xc] sm:$0xf] %v873_v54  ;;  %v877_v60 = vsel %vm11861_vm3, %v565_v37, %v876_v55  ;;  %v589_v62 = vor.u32 %v587_v42, %v586_v51 }
  0x21   : > { %v879_v61 = vld [vmem:[#allocation2 + $0x18] sm:$0xf]  ;;  %882 = vst [vmem:[#allocation2 + $0x1c] sm:$0xf] %v581_v56  ;;  %v590_v63 = vrot.slane %v586_v51, 4  ;;  %v11921_v0 = vrot.slane %v592_v52, 7 }
  0x22   : > { %304 = vst [vmem:[#allocation2 + $0x30] sm:$0x1] %v303_v57  ;;  %878 = vst [vmem:[#allocation2 + $0x14] sm:$0x1] %v877_v60  ;;  %v880_v1 = vsel %vm11898_vm8, %v572_v44, %v879_v61  ;;  %v603_v2 = vrot.slane %v601_v59, 7  ;;  %v604_v3 = vshll.u32 %v521_v48, 16 }
  0x23   : > { %v609_v4 = vshrl.u32 %v522_v58, 16  ;;  %881 = vst [vmem:[#allocation2 + $0x18] sm:$0xf] %v880_v1  ;;  %v597_v5 = vor.u32 %v595_v53, %v11921_v0  ;;  %v612_v7 = vshll.u32 %v522_v58, 16  ;;  %v305_v8 = vld [vmem:[#allocation2 + $0x3c] sm:$0x1]  ;;  %10000 = vmatpush3.bf16.msra.mxu0 %v11539_v31 }
  0x24   : > { %v523_v9 = vld [vmem:[%s11854_s12 + $0x20] sm:$0xf]  ;;  %v607_v10 = vrot.slane %v603_v2, 4  ;;  %v306_v13 = vsel %vm11861_vm3, 0, %v305_v8  ;;  %v524_v14 = vld [vmem:[%s11854_s12 + $0x24] sm:$0xf]  ;;  %10001 = vmatprep.subr.bf16.mxu0 %v11540_v49  ;;  %v606_v22 = vor.u32 %v604_v3, %v603_v2 }
  0x25   : > { %v11927_v12 = vrot.slane %v609_v4, 7  ;;  %v11541_v15 = vld [vmem:[%s14262_s1 + $0xf8] sm:$0xff]   ;;  %v598_v16 = vsel %vm11886_vm7, %v590_v63, %v597_v5  ;;  %v886_v17 = vld [vmem:[#allocation2 + $0x24] sm:$0xf]  ;;  %307 = vst [vmem:[#allocation2 + $0x3c] sm:$0x1] %v306_v13 }
  0x26   : > { %v618_v18 = vshrl.u32 %v523_v9, 16  ;;  %v621_v19 = vshll.u32 %v523_v9, 16  ;;  %v626_v20 = vshrl.u32 %v524_v14, 16  ;;  %v887_v21 = vsel %vm11898_vm8, %v589_v62, %v886_v17  ;;  %889 = vst [vmem:[#allocation2 + $0x28] sm:$0xf] %v598_v16  ;;  %v11544_v34 = vld [vmem:[%s14262_s1] sm:$0xff]  }
  0x27   : > { %v614_v23 = vor.u32 %v612_v7, %v11927_v12  ;;  %v629_v24 = vshll.u32 %v524_v14, 16  ;;  %v308_v25 = vld [vmem:[#allocation2 + $0x48] sm:$0x1]  ;;  %888 = vst [vmem:[#allocation2 + $0x24] sm:$0xf] %v887_v21  ;;  %10002 = vmatpush3.bf16.msra.mxu0 %v11540_v49  ;;  %v11945_v31 = vld [vmem:[#allocation2 + $0xc] sm:$0xff]  }
  0x28   : > { %v620_v26 = vrot.slane %v618_v18, 7  ;;  %v11940_v28 = vrot.slane %v626_v20, 7  ;;  %v309_v29 = vsel %vm11861_vm3, 0, %v308_v25  ;;  %v525_v30 = vld [vmem:[%s11854_s12 + $0x28] sm:$0xf]  ;;  %10003 = vmatprep.subr.bf16.mxu0 %v11541_v15  ;;  %10005 = vmatprep.mubr.bf16.mxu0 %v11945_v31  ;;  %v11550_v62 = vld [vmem:[%s14262_s1 + $0x10] sm:$0xff]  }
  0x29   : > { %v615_v32 = vsel %vm11886_vm7, %v607_v10, %v614_v23  ;;  %310 = vst [vmem:[#allocation2 + $0x48] sm:$0x1] %v309_v29  ;;  %v635_v33 = vshrl.u32 %v525_v30, 16  ;;  %v893_v36 = vld [vmem:[#allocation2 + $0x30] sm:$0xf]  ;;  %v638_v44 = vshll.u32 %v525_v30, 16 }
  0x2a   : > { %896 = vst [vmem:[#allocation2 + $0x34] sm:$0xf] %v615_v32  ;;  %v623_v37 = vor.u32 %v621_v19, %v620_v26  ;;  %v624_v39 = vrot.slane %v620_v26, 4  ;;  %v631_v40 = vor.u32 %v629_v24, %v11940_v28  ;;  %v526_v41 = vld [vmem:[%s11854_s12 + $0x2c] sm:$0xf]  ;;  %v894_v42 = vsel %vm11898_vm8, %v606_v22, %v893_v36  ;;  %v11957_v46 = vld [vmem:[#allocation2 + $0x18] sm:$0xff]  }
  0x2b   : > { %v637_v43 = vrot.slane %v635_v33, 7  ;;  %v643_v45 = vshrl.u32 %v526_v41, 16  ;;  %895 = vst [vmem:[#allocation2 + $0x30] sm:$0xf] %v894_v42  ;;  %v646_v48 = vshll.u32 %v526_v41, 16  ;;  %10004 = vmatpush3.bf16.msra.mxu0 %v11541_v15  ;;  %v11547_v54 = vld [vmem:[%s14262_s1 + $0x8] sm:$0xff]  }
  0x2c   : > { %v632_v47 = vsel %vm11886_vm7, %v624_v39, %v631_v40  ;;  %v900_v49 = vld [vmem:[#allocation2 + $0x3c] sm:$0xf]  ;;  %v311_v53 = vld [vmem:[#allocation2 + $0x54] sm:$0x1]  ;;  %10037 = vmatprep.subr.bf16.mxu0 %v11544_v34  ;;  %v527_v57 = vld [vmem:[%s11854_s12 + $0x30] sm:$0xf] }
  0x2d   : > { %903 = vst [vmem:[#allocation2 + $0x40] sm:$0xf] %v632_v47  ;;  %v640_v50 = vor.u32 %v638_v44, %v637_v43  ;;  %v641_v51 = vrot.slane %v637_v43, 4  ;;  %v11961_v52 = vrot.slane %v643_v45, 7  ;;  %v901_v55 = vsel %vm11898_vm8, %v623_v37, %v900_v49  ;;  %v528_v60 = vld [vmem:[%s11854_s12 + $0x34] sm:$0xf] }
  0x2e   : > { %v312_v56 = vsel %vm11861_vm3, 0, %v311_v53  ;;  %v11971_v58 = vld [vmem:[#allocation2 + $0x24] sm:$0xff]   ;;  %902 = vst [vmem:[#allocation2 + $0x3c] sm:$0xf] %v901_v55  ;;  %10006 = vmatmul.mubr.bf16.vlgmr.msra.gmra.mrb[0].mxu0 %v11957_v46  ;;  %v652_v63 = vshrl.u32 %v527_v57, 16  ;;  %v655_v1 = vshll.u32 %v527_v57, 16 }
  0x2f   : > { %v648_v59 = vor.u32 %v646_v48, %v11961_v52  ;;  %313 = vst [vmem:[#allocation2 + $0x54] sm:$0x1] %v312_v56  ;;  %v660_v2 = vshrl.u32 %v528_v60, 16  ;;  %v663_v3 = vshll.u32 %v528_v60, 16  ;;  %10038 = vmatpush3.bf16.msra.mxu0 %v11544_v34  ;;  %10009 = vmatprep.mubr.bf16.mxu0 %v11971_v58  ;;  %v314_v7 = vld [vmem:[#allocation2 + $0x60] sm:$0x1] }
  0x30   : > { %v907_v61 = vld [vmem:[#allocation2 + $0x48] sm:$0xf]  ;;  %v529_v8 = vld [vmem:[%s11854_s12 + $0x38] sm:$0xf]  ;;  %10039 = vmatprep.subr.bf16.mxu0 %v11547_v54  ;;  %v654_v9 = vrot.slane %v652_v63, 7  ;;  %v315_v13 = vsel %vm11861_vm3, 0, %v314_v7 }
  0x31   : > { %v649_v4 = vsel %vm11886_vm7, %v641_v51, %v648_v59  ;;  %v908_v5 = vsel %vm11898_vm8, %v640_v50, %v907_v61  ;;  %v11985_v10 = vrot.slane %v660_v2, 7  ;;  %v530_v14 = vld [vmem:[%s11854_s12 + $0x3c] sm:$0xf]  ;;  %v669_v15 = vshrl.u32 %v529_v8, 16  ;;  %316 = vst [vmem:[#allocation2 + $0x60] sm:$0x1] %v315_v13 }
  0x32   : > { %909 = vst [vmem:[#allocation2 + $0x48] sm:$0xf] %v908_v5  ;;  %910 = vst [vmem:[#allocation2 + $0x4c] sm:$0xf] %v649_v4  ;;  %v672_v16 = vshll.u32 %v529_v8, 16  ;;  %v677_v17 = vshrl.u32 %v530_v14, 16  ;;  %v657_v20 = vor.u32 %v655_v1, %v654_v9 }
  0x33   : > { %v680_v18 = vshll.u32 %v530_v14, 16  ;;  %v11990_v19 = vld [vmem:[#allocation2 + $0x30] sm:$0xff]   ;;  %v658_v21 = vrot.slane %v654_v9, 4  ;;  %v665_v22 = vor.u32 %v663_v3, %v11985_v10  ;;  %v11553_v23 = vld [vmem:[%s14262_s1 + $0x18] sm:$0xff]   ;;  %10040 = vmatpush3.bf16.msra.mxu0 %v11547_v54  ;;  %v671_v24 = vrot.slane %v669_v15, 7  ;;  %v11556_v54 = vld [vmem:[%s14262_s1 + $0x20] sm:$0xff]  }
  0x34   : > { %v11996_v25 = vrot.slane %v677_v17, 7  ;;  %v317_v26 = vld [vmem:[#allocation2 + $0x6c] sm:$0x1]  ;;  %10041 = vmatprep.subr.bf16.mxu0 %v11550_v62  ;;  %v531_v40 = vld [vmem:[%s11854_s12 + $0x40] sm:$0xf]  ;;  %vm3238_vm12 = vcmask 1042432  }
  0x35   : > { %v11998_v29 = vld [vmem:[#allocation2 + $0x3c] sm:$0xff]   ;;  %v666_v30 = vsel %vm11886_vm7, %v658_v21, %v665_v22  ;;  %v318_v33 = vsel %vm11861_vm3, 0, %v317_v26  ;;  %v674_v36 = vor.u32 %v672_v16, %v671_v24  ;;  %v675_v37 = vrot.slane %v671_v24, 4  ;;  %v532_v41 = vld [vmem:[%s11854_s12 + $0x44] sm:$0xf]  ;;  %v11559_v1 = vld [vmem:[%s14262_s1 + $0x28] sm:$0xff]  }
  0x36   : > { %v914_v32 = vld [vmem:[#allocation2 + $0x54] sm:$0xf]  ;;  %917 = vst [vmem:[#allocation2 + $0x58] sm:$0xf] %v666_v30  ;;  %v682_v39 = vor.u32 %v680_v18, %v11996_v25  ;;  %319 = vst [vmem:[#allocation2 + $0x6c] sm:$0x1] %v318_v33  ;;  %10010 = vmatmul.mubr.bf16.gmra.mrb[4].mxu0 %v11990_v19 }
  0x37   : > { %v915_v34 = vsel %vm11898_vm8, %v657_v20, %v914_v32  ;;  %v686_v42 = vshrl.u32 %v531_v40, 16  ;;  %v689_v43 = vshll.u32 %v531_v40, 16  ;;  %v694_v44 = vshrl.u32 %v532_v41, 16  ;;  %v320_v45 = vld [vmem:[#allocation2 + $0x78] sm:$0x1]  ;;  %10013 = vmatprep.mubr.bf16.mxu0 %v11998_v29  ;;  %10042 = vmatpush3.bf16.msra.mxu0 %v11550_v62 }
  0x38   : > { %916 = vst [vmem:[#allocation2 + $0x54] sm:$0xf] %v915_v34  ;;  %v683_v47 = vsel %vm11886_vm7, %v675_v37, %v682_v39  ;;  %v697_v48 = vshll.u32 %v532_v41, 16  ;;  %v921_v49 = vld [vmem:[#allocation2 + $0x60] sm:$0xf]  ;;  %10043 = vmatprep.subr.bf16.mxu0 %v11553_v23  ;;  %v321_v53 = vsel %vm11861_vm3, 0, %v320_v45 }
  0x39   : > { %924 = vst [vmem:[#allocation2 + $0x64] sm:$0xf] %v683_v47  ;;  %v688_v50 = vrot.slane %v686_v42, 7  ;;  %v12013_v51 = vrot.slane %v694_v44, 7  ;;  %v922_v55 = vsel %vm11898_vm8, %v674_v36, %v921_v49  ;;  %322 = vst [vmem:[#allocation2 + $0x78] sm:$0x1] %v321_v53 }
  0x3a   : > { %v533_v56 = vld [vmem:[%s11854_s12 + $0x48] sm:$0xf]  ;;  %v534_v57 = vld [vmem:[%s11854_s12 + $0x4c] sm:$0xf]  ;;  %923 = vst [vmem:[#allocation2 + $0x60] sm:$0xf] %v922_v55 }
  0x3b   : > { %v12024_v59 = vld [vmem:[#allocation2 + $0x48] sm:$0xff]   ;;  %v691_v60 = vor.u32 %v689_v43, %v688_v50  ;;  %v692_v61 = vrot.slane %v688_v50, 4  ;;  %v699_v62 = vor.u32 %v697_v48, %v12013_v51  ;;  %v323_v63 = vld [vmem:[#allocation2 + $0x84] sm:$0x1]  ;;  %10044 = vmatpush3.bf16.msra.mxu0 %v11553_v23  ;;  %v703_v2 = vshrl.u32 %v533_v56, 16  ;;  %v11562_v39 = vld [vmem:[%s14262_s1 + $0x30] sm:$0xff]  }
  0x3c   : > { %v706_v3 = vshll.u32 %v533_v56, 16  ;;  %v711_v4 = vshrl.u32 %v534_v57, 16  ;;  %v714_v5 = vshll.u32 %v534_v57, 16  ;;  %v535_v7 = vld [vmem:[%s11854_s12 + $0x50] sm:$0xf]  ;;  %10045 = vmatprep.subr.bf16.mxu0 %v11556_v54  ;;  %v324_v13 = vsel %vm11861_vm3, 0, %v323_v63 }
  0x3d   : > { %v700_v8 = vsel %vm11886_vm7, %v692_v61, %v699_v62  ;;  %v928_v9 = vld [vmem:[#allocation2 + $0x6c] sm:$0xf]  ;;  %v720_v14 = vshrl.u32 %v535_v7, 16  ;;  %v705_v17 = vrot.slane %v703_v2, 7  ;;  %325 = vst [vmem:[#allocation2 + $0x84] sm:$0x1] %v324_v13 }
  0x3e   : > { %v929_v16 = vsel %vm11898_vm8, %v691_v60, %v928_v9  ;;  %931 = vst [vmem:[#allocation2 + $0x70] sm:$0xf] %v700_v8  ;;  %v12039_v18 = vrot.slane %v711_v4, 7  ;;  %v723_v20 = vshll.u32 %v535_v7, 16  ;;  %10014 = vmatmul.mubr.bf16.gmra.mrb[8].mxu0 %v12024_v59  ;;  %v536_v21 = vld [vmem:[%s11854_s12 + $0x54] sm:$0xf] }
  0x3f   : > { %v12035_v15 = vld [vmem:[#allocation2 + $0x54] sm:$0xff]   ;;  %930 = vst [vmem:[#allocation2 + $0x6c] sm:$0xf] %v929_v16  ;;  %v722_v22 = vrot.slane %v720_v14, 7  ;;  %v326_v23 = vld [vmem:[#allocation2 + $0x90] sm:$0x1]  ;;  %v708_v24 = vor.u32 %v706_v3, %v705_v17  ;;  %10046 = vmatpush3.bf16.msra.mxu0 %v11556_v54 }
  0x40   : > { %10017 = vmatprep.mubr.bf16.mxu0 %v12035_v15  ;;  %v709_v26 = vrot.slane %v705_v17, 4  ;;  %v716_v30 = vor.u32 %v714_v5, %v12039_v18  ;;  %v537_v32 = vld [vmem:[%s11854_s12 + $0x58] sm:$0xf]  ;;  %v728_v36 = vshrl.u32 %v536_v21, 16  ;;  %v731_v37 = vshll.u32 %v536_v21, 16  ;;  %10047 = vmatprep.subr.bf16.mxu0 %v11559_v1 }
  0x41   : > { %v935_v33 = vld [vmem:[#allocation2 + $0x78] sm:$0xf]  ;;  %v725_v34 = vor.u32 %v723_v20, %v722_v22  ;;  %v726_v42 = vrot.slane %v722_v22, 4  ;;  %v327_v43 = vsel %vm11861_vm3, 0, %v326_v23  ;;  %v538_v44 = vld [vmem:[%s11854_s12 + $0x5c] sm:$0xf] }
  0x42   : > { %v717_v40 = vsel %vm11886_vm7, %v709_v26, %v716_v30  ;;  %v936_v41 = vsel %vm11898_vm8, %v708_v24, %v935_v33  ;;  %v12056_v45 = vld [vmem:[#allocation2 + $0x60] sm:$0xff]   ;;  %v12058_v47 = vrot.slane %v728_v36, 7  ;;  %328 = vst [vmem:[#allocation2 + $0x90] sm:$0x1] %v327_v43  ;;  %v737_v48 = vshrl.u32 %v537_v32, 16  ;;  %v11565_v60 = vld [vmem:[%s14262_s1 + $0x38] sm:$0xff]  }
  0x43   : > { %937 = vst [vmem:[#allocation2 + $0x78] sm:$0xf] %v936_v41  ;;  %938 = vst [vmem:[#allocation2 + $0x7c] sm:$0xf] %v717_v40  ;;  %v745_v49 = vshrl.u32 %v538_v44, 16  ;;  %v740_v50 = vshll.u32 %v537_v32, 16  ;;  %10048 = vmatpush3.bf16.msra.mxu0 %v11559_v1 }
  0x44   : > { %v748_v53 = vshll.u32 %v538_v44, 16  ;;  %v329_v54 = vld [vmem:[#allocation2 + $0x9c] sm:$0x1]  ;;  %v733_v55 = vor.u32 %v731_v37, %v12058_v47  ;;  %v942_v56 = vld [vmem:[#allocation2 + $0x84] sm:$0xf]  ;;  %v739_v57 = vrot.slane %v737_v48, 7  ;;  %10049 = vmatprep.subr.bf16.mxu0 %v11562_v39 }
  0x45   : > { %v943_v62 = vsel %vm11898_vm8, %v725_v34, %v942_v56  ;;  %v12068_v63 = vrot.slane %v745_v49, 7  ;;  %v330_v1 = vsel %vm11861_vm3, 0, %v329_v54  ;;  %v539_v4 = vld [vmem:[%s11854_s12 + $0x60] sm:$0xf]  ;;  %v540_v5 = vld [vmem:[%s11854_s12 + $0x64] sm:$0xf] }
  0x46   : > { %v12064_v61 = vld [vmem:[#allocation2 + $0x6c] sm:$0xff]   ;;  %10018 = vmatmul.mubr.bf16.gmra.mrb[12].mxu0 %v12056_v45  ;;  %v734_v2 = vsel %vm11886_vm7, %v726_v42, %v733_v55  ;;  %944 = vst [vmem:[#allocation2 + $0x84] sm:$0xf] %v943_v62  ;;  %v743_v3 = vrot.slane %v739_v57, 4  ;;  %331 = vst [vmem:[#allocation2 + $0x9c] sm:$0x1] %v330_v1  ;;  %v742_v7 = vor.u32 %v740_v50, %v739_v57 }
  0x47   : > { %10021 = vmatprep.mubr.bf16.mxu0 %v12064_v61  ;;  %945 = vst [vmem:[#allocation2 + $0x88] sm:$0xf] %v734_v2  ;;  %v750_v8 = vor.u32 %v748_v53, %v12068_v63  ;;  %v754_v9 = vshrl.u32 %v539_v4, 16  ;;  %v757_v13 = vshll.u32 %v539_v4, 16  ;;  %v332_v14 = vld [vmem:[#allocation2 + $0xa8] sm:$0x1]  ;;  %10050 = vmatpush3.bf16.msra.mxu0 %v11562_v39 }
  0x48   : > { %v762_v16 = vshrl.u32 %v540_v5, 16  ;;  %v765_v17 = vshll.u32 %v540_v5, 16  ;;  %v333_v20 = vsel %vm11861_vm3, 0, %v332_v14  ;;  %v541_v21 = vld [vmem:[%s11854_s12 + $0x68] sm:$0xf]  ;;  %10051 = vmatprep.subr.bf16.mxu0 %v11565_v60  ;;  %v12085_v22 = vld [vmem:[%s14262_s1 + $0x180] sm:$0xff]  }
  0x49   : > { %v751_v24 = vsel %vm11886_vm7, %v743_v3, %v750_v8  ;;  %v756_v26 = vrot.slane %v754_v9, 7  ;;  %334 = vst [vmem:[#allocation2 + $0xa8] sm:$0x1] %v333_v20  ;;  %v949_v30 = vld [vmem:[#allocation2 + $0x90] sm:$0xf]  ;;  %v771_v34 = vshrl.u32 %v541_v21, 16 }
  0x4a   : > { %v12087_v23 = vld [vmem:[#allocation2 + $0x78] sm:$0xff]   ;;  %952 = vst [vmem:[#allocation2 + $0x94] sm:$0xf] %v751_v24  ;;  %v12091_v32 = vrot.slane %v762_v16, 7  ;;  %v542_v33 = vld [vmem:[%s11854_s12 + $0x6c] sm:$0xf]  ;;  %v950_v36 = vsel %vm11898_vm8, %v742_v7, %v949_v30 }
  0x4b   : > { %v759_v37 = vor.u32 %v757_v13, %v756_v26  ;;  %v760_v39 = vrot.slane %v756_v26, 4  ;;  %v774_v40 = vshll.u32 %v541_v21, 16  ;;  %10052 = vmatpush3.bf16.msra.mxu0 %v11565_v60  ;;  %951 = vst [vmem:[#allocation2 + $0x90] sm:$0xf] %v950_v36  ;;  %v773_v42 = vrot.slane %v771_v34, 7 }
  0x4c   : > { %v767_v41 = vor.u32 %v765_v17, %v12091_v32  ;;  %v779_v43 = vshrl.u32 %v542_v33, 16  ;;  %v335_v44 = vld [vmem:[#allocation2 + $0xb4] sm:$0x1]  ;;  %10085 = vmatprep.subr.bf16.mxu0 %v12085_v22  ;;  %v782_v49 = vshll.u32 %v542_v33, 16  ;;  %v543_v57 = vld [vmem:[%s11854_s12 + $0x70] sm:$0xf] }
  0x4d   : > { %v956_v48 = vld [vmem:[#allocation2 + $0x9c] sm:$0xf]  ;;  %v336_v50 = vsel %vm11861_vm3, 0, %v335_v44  ;;  %v776_v56 = vor.u32 %v774_v40, %v773_v42  ;;  %v777_v60 = vrot.slane %v773_v42, 4  ;;  %v544_v1 = vld [vmem:[%s11854_s12 + $0x74] sm:$0xf] }
  0x4e   : > { %10022 = vmatmul.mubr.bf16.gmra.mrb[16].mxu0 %v12087_v23  ;;  %v12101_v53 = vld [vmem:[#allocation2 + $0x84] sm:$0xff]   ;;  %v768_v54 = vsel %vm11886_vm7, %v760_v39, %v767_v41  ;;  %v957_v55 = vsel %vm11898_vm8, %v759_v37, %v956_v48  ;;  %337 = vst [vmem:[#allocation2 + $0xb4] sm:$0x1] %v336_v50  ;;  %v12108_v62 = vrot.slane %v779_v43, 7  ;;  %v788_v2 = vshrl.u32 %v543_v57, 16 }
  0x4f   : > { %958 = vst [vmem:[#allocation2 + $0x9c] sm:$0xf] %v957_v55  ;;  %959 = vst [vmem:[#allocation2 + $0xa0] sm:$0xf] %v768_v54  ;;  %v791_v3 = vshll.u32 %v543_v57, 16  ;;  %10025 = vmatprep.mubr.bf16.mxu0 %v12101_v53  ;;  %v796_v5 = vshrl.u32 %v544_v1, 16 }
  0x50   : > { %v963_v4 = vld [vmem:[#allocation2 + $0xa8] sm:$0xf]  ;;  %v799_v7 = vshll.u32 %v544_v1, 16  ;;  %v338_v8 = vld [vmem:[#allocation2 + $0xc0] sm:$0x1]  ;;  %v784_v9 = vor.u32 %v782_v49, %v12108_v62  ;;  %v790_v14 = vrot.slane %v788_v2, 7 }
  0x51   : > { %v964_v13 = vsel %vm11898_vm8, %v776_v56, %v963_v4  ;;  %v545_v16 = vld [vmem:[%s11854_s12 + $0x78] sm:$0xf]  ;;  %v12116_v17 = vrot.slane %v796_v5, 7  ;;  %v339_v20 = vsel %vm11861_vm3, 0, %v338_v8  ;;  %v546_v21 = vld [vmem:[%s11854_s12 + $0x7c] sm:$0xf] }
  0x52   : > { %965 = vst [vmem:[#allocation2 + $0xa8] sm:$0xf] %v964_v13  ;;  %v805_v24 = vshrl.u32 %v545_v16, 16  ;;  %v808_v26 = vshll.u32 %v545_v16, 16  ;;  %v12121_v30 = vld [vmem:[#allocation2 + $0x90] sm:$0xff]   ;;  %v785_v33 = vsel %vm11886_vm7, %v777_v60, %v784_v9  ;;  %v793_v34 = vor.u32 %v791_v3, %v790_v14  ;;  %v11568_v16 = vld [vmem:[%s14262_s1 + $0x188] sm:$0xff]  }
  0x53   : > { %v794_v36 = vrot.slane %v790_v14, 4  ;;  %340 = vst [vmem:[#allocation2 + $0xc0] sm:$0x1] %v339_v20  ;;  %v813_v37 = vshrl.u32 %v546_v21, 16  ;;  %966 = vst [vmem:[#allocation2 + $0xac] sm:$0xf] %v785_v33  ;;  %v801_v39 = vor.u32 %v799_v7, %v12116_v17 }
  0x54   : > { %v807_v40 = vrot.slane %v805_v24, 7  ;;  %v816_v41 = vshll.u32 %v546_v21, 16  ;;  %v290_v56 = vld [vmem:[#allocation2] sm:$0x1]  ;;  %v341_v8 = vld [vmem:[#allocation2 + $0xcc] sm:$0x1] }
  0x55   : > { %v970_v42 = vld [vmem:[#allocation2 + $0xb4] sm:$0xf]  ;;  %v12126_v43 = vrot.slane %v813_v37, 7  ;;  %v802_v48 = vsel %vm11886_vm7, %v794_v36, %v801_v39  ;;  %v291_v57 = vsel %vm11861_vm3, 0, %v290_v56  ;;  %v342_v9 = vsel %vm11861_vm3, 0, %v341_v8 }
  0x56   : > { %10026 = vmatmul.mubr.bf16.gmra.mrb[20].mxu0 %v12121_v30  ;;  %v12129_v44 = vld [vmem:[#allocation2 + $0x9c] sm:$0xff]   ;;  %v971_v49 = vsel %vm11898_vm8, %v793_v34, %v970_v42  ;;  %v811_v50 = vrot.slane %v807_v40, 4  ;;  %973 = vst [vmem:[#allocation2 + $0xb8] sm:$0xf] %v802_v48  ;;  %v810_v54 = vor.u32 %v808_v26, %v807_v40  ;;  %292 = vst [vmem:[#allocation2] sm:$0x1] %v291_v57 }
  0x57   : > { %972 = vst [vmem:[#allocation2 + $0xb4] sm:$0xf] %v971_v49  ;;  %v818_v55 = vor.u32 %v816_v41, %v12126_v43  ;;  %10029 = vmatprep.mubr.bf16.mxu0 %v12129_v44  ;;  %343 = vst [vmem:[#allocation2 + $0xcc] sm:$0x1] %v342_v9  ;;  %v346_v13 = vld [vmem:[#allocation2 + $0x8] sm:$0x1] }
  0x58   : > { %v347_v14 = vsel %vm11873_vm5, 0, %v346_v13  ;;  %v352_v20 = vld [vmem:[#allocation2 + $0x20] sm:$0x1]  ;;  %v11569_v21 = vld [vmem:[%s14262_s1 + $0x190] sm:$0xff]   ;;  %v355_v26 = vld [vmem:[#allocation2 + $0x2c] sm:$0x1] }
  0x59   : > { %v819_v60 = vsel %vm11886_vm7, %v811_v50, %v818_v55  ;;  %348 = vst [vmem:[#allocation2 + $0x8] sm:$0x1] %v347_v14  ;;  %v353_v24 = vsel %vm11873_vm5, 0, %v352_v20  ;;  %v358_v33 = vld [vmem:[#allocation2 + $0x38] sm:$0x1]  ;;  %v11571_v34 = vld [vmem:[%s14262_s1 + $0x1a0] sm:$0xff]  }
  0x5a   : > { %v977_v1 = vld [vmem:[#allocation2 + $0xc0] sm:$0xf]  ;;  %980 = vst [vmem:[#allocation2 + $0xc4] sm:$0xf] %v819_v60  ;;  %v12141_v2 = vld [vmem:[#allocation2 + $0xa8] sm:$0xff]   ;;  %v359_v37 = vsel %vm11873_vm5, 0, %v358_v33 }
  0x5b   : > { %v978_v3 = vsel %vm11898_vm8, %v810_v54, %v977_v1  ;;  %354 = vst [vmem:[#allocation2 + $0x20] sm:$0x1] %v353_v24  ;;  %v599_v39 = vrot.slane %v11921_v0, 4  ;;  %360 = vst [vmem:[#allocation2 + $0x38] sm:$0x1] %v359_v37  ;;  %v633_v42 = vrot.slane %v11940_v28, 4 }
  0x5c   : > { %979 = vst [vmem:[#allocation2 + $0xc0] sm:$0xf] %v978_v3  ;;  %v11572_v0 = vld [vmem:[%s14262_s1 + $0x1a8] sm:$0xff]   ;;  %v1838_v48 = vld [vmem:[#allocation2 + $0x4] sm:$0xf]  ;;  %v650_v50 = vrot.slane %v11961_v52, 4 }
  0x5d   : > { %v11566_v5 = vld [vmem:[#allocation2] sm:$0xff]   ;;  %v667_v54 = vrot.slane %v11985_v10, 4  ;;  %v701_v56 = vrot.slane %v12013_v51, 4  ;;  %v1840_v57 = vld [vmem:[#allocation2 + $0xc] sm:$0xf]  ;;  %v718_v1 = vrot.slane %v12039_v18, 4 }
  0x5e   : > { %10030 = vmatmul.mubr.bf16.gmra.mrb[24].mxu0 %v12141_v2  ;;  %v12146_v4 = vld [vmem:[#allocation2 + $0xb4] sm:$0xff]   ;;  %v1837_v40 = vld [vmem:[#allocation2] sm:$0xf]  ;;  %v364_v60 = vld [vmem:[#allocation2 + $0x50] sm:$0x1]  ;;  %v735_v8 = vrot.slane %v12058_v47, 4 }
  0x5f   : > { %10033 = vmatprep.mubr.bf16.mxu0 %v12146_v4  ;;  %v1895_v28 = vshrl.u32 %v1837_v40, 16  ;;  %v1898_v3 = vshll.u32 %v1837_v40, 16  ;;  %v752_v9 = vrot.slane %v12068_v63, 4  ;;  %v1908_v13 = vshrl.u32 %v1838_v48, 16  ;;  %v1841_v20 = vld [vmem:[#allocation2 + $0x10] sm:$0xf] }
  0x60   : > { %v1922_v33 = vshll.u32 %v1840_v57, 16  ;;  %v1932_v40 = vshrl.u32 %v1841_v20, 16  ;;  %v11738_v63 = vld [vmem:[#allocation2 + $0x18] sm:$0xff]   ;;  %vm1891_vm9 = vsmask.f32 3328  ;;  %vm3239_vm13 = vcmask 1046532  }
  0x61   : > { %vm1892_vm10 = vsmask.f32 7440  ;;  %vm12808_vm14 = vmor %vm3238_vm12, %vm3239_vm13 }
  0x62   : > { %v883_v36 = vld [vmem:[#allocation2 + $0x20] sm:$0x1]  ;;  %v897_v14 = vld [vmem:[#allocation2 + $0x38] sm:$0x1]  ;;  %vm12461_vm11 = vmor %vm1891_vm9, %vm1892_vm10 }
  0x63   : > { %v11564_v7 = vld [vmem:[#allocation2 + $0xc0] sm:$0xff]  }
  0x66   : > { %10034 = vmatmul.mubr.bf16.gmra.mrb[28].mxu0 %v11564_v7  ;;  %v365_v7 = vsel %vm11873_vm5, 0, %v364_v60  ;;  %v12233_v60 = vld [vmem:[#allocation2 + $0x8] sm:$0x1] }
  0x67   : > { %10053 = vmatprep.mubr.bf16.mxu0 %v11566_v5  ;;  %v1904_v5 = vshll.u32 %v1838_v48, 16  ;;  %366 = vst [vmem:[#allocation2 + $0x50] sm:$0x1] %v365_v7  ;;  %v1914_v52 = vshll.u32 %v12233_v60, 16 }
  0x6e   : > { %10054 = vmatmul.mubr.bf16.vlgmr.msra.gmra.mrb[0].mxu0 %v11945_v31  ;;  %v11570_v31 = vld [vmem:[%s14262_s1 + $0x198] sm:$0xff]  }
  0x6f   : > { %10086 = vmatpush3.bf16.msra.mxu0 %v12085_v22  ;;  %10057 = vmatprep.mubr.bf16.mxu0 %v11957_v46  ;;  %v356_v22 = vsel %vm11873_vm5, 0, %v355_v26  ;;  %v582_v46 = vrot.slane %v11893_v35, 4  ;;  %v373_v26 = vld [vmem:[#allocation2 + $0x74] sm:$0x1] }
  0x70   : > { %10087 = vmatprep.subr.bf16.mxu0 %v11568_v16  ;;  %357 = vst [vmem:[#allocation2 + $0x2c] sm:$0x1] %v356_v22  ;;  %v12209_v22 = vrot.slane %v1895_v28, 4  ;;  %v1846_v28 = vld [vmem:[#allocation2 + $0x24] sm:$0xf] }
  0x71   : > { %v884_v35 = vsel %vm11861_vm3, %v582_v46, %v883_v36  ;;  %v12211_v46 = vld [vmem:[#allocation2 + $0x14] sm:$0x1]  ;;  %v12215_v36 = vrot.slane %v1904_v5, 5 }
  0x72   : > { %885 = vst [vmem:[#allocation2 + $0x20] sm:$0x1] %v884_v35  ;;  %v11574_v35 = vld [vmem:[%s14262_s1 + $0x1b8] sm:$0xff]  }
  0x73   : > { %10088 = vmatpush3.bf16.msra.mxu0 %v11568_v16 }
  0x74   : > { %10089 = vmatprep.subr.bf16.mxu0 %v11569_v21 }
  0x76   : > { %10058 = vmatmul.mubr.bf16.gmra.mrb[4].mxu0 %v11971_v58  ;;  %v361_v58 = vld [vmem:[#allocation2 + $0x44] sm:$0x1] }
  0x77   : > { %10061 = vmatprep.mubr.bf16.mxu0 %v11990_v19  ;;  %10090 = vmatpush3.bf16.msra.mxu0 %v11569_v21  ;;  %v616_v19 = vrot.slane %v11927_v12, 4  ;;  %v362_v41 = vsel %vm11873_vm5, 0, %v361_v58  ;;  %v890_v49 = vld [vmem:[#allocation2 + $0x2c] sm:$0x1]  ;;  %v684_v12 = vrot.slane %v11996_v25, 4  ;;  %v1919_v21 = vshrl.u32 %v1840_v57, 16 }
  0x78   : > { %10091 = vmatprep.subr.bf16.mxu0 %v11570_v31  ;;  %363 = vst [vmem:[#allocation2 + $0x44] sm:$0x1] %v362_v41  ;;  %v891_v55 = vsel %vm11861_vm3, %v599_v39, %v890_v49  ;;  %v367_v39 = vld [vmem:[#allocation2 + $0x5c] sm:$0x1]  ;;  %v12220_v58 = vrot.slane %v1908_v13, 4  ;;  %v1938_v49 = vshll.u32 %v12211_v46, 16 }
  0x79   : > { %892 = vst [vmem:[#allocation2 + $0x2c] sm:$0x1] %v891_v55  ;;  %v898_v24 = vsel %vm11861_vm3, %v616_v19, %v897_v14  ;;  %v1928_v19 = vshll.u32 %v1841_v20, 16  ;;  %v1843_v41 = vld [vmem:[#allocation2 + $0x18] sm:$0xf]  ;;  %v12231_v57 = vld [vmem:[%s14262_s1 + $0x40] sm:$0xff]  }
  0x7a   : > { %899 = vst [vmem:[#allocation2 + $0x38] sm:$0x1] %v898_v24  ;;  %v1844_v55 = vld [vmem:[#allocation2 + $0x1c] sm:$0xf]  ;;  %v1943_v5 = vshrl.u32 %v1843_v41, 16  ;;  %v1946_v7 = vshll.u32 %v1843_v41, 16 }
  0x7b   : > { %10092 = vmatpush3.bf16.msra.mxu0 %v11570_v31  ;;  %v1847_v13 = vld [vmem:[#allocation2 + $0x28] sm:$0xf]  ;;  %v911_v14 = vld [vmem:[#allocation2 + $0x50] sm:$0x1]  ;;  %v1956_v20 = vshrl.u32 %v1844_v55, 16 }
  0x7c   : > { %10093 = vmatprep.subr.bf16.mxu0 %v11571_v34  ;;  %v912_v24 = vsel %vm11861_vm3, %v650_v50, %v911_v14  ;;  %v1850_v31 = vld [vmem:[#allocation2 + $0x34] sm:$0xf]  ;;  %v1853_v46 = vld [vmem:[#allocation2 + $0x40] sm:$0xf] }
  0x7d   : > { %913 = vst [vmem:[#allocation2 + $0x50] sm:$0x1] %v912_v24  ;;  %v2000_v16 = vshll.u32 %v1850_v31, 16 }
  0x7e   : > { %10062 = vmatmul.mubr.bf16.gmra.mrb[8].mxu0 %v11998_v29  ;;  %v11573_v29 = vld [vmem:[%s14262_s1 + $0x1b0] sm:$0xff]  }
  0x7f   : > { %10065 = vmatprep.mubr.bf16.mxu0 %v12024_v59  ;;  %10094 = vmatpush3.bf16.msra.mxu0 %v11571_v34  ;;  %v769_v59 = vrot.slane %v12091_v32, 4  ;;  %v12213_v34 = vrot.slane %v1898_v3, 5  ;;  %v904_v37 = vld [vmem:[#allocation2 + $0x44] sm:$0x1]  ;;  %v1924_v3 = vrot.slane %v1922_v33, 5  ;;  %v11740_v32 = vld [vmem:[#allocation2 + $0x30] sm:$0xff]  }
  0x80   : > { %10095 = vmatprep.subr.bf16.mxu0 %v11572_v0  ;;  %v905_v48 = vsel %vm11861_vm3, %v633_v42, %v904_v37  ;;  %v368_v42 = vsel %vm11873_vm5, 0, %v367_v39  ;;  %v370_v33 = vld [vmem:[#allocation2 + $0x68] sm:$0x1]  ;;  %v12242_v37 = vrot.slane %v1928_v19, 5  ;;  %v1934_v39 = vrot.slane %v1932_v40, 4 }
  0x81   : > { %906 = vst [vmem:[#allocation2 + $0x44] sm:$0x1] %v905_v48  ;;  %369 = vst [vmem:[#allocation2 + $0x5c] sm:$0x1] %v368_v42  ;;  %v1901_v41 = vor.u32 %v12213_v34, %v12209_v22  ;;  %v1911_v48 = vor.u32 %v12220_v58, %v12215_v36  ;;  %v1980_v42 = vshrl.u32 %v1847_v13, 16  ;;  %v371_v19 = vsel %vm11873_vm5, 0, %v370_v33 }
  0x82   : > { %v1945_v40 = vrot.slane %v1943_v5, 4  ;;  %v1958_v22 = vrot.slane %v1956_v20, 4  ;;  %372 = vst [vmem:[#allocation2 + $0x68] sm:$0x1] %v371_v19  ;;  %v2004_v5 = vshrl.u32 %v1850_v31, 16 }
  0x83   : > { %10096 = vmatpush3.bf16.msra.mxu0 %v11572_v0  ;;  %v12224_v0 = vrot.slane %v1919_v21, 4  ;;  %v1849_v21 = vld [vmem:[#allocation2 + $0x30] sm:$0xf]  ;;  %v1982_v33 = vrot.slane %v1980_v42, 4  ;;  %v12268_v31 = vrot.slane %v1911_v48, 4  ;;  %v12279_v42 = vrot.slane %v2000_v16, 5 }
  0x84   : > { %10097 = vmatprep.subr.bf16.mxu0 %v11573_v29  ;;  %v1991_v50 = vshrl.u32 %v1849_v21, 16  ;;  %v1994_v14 = vshll.u32 %v1849_v21, 16 }
  0x85   : > { %v1925_v34 = vor.u32 %v1924_v3, %v12224_v0 }
  0x86   : > { %10066 = vmatmul.mubr.bf16.gmra.mrb[12].mxu0 %v12035_v15  ;;  %v1952_v15 = vshll.u32 %v1844_v55, 16  ;;  %v1976_v55 = vshll.u32 %v1847_v13, 16  ;;  %v1852_v13 = vld [vmem:[#allocation2 + $0x3c] sm:$0xf]  ;;  %v1996_v20 = vrot.slane %v1994_v14, 5 }
  0x87   : > { %10069 = vmatprep.mubr.bf16.mxu0 %v12056_v45  ;;  %10098 = vmatpush3.bf16.msra.mxu0 %v11573_v29  ;;  %v1967_v45 = vshrl.u32 %v1846_v28, 16  ;;  %v1970_v29 = vshll.u32 %v1846_v28, 16  ;;  %v1948_v28 = vrot.slane %v1946_v7, 5  ;;  %v376_v14 = vld [vmem:[#allocation2 + $0x80] sm:$0x1] }
  0x88   : > { %10099 = vmatprep.subr.bf16.mxu0 %v11574_v35  ;;  %v12252_v24 = vrot.slane %v1952_v15, 5  ;;  %v12257_v21 = vrot.slane %v1976_v55, 5  ;;  %v918_v7 = vld [vmem:[#allocation2 + $0x5c] sm:$0x1]  ;;  %v1993_v15 = vrot.slane %v1991_v50, 4  ;;  %v12275_v55 = vrot.slane %v1925_v34, 4 }
  0x89   : > { %v1969_v58 = vrot.slane %v1967_v45, 4  ;;  %v1972_v60 = vrot.slane %v1970_v29, 5  ;;  %v919_v0 = vsel %vm11861_vm3, %v667_v54, %v918_v7  ;;  %v1949_v3 = vor.u32 %v1948_v28, %v1945_v40  ;;  %v379_v34 = vld [vmem:[#allocation2 + $0x8c] sm:$0x1] }
  0x8a   : > { %v2018_v45 = vshll.u32 %v1852_v13, 16  ;;  %920 = vst [vmem:[#allocation2 + $0x5c] sm:$0x1] %v919_v0  ;;  %v12266_v29 = vrot.slane %v1901_v41, 4  ;;  %v1959_v10 = vor.u32 %v1958_v22, %v12252_v24  ;;  %v2006_v50 = vrot.slane %v2004_v5, 4 }
  0x8b   : > { %10100 = vmatpush3.bf16.msra.mxu0 %v11574_v35  ;;  %v1935_v35 = vor.u32 %v1934_v39, %v12242_v37  ;;  %v2015_v39 = vshrl.u32 %v1852_v13, 16  ;;  %v1973_v41 = vor.u32 %v1972_v60, %v1969_v58  ;;  %v1983_v48 = vor.u32 %v1982_v33, %v12257_v21  ;;  %v1856_v5 = vld [vmem:[#allocation2 + $0x4c] sm:$0xf] }
  0x8c   : > { %10133 = vmatprep.subr.bf16.mxu0 %v12231_v57  ;;  %v1997_v19 = vor.u32 %v1996_v20, %v1993_v15  ;;  %v12284_v40 = vrot.slane %v1949_v3, 4  ;;  %v2020_v22 = vrot.slane %v2018_v45, 5  ;;  %v377_v58 = vsel %vm11873_vm5, 0, %v376_v14  ;;  %v1858_v15 = vld [vmem:[#allocation2 + $0x54] sm:$0xf] }
  0x8d   : > { %v12277_v54 = vrot.slane %v1935_v35, 4  ;;  %v2017_v28 = vrot.slane %v2015_v39, 4  ;;  %v12290_v35 = vrot.slane %v1959_v10, 4  ;;  %v2007_v60 = vor.u32 %v2006_v50, %v12279_v42  ;;  %378 = vst [vmem:[#allocation2 + $0x80] sm:$0x1] %v377_v58 }
  0x8e   : > { %10070 = vmatmul.mubr.bf16.gmra.mrb[16].mxu0 %v12064_v61  ;;  %v374_v61 = vsel %vm11873_vm5, 0, %v373_v26  ;;  %v12281_v26 = vrot.slane %v1914_v52, 5  ;;  %v1855_v52 = vld [vmem:[#allocation2 + $0x48] sm:$0xf]  ;;  %v2024_v13 = vshll.u32 %v1853_v46, 16  ;;  %v2028_v33 = vshrl.u32 %v1853_v46, 16 }
  0x8f   : > { %10073 = vmatprep.mubr.bf16.mxu0 %v12087_v23  ;;  %v12272_v23 = vrot.slane %v1938_v49, 5  ;;  %375 = vst [vmem:[#allocation2 + $0x74] sm:$0x1] %v374_v61  ;;  %v925_v49 = vld [vmem:[#allocation2 + $0x68] sm:$0x1]  ;;  %v12297_v25 = vrot.slane %v1973_v41, 4  ;;  %v2021_v0 = vor.u32 %v2020_v22, %v2017_v28 }
  0x90   : > { %v926_v16 = vsel %vm11861_vm3, %v684_v12, %v925_v49  ;;  %v12299_v12 = vrot.slane %v1983_v48, 4  ;;  %v12301_v7 = vrot.slane %v1997_v19, 4  ;;  %v380_v20 = vsel %vm11873_vm5, 0, %v379_v34  ;;  %v1859_v39 = vld [vmem:[#allocation2 + $0x58] sm:$0xf] }
  0x91   : > { %927 = vst [vmem:[#allocation2 + $0x68] sm:$0x1] %v926_v16  ;;  %v2042_v3 = vshll.u32 %v1855_v52, 16  ;;  %381 = vst [vmem:[#allocation2 + $0x8c] sm:$0x1] %v380_v20  ;;  %v2048_v10 = vshll.u32 %v1856_v5, 16 }
  0x92   : > { %v1845_v61 = vld [vmem:[#allocation2 + $0x20] sm:$0x1]  ;;  %v2052_v50 = vshrl.u32 %v1856_v5, 16  ;;  %v382_v14 = vld [vmem:[#allocation2 + $0x98] sm:$0x1]  ;;  %v12309_v41 = vrot.slane %v2007_v60, 4 }
  0x93   : > { %v12311_v48 = vrot.slane %v2024_v13, 5  ;;  %v12313_v19 = vrot.slane %v2028_v33, 4  ;;  %v2063_v46 = vshrl.u32 %v1858_v15, 16  ;;  %v2066_v49 = vshll.u32 %v1858_v15, 16  ;;  %v1848_v58 = vld [vmem:[#allocation2 + $0x2c] sm:$0x1] }
  0x94   : > { %v2072_v28 = vshll.u32 %v1859_v39, 16  ;;  %v2076_v22 = vshrl.u32 %v1859_v39, 16  ;;  %v383_v16 = vsel %vm11873_vm5, 0, %v382_v14  ;;  %v1962_v34 = vshll.u32 %v1845_v61, 16  ;;  %v939_v33 = vld [vmem:[#allocation2 + $0x80] sm:$0x1] }
  0x95   : > { %v12317_v51 = vrot.slane %v2021_v0, 4  ;;  %384 = vst [vmem:[#allocation2 + $0x98] sm:$0x1] %v383_v16  ;;  %v12319_v60 = vrot.slane %v2048_v10, 5  ;;  %v2054_v13 = vrot.slane %v2052_v50, 4  ;;  %v940_v39 = vsel %vm11861_vm3, %v718_v1, %v939_v33 }
  0x96   : > { %10074 = vmatmul.mubr.bf16.gmra.mrb[20].mxu0 %v12101_v53  ;;  %v2039_v53 = vshrl.u32 %v1855_v52, 16  ;;  %v932_v45 = vld [vmem:[#allocation2 + $0x74] sm:$0x1]  ;;  %v1851_v5 = vld [vmem:[#allocation2 + $0x38] sm:$0x1]  ;;  %v2065_v0 = vrot.slane %v2063_v46, 4 }
  0x97   : > { %10077 = vmatprep.mubr.bf16.mxu0 %v12121_v30  ;;  %v933_v30 = vsel %vm11861_vm3, %v701_v56, %v932_v45  ;;  %v2044_v56 = vrot.slane %v2042_v3, 5  ;;  %v1861_v15 = vld [vmem:[#allocation2 + $0x60] sm:$0xf]  ;;  %v1862_v20 = vld [vmem:[#allocation2 + $0x64] sm:$0xf]  ;;  %v12327_v3 = vrot.slane %v2072_v28, 5  ;;  %v2055_v33 = vor.u32 %v2054_v13, %v12319_v60 }
  0x98   : > { %934 = vst [vmem:[#allocation2 + $0x74] sm:$0x1] %v933_v30  ;;  %v2041_v52 = vrot.slane %v2039_v53, 4  ;;  %v2068_v53 = vrot.slane %v2066_v49, 5  ;;  %v2078_v45 = vrot.slane %v2076_v22, 4  ;;  %v2087_v18 = vshrl.u32 %v1861_v15, 16 }
  0x99   : > { %941 = vst [vmem:[#allocation2 + $0x80] sm:$0x1] %v940_v39  ;;  %v946_v61 = vld [vmem:[#allocation2 + $0x8c] sm:$0x1]  ;;  %v385_v10 = vld [vmem:[#allocation2 + $0xa4] sm:$0x1]  ;;  %v2031_v49 = vor.u32 %v12313_v19, %v12311_v48 }
  0x9a   : > { %v1854_v50 = vld [vmem:[#allocation2 + $0x44] sm:$0x1]  ;;  %v2090_v30 = vshll.u32 %v1861_v15, 16  ;;  %v2096_v14 = vshll.u32 %v1862_v20, 16  ;;  %v2100_v1 = vshrl.u32 %v1862_v20, 16  ;;  %v1986_v46 = vshll.u32 %v1848_v58, 16 }
  0x9b   : > { %v1864_v28 = vld [vmem:[#allocation2 + $0x6c] sm:$0xf]  ;;  %v1865_v22 = vld [vmem:[#allocation2 + $0x70] sm:$0xf]  ;;  %v2010_v16 = vshll.u32 %v1851_v5, 16  ;;  %v2045_v47 = vor.u32 %v2044_v56, %v2041_v52  ;;  %v386_v39 = vsel %vm11873_vm5, 0, %v385_v10  ;;  %v2069_v20 = vor.u32 %v2068_v53, %v2065_v0 }
  0x9c   : > { %v388_v15 = vld [vmem:[#allocation2 + $0xb0] sm:$0x1]  ;;  %387 = vst [vmem:[#allocation2 + $0xa4] sm:$0x1] %v386_v39  ;;  %v2089_v58 = vrot.slane %v2087_v18, 4  ;;  %v2092_v5 = vrot.slane %v2090_v30, 5 }
  0x9d   : > { %v12345_v52 = vrot.slane %v2096_v14, 5  ;;  %v2102_v56 = vrot.slane %v2100_v1, 4  ;;  %v1857_v13 = vld [vmem:[#allocation2 + $0x50] sm:$0x1]  ;;  %v2114_v10 = vshll.u32 %v1864_v28, 16  ;;  %v2120_v0 = vshll.u32 %v1865_v22, 16 }
  0x9e   : > { %10078 = vmatmul.mubr.bf16.gmra.mrb[24].mxu0 %v12129_v44  ;;  %v947_v44 = vsel %vm11861_vm3, %v735_v8, %v946_v61  ;;  %v953_v8 = vld [vmem:[#allocation2 + $0x98] sm:$0x1]  ;;  %v2034_v61 = vshll.u32 %v1854_v50, 16  ;;  %v389_v53 = vsel %vm11873_vm5, 0, %v388_v15  ;;  %v12354_v50 = vrot.slane %v2045_v47, 4 }
  0x9f   : > { %10081 = vmatprep.mubr.bf16.mxu0 %v12141_v2  ;;  %948 = vst [vmem:[#allocation2 + $0x8c] sm:$0x1] %v947_v44  ;;  %v12333_v2 = vrot.slane %v1962_v34, 5  ;;  %v2079_v34 = vor.u32 %v2078_v45, %v12327_v3  ;;  %v954_v19 = vsel %vm11861_vm3, %v752_v9, %v953_v8  ;;  %v2111_v44 = vshrl.u32 %v1864_v28, 16  ;;  %390 = vst [vmem:[#allocation2 + $0xb0] sm:$0x1] %v389_v53 }
  0xa0   : > { %955 = vst [vmem:[#allocation2 + $0x98] sm:$0x1] %v954_v19  ;;  %v12350_v45 = vrot.slane %v1986_v46, 5  ;;  %v12352_v9 = vrot.slane %v2031_v49, 4  ;;  %v12356_v18 = vrot.slane %v2055_v33, 4  ;;  %v12358_v30 = vrot.slane %v2010_v16, 5 }
  0xa1   : > { %v12362_v14 = vrot.slane %v2069_v20, 4  ;;  %v2124_v1 = vshrl.u32 %v1865_v22, 16  ;;  %v1867_v28 = vld [vmem:[#allocation2 + $0x78] sm:$0xf]  ;;  %v2058_v8 = vshll.u32 %v1857_v13, 16  ;;  %v12364_v39 = vrot.slane %v2079_v34, 4 }
  0xa2   : > { %v2093_v46 = vor.u32 %v2092_v5, %v2089_v58  ;;  %v1868_v15 = vld [vmem:[#allocation2 + $0x7c] sm:$0xf]  ;;  %v2103_v49 = vor.u32 %v2102_v56, %v12345_v52  ;;  %v2113_v47 = vrot.slane %v2111_v44, 4  ;;  %v2116_v19 = vrot.slane %v2114_v10, 5  ;;  %v11576_v22 = vld [vmem:[%s14262_s1 + $0x48] sm:$0xff]  }
  0xa3   : > { %v12367_v33 = vrot.slane %v2120_v0, 5  ;;  %v2135_v53 = vshrl.u32 %v1867_v28, 16  ;;  %v2138_v16 = vshll.u32 %v1867_v28, 16  ;;  %v2126_v20 = vrot.slane %v2124_v1, 4  ;;  %v1860_v5 = vld [vmem:[#allocation2 + $0x5c] sm:$0x1] }
  0xa4   : > { %v2144_v13 = vshll.u32 %v1868_v15, 16  ;;  %v2148_v34 = vshrl.u32 %v1868_v15, 16  ;;  %v11739_v56 = vld [vmem:[#allocation2 + $0x24] sm:$0xff]   ;;  %v12376_v44 = vrot.slane %v2058_v8, 5  ;;  %v12378_v10 = vrot.slane %v2093_v46, 4  ;;  %v11577_v46 = vld [vmem:[%s14262_s1 + $0x50] sm:$0xff]  }
  0xa5   : > { %14309 = vst [vmem:[#allocation7_spill] sm:$0xff] %v12367_v33  ;;  %v12380_v0 = vrot.slane %v2103_v49, 4  ;;  %v2117_v15 = vor.u32 %v2116_v19, %v2113_v47  ;;  %v2082_v49 = vshll.u32 %v1860_v5, 16  ;;  %v1871_v19 = vld [vmem:[#allocation2 + $0x88] sm:$0xf] }
  0xa6   : > { %10082 = vmatmul.mubr.bf16.gmra.mrb[28].mxu0 %v12146_v4  ;;  %v12360_v4 = vrot.slane %v2034_v61, 5  ;;  %v391_v61 = vld [vmem:[#allocation2 + $0xbc] sm:$0x1]  ;;  %v967_v28 = vld [vmem:[#allocation2 + $0xb0] sm:$0x1]  ;;  %v2150_v47 = vrot.slane %v2148_v34, 4 }
  0xa7   : > { %10101 = vmatprep.mubr.bf16.mxu0 %v11738_v63  ;;  %v960_v63 = vld [vmem:[#allocation2 + $0xa4] sm:$0x1]  ;;  %14310 = vst [vmem:[#allocation8_spill] sm:$0xff] %v12380_v0  ;;  %v392_v1 = vsel %vm11873_vm5, 0, %v391_v61  ;;  %v12393_v61 = vrot.slane %v2144_v13, 5 }
  0xa8   : > { %v961_v58 = vsel %vm11861_vm3, %v769_v59, %v960_v63  ;;  %v2137_v59 = vrot.slane %v2135_v53, 4  ;;  %v2140_v63 = vrot.slane %v2138_v16, 5  ;;  %393 = vst [vmem:[#allocation2 + $0xbc] sm:$0x1] %v392_v1  ;;  %v12398_v1 = vrot.slane %v2082_v49, 5 }
  0xa9   : > { %962 = vst [vmem:[#allocation2 + $0xa4] sm:$0x1] %v961_v58  ;;  %v1870_v58 = vld [vmem:[#allocation2 + $0x84] sm:$0xf]  ;;  %14312 = vst [vmem:[#allocation9_spill] sm:$0xff] %v12393_v61 }
  0xaa   : > { %v2159_v53 = vshrl.u32 %v1870_v58, 16  ;;  %v2162_v16 = vshll.u32 %v1870_v58, 16  ;;  %v1863_v13 = vld [vmem:[#allocation2 + $0x68] sm:$0x1]  ;;  %v1873_v34 = vld [vmem:[#allocation2 + $0x90] sm:$0xf] }
  0xab   : > { %v2168_v58 = vshll.u32 %v1871_v19, 16 }
  0xac   : > { %v12410_v49 = vrot.slane %v2159_v53, 4  ;;  %v2183_v53 = vshrl.u32 %v1873_v34, 16 }
  0xae   : > { %10102 = vmatmul.mubr.bf16.vlgmr.msra.gmra.mrb[0].mxu0 %v11739_v56  ;;  %v14311_v56 = vrot.slane %v12108_v62, 4  ;;  %v2141_v62 = vor.u32 %v2140_v63, %v2137_v59  ;;  %v11742_v63 = vld [vmem:[#allocation2 + $0x48] sm:$0xff]  }
  0xaf   : > { %10134 = vmatpush3.bf16.msra.mxu0 %v12231_v57  ;;  %10105 = vmatprep.mubr.bf16.mxu0 %v11740_v32  ;;  %v2127_v57 = vor.u32 %v2126_v20, %v12367_v33  ;;  %v12400_v32 = vrot.slane %v2117_v15, 4  ;;  %v2151_v20 = vor.u32 %v2150_v47, %v12393_v61  ;;  %v974_v59 = vld [vmem:[#allocation2 + $0xbc] sm:$0x1]  ;;  %v14316_v47 = vrot.slane %v12116_v17, 4  ;;  %v11581_v17 = vld [vmem:[%s14262_s1 + $0x70] sm:$0xff]  }
  0xb0   : > { %v968_v8 = vsel %vm11861_vm3, %v14311_v56, %v967_v28  ;;  %10135 = vmatprep.subr.bf16.mxu0 %v11576_v22  ;;  %v11578_v28 = vld [vmem:[%s14262_s1 + $0x58] sm:$0xff]   ;;  %v12408_v15 = vrot.slane %v2141_v62, 4  ;;  %v11580_v62 = vld [vmem:[%s14262_s1 + $0x68] sm:$0xff]  }
  0xb1   : > { %969 = vst [vmem:[#allocation2 + $0xb0] sm:$0x1] %v968_v8  ;;  %14313 = vst [vmem:[#allocation10_spill] sm:$0xff] %v12400_v32  ;;  %v12402_v5 = vrot.slane %v2127_v57, 4  ;;  %v11741_v56 = vld [vmem:[#allocation2 + $0x3c] sm:$0xff]   ;;  %v12412_v57 = vrot.slane %v2162_v16, 5 }
  0xb2   : > { %v11579_v8 = vld [vmem:[%s14262_s1 + $0x60] sm:$0xff]   ;;  %14315 = vst [vmem:[#allocation12_spill] sm:$0xff] %v12408_v15  ;;  %v12418_v27 = vrot.slane %v2151_v20, 4  ;;  %v11743_v16 = vld [vmem:[#allocation2 + $0x54] sm:$0xff]   ;;  %v14318_v32 = vrot.slane %v12126_v43, 4 }
  0xb3   : > { %10136 = vmatpush3.bf16.msra.mxu0 %v11576_v22  ;;  %14314 = vst [vmem:[#allocation11_spill] sm:$0xff] %v12402_v5  ;;  %v2172_v22 = vshrl.u32 %v1871_v19, 16  ;;  %v2106_v19 = vshll.u32 %v1863_v13, 16  ;;  %v2186_v13 = vshll.u32 %v1873_v34, 16  ;;  %v11745_v34 = vld [vmem:[#allocation2 + $0x6c] sm:$0xff]  }
  0xb4   : > { %10137 = vmatprep.subr.bf16.mxu0 %v11577_v46  ;;  %14317 = vst [vmem:[#allocation13_spill] sm:$0xff] %v12418_v27  ;;  %v1866_v27 = vld [vmem:[#allocation2 + $0x74] sm:$0x1]  ;;  %v1879_v33 = vld [vmem:[#allocation2 + $0xa8] sm:$0xf] }
  0xb6   : > { %10106 = vmatmul.mubr.bf16.gmra.mrb[4].mxu0 %v11741_v56  ;;  %v975_v56 = vsel %vm11861_vm3, %v14316_v47, %v974_v59  ;;  %v11744_v59 = vld [vmem:[#allocation2 + $0x60] sm:$0xff]   ;;  %v12428_v47 = vrot.slane %v2106_v19, 5 }
  0xb7   : > { %10109 = vmatprep.mubr.bf16.mxu0 %v11742_v63  ;;  %10138 = vmatpush3.bf16.msra.mxu0 %v11577_v46  ;;  %976 = vst [vmem:[#allocation2 + $0xbc] sm:$0x1] %v975_v56  ;;  %v1874_v46 = vld [vmem:[#allocation2 + $0x94] sm:$0xf]  ;;  %v12423_v63 = vrot.slane %v2168_v58, 5  ;;  %v2174_v56 = vrot.slane %v2172_v22, 4 }
  0xb8   : > { %10139 = vmatprep.subr.bf16.mxu0 %v11578_v28  ;;  %v2192_v20 = vshll.u32 %v1874_v46, 16  ;;  %v2185_v58 = vrot.slane %v2183_v53, 4  ;;  %v2196_v38 = vshrl.u32 %v1874_v46, 16  ;;  %v2130_v22 = vshll.u32 %v1866_v27, 16  ;;  %v11746_v46 = vld [vmem:[#allocation2 + $0x78] sm:$0xff]   ;;  %v11748_v27 = vld [vmem:[#allocation2 + $0x90] sm:$0xff]  }
  0xb9   : > { %v1876_v53 = vld [vmem:[#allocation2 + $0x9c] sm:$0xf] }
  0xba   : > { %v12433_v15 = vrot.slane %v2192_v20, 5  ;;  %v2198_v19 = vrot.slane %v2196_v38, 4  ;;  %v2210_v61 = vshll.u32 %v1876_v53, 16  ;;  %v12453_v0 = vrot.slane %v2130_v22, 5 }
  0xbb   : > { %10140 = vmatpush3.bf16.msra.mxu0 %v11578_v28  ;;  %v11583_v28 = vld [vmem:[%s14262_s1 + $0x78] sm:$0xff]   ;;  %v2231_v22 = vshrl.u32 %v1879_v33, 16 }
  0xbc   : > { %10141 = vmatprep.subr.bf16.mxu0 %v11579_v8  ;;  %v2199_v11 = vor.u32 %v2198_v19, %v12433_v15 }
  0xbe   : > { %10110 = vmatmul.mubr.bf16.gmra.mrb[8].mxu0 %v11743_v16  ;;  %v2188_v16 = vrot.slane %v2186_v13, 5  ;;  %v2207_v13 = vshrl.u32 %v1876_v53, 16  ;;  %v2175_v53 = vor.u32 %v2174_v56, %v12423_v63 }
  0xbf   : > { %10113 = vmatprep.mubr.bf16.mxu0 %v11744_v59  ;;  %10142 = vmatpush3.bf16.msra.mxu0 %v11579_v8  ;;  %v12438_v8 = vld [vmem:[%s14262_s1 + $0x100] sm:$0xff]  }
  0xc0   : > { %10143 = vmatprep.subr.bf16.mxu0 %v11580_v62  ;;  %v1877_v59 = vld [vmem:[#allocation2 + $0xa0] sm:$0xf] }
  0xc1   : > { %v2216_v5 = vshll.u32 %v1877_v59, 16 }
  0xc3   : > { %10144 = vmatpush3.bf16.msra.mxu0 %v11580_v62  ;;  %v394_v62 = vld [vmem:[#allocation2 + $0xc8] sm:$0x1]  ;;  %v12469_v19 = vrot.slane %v2216_v5, 5  ;;  %v1917_v5 = vsel %vm12461_vm11, %v12268_v31, %v12281_v26  ;;  %v1955_v31 = vsel %vm12461_vm11, %v12284_v40, %v12252_v24  ;;  %v1965_v26 = vsel %vm12461_vm11, %v12290_v35, %v12333_v2 }
  0xc4   : > { %10145 = vmatprep.subr.bf16.mxu0 %v11581_v17  ;;  %v395_v20 = vsel %vm11873_vm5, 0, %v394_v62  ;;  %v1979_v40 = vsel %vm12461_vm11, %v12297_v25, %v12257_v21  ;;  %v1989_v35 = vsel %vm12461_vm11, %v12299_v12, %v12350_v45  ;;  %v2003_v2 = vsel %vm12461_vm11, %v12301_v7, %v12279_v42  ;;  %v11587_v25 = vld [vmem:[%s14262_s1 + $0x118] sm:$0xff]   ;;  %v11588_v42 = vld [vmem:[%s14262_s1 + $0x120] sm:$0xff]  }
  0xc5   : > { %396 = vst [vmem:[#allocation2 + $0xc8] sm:$0x1] %v395_v20  ;;  %v2189_v20 = vor.u32 %v2188_v16, %v2185_v58  ;;  %v12465_v58 = vrot.slane %v2207_v13, 4  ;;  %v12467_v16 = vrot.slane %v2210_v61, 5  ;;  %v1907_v61 = vsel %vm12461_vm11, %v12266_v29, %v12215_v36 }
  0xc6   : > { %10114 = vmatmul.mubr.bf16.gmra.mrb[12].mxu0 %v11745_v34  ;;  %v11747_v34 = vld [vmem:[#allocation2 + $0x84] sm:$0xff]   ;;  %v12485_v13 = vrot.slane %v2231_v22, 4  ;;  %v1931_v36 = vsel %vm12461_vm11, %v12275_v55, %v12242_v37  ;;  %v1941_v29 = vsel %vm12461_vm11, %v12277_v54, %v12272_v23  ;;  %v12512_v55 = vcombine.low %v1955_v31, %v1965_v26  ;;  %v11586_v23 = vld [vmem:[%s14262_s1 + $0x110] sm:$0xff]   ;;  %v12540_v22 = vld [vmem:[#allocation2 + $0x98] sm:$0x1] }
  0xc7   : > { %10117 = vmatprep.mubr.bf16.mxu0 %v11746_v46  ;;  %10146 = vmatpush3.bf16.msra.mxu0 %v11581_v17  ;;  %v11749_v17 = vld [vmem:[#allocation2 + $0x9c] sm:$0xff]   ;;  %v2165_v46 = vor.u32 %v12412_v57, %v12410_v49  ;;  %v12455_v57 = vrot.slane %v2175_v53, 4  ;;  %v12457_v43 = vrot.slane %v2189_v20, 4  ;;  %v2234_v53 = vshll.u32 %v1879_v33, 16  ;;  %v11582_v20 = vld [vmem:[#allocation2 + $0xcc] sm:$0xff]  }
  0xc8   : > { %10147 = vmatprep.subr.bf16.mxu0 %v11583_v28  ;;  %v11585_v37 = vld [vmem:[%s14262_s1 + $0x108] sm:$0xff]   ;;  %v12544_v21 = vcombine.low %v1979_v40, %v1989_v35  ;;  %v2202_v7 = vshll.u32 %v12540_v22, 16  ;;  %v2027_v45 = vsel %vm12461_vm11, %v12317_v51, %v12311_v48  ;;  %v14325_v31 = vld [vmem:[#allocation9_spill] sm:$0xff]  ;;  %v14326_v26 = vld [vmem:[#allocation12_spill] sm:$0xff] }
  0xc9   : > { %v12489_v33 = vrot.slane %v2234_v53, 5  ;;  %v2051_v53 = vsel %vm12461_vm11, %v12354_v50, %v12319_v60  ;;  %v11589_v48 = vld [vmem:[%s14262_s1 + $0x128] sm:$0xff]   ;;  %v11590_v60 = vld [vmem:[%s14262_s1 + $0x130] sm:$0xff]   ;;  %v12637_v35 = vld [vmem:[#allocation2 + $0xa4] sm:$0x1] }
  0xcb   : > { %10148 = vmatpush3.bf16.msra.mxu0 %v11583_v28  ;;  %v1869_v28 = vld [vmem:[#allocation2 + $0x80] sm:$0x1] }
  0xcc   : > { %10181 = vmatprep.subr.bf16.mxu0 %v12438_v8  ;;  %v981_v38 = vld [vmem:[#allocation2 + $0xc8] sm:$0x1]  ;;  %v2154_v49 = vshll.u32 %v1869_v28, 16  ;;  %v12471_v28 = vrot.slane %v2199_v11, 4 }
  0xcd   : > { %v982_v62 = vsel %vm11861_vm3, %v14318_v32, %v981_v38  ;;  %v1880_v32 = vld [vmem:[#allocation2 + $0xac] sm:$0xf] }
  0xce   : > { %10118 = vmatmul.mubr.bf16.gmra.mrb[16].mxu0 %v11747_v34  ;;  %v11750_v34 = vld [vmem:[#allocation2 + $0xa8] sm:$0xff]   ;;  %983 = vst [vmem:[#allocation2 + $0xc8] sm:$0x1] %v982_v62  ;;  %v11752_v62 = vld [vmem:[#allocation2 + $0xc0] sm:$0xff]  }
  0xcf   : > { %10121 = vmatprep.mubr.bf16.mxu0 %v11748_v27  ;;  %v12450_v27 = vrot.slane %v2165_v46, 4  ;;  %v1872_v38 = vld [vmem:[#allocation2 + $0x8c] sm:$0x1] }
  0xd0   : > { %v2178_v11 = vshll.u32 %v1872_v38, 16  ;;  %v12542_v38 = vld [vmem:[#allocation2 + $0xb4] sm:$0xf] }
  0xd1   : > { %v2258_v50 = vshll.u32 %v12542_v38, 16 }
  0xd6   : > { %10122 = vmatmul.mubr.bf16.gmra.mrb[20].mxu0 %v11749_v17  ;;  %v2220_v17 = vshrl.u32 %v1877_v59, 16  ;;  %v11751_v59 = vld [vmem:[#allocation2 + $0xb4] sm:$0xff]  }
  0xd7   : > { %10125 = vmatprep.mubr.bf16.mxu0 %v11750_v34  ;;  %v12475_v34 = vrot.slane %v2154_v49, 5  ;;  %v12487_v49 = vrot.slane %v2178_v11, 5 }
  0xd8   : > { %v12473_v46 = vrot.slane %v2220_v17, 4  ;;  %v2240_v17 = vshll.u32 %v1880_v32, 16 }
  0xda   : > { %v12518_v24 = vrot.slane %v2240_v17, 5  ;;  %v12603_v17 = vld [vmem:[#allocation2 + $0xb8] sm:$0xf] }
  0xde   : > { %10126 = vmatmul.mubr.bf16.gmra.mrb[24].mxu0 %v11751_v59  ;;  %v2244_v59 = vshrl.u32 %v1880_v32, 16  ;;  %v12507_v32 = vcombine.low %v1931_v36, %v1941_v29  ;;  %v14324_v36 = vld [vmem:[#allocation11_spill] sm:$0xff] }
  0xdf   : > { %10129 = vmatprep.mubr.bf16.mxu0 %v11752_v62  ;;  %v8825_v62 = vcombine.low %v1907_v61, %v1917_v5  ;;  %v14321_v5 = vld [vmem:[#allocation8_spill] sm:$0xff]  ;;  %v2133_v29 = vsel %vm12461_vm11, %v14324_v36, %v12453_v0  ;;  %v2213_v0 = vor.u32 %v12467_v16, %v12465_v58  ;;  %v2181_v58 = vsel %vm12461_vm11, %v12455_v57, %v12487_v49 }
  0xe0   : > { %v12520_v54 = vrot.slane %v2244_v59, 4  ;;  %v2109_v11 = vsel %vm12461_vm11, %v14321_v5, %v12428_v47  ;;  %v14322_v47 = vld [vmem:[#allocation7_spill] sm:$0xff]  ;;  %v14323_v59 = vld [vmem:[#allocation10_spill] sm:$0xff]  ;;  %v2195_v16 = vsel %vm12461_vm11, %v12457_v43, %v12433_v15  ;;  %v2260_v49 = vrot.slane %v2258_v50, 5 }
  0xe6   : > { %10130 = vmatmul.mubr.bf16.gmra.mrb[28].mxu0 %v11582_v20  ;;  %v2061_v20 = vsel %vm12461_vm11, %v12356_v18, %v12376_v44  ;;  %v2075_v18 = vsel %vm12461_vm11, %v12362_v14, %v12327_v3  ;;  %v2099_v44 = vsel %vm12461_vm11, %v12378_v10, %v12345_v52  ;;  %v11591_v14 = vld [vmem:[%s14262_s1 + $0x138] sm:$0xff]   ;;  %v2264_v52 = vshll.u32 %v12603_v17, 16 }
  0xe7   : > { %10149 = vmatprep.mubr.bf16.mxu0 %v8825_v62  ;;  %v12579_v51 = vcombine.low %v2051_v53, %v2061_v20  ;;  %v2268_v10 = vshrl.u32 %v12603_v17, 16  ;;  %v2123_v62 = vsel %vm12461_vm11, %v14323_v59, %v14322_v47 }
  0xe8   : > { %v2266_v15 = vrot.slane %v2264_v52, 5 }
  0xe9   : > { %v2270_v43 = vrot.slane %v2268_v10, 4 }
  0xee   : > { %10150 = vmatmul.mubr.bf16.vlgmr.msra.gmra.mrb[0].mxu0 %v12507_v32 }
  0xef   : > { %10182 = vmatpush3.bf16.msra.mxu0 %v12438_v8  ;;  %10153 = vmatprep.mubr.bf16.mxu0 %v12512_v55  ;;  %v2013_v8 = vsel %vm12461_vm11, %v12309_v41, %v12358_v30  ;;  %v2255_v41 = vshrl.u32 %v12542_v38, 16  ;;  %v2037_v30 = vsel %vm12461_vm11, %v12352_v9, %v12360_v4  ;;  %v2204_v9 = vrot.slane %v2202_v7, 5 }
  0xf0   : > { %10183 = vmatprep.subr.bf16.mxu0 %v11585_v37  ;;  %v12549_v12 = vcombine.low %v2003_v2, %v2013_v8  ;;  %v12574_v61 = vcombine.low %v2027_v45, %v2037_v30  ;;  %v2085_v4 = vsel %vm12461_vm11, %v12364_v39, %v12398_v1  ;;  %v12610_v39 = vcombine.low %v2099_v44, %v2109_v11  ;;  %v12618_v1 = vld [vmem:[%s14262_s1 + $0x1c0] sm:$0xff]   ;;  %v12639_v2 = vld [vmem:[#allocation2 + $0xb0] sm:$0x1] }
  0xf1   : > { %v12605_v3 = vcombine.low %v2075_v18, %v2085_v4  ;;  %v12641_v8 = vcombine.low %v2123_v62, %v2133_v29  ;;  %v2171_v7 = vsel %vm12461_vm11, %v12450_v27, %v12423_v63  ;;  %v2237_v45 = vor.u32 %v12489_v33, %v12485_v13  ;;  %v397_v13 = vld [vmem:[#allocation2 + $0xd4] sm:$0x1]  ;;  %v11593_v29 = vld [vmem:[%s14262_s1 + $0x1c8] sm:$0xff]  }
  0xf2   : > { %v2247_v63 = vor.u32 %v12520_v54, %v12518_v24  ;;  %v2214_v27 = vrot.slane %v2213_v0, 4  ;;  %v12673_v30 = vcombine.low %v2171_v7, %v2181_v58  ;;  %v2257_v57 = vrot.slane %v2255_v41, 4  ;;  %v1885_v0 = vld [vmem:[#allocation2 + $0xc0] sm:$0xf]  ;;  %v11684_v54 = vld [vmem:[%s14264_s3 + $0x1d0] sm:$0xff]  }
  0xf3   : > { %10184 = vmatpush3.bf16.msra.mxu0 %v11585_v37  ;;  %v2147_v37 = vsel %vm12461_vm11, %v14326_v26, %v14325_v31  ;;  %v398_v41 = vsel %vm11873_vm5, 0, %v397_v13  ;;  %v2271_v44 = vor.u32 %v2270_v43, %v2266_v15  ;;  %v11594_v31 = vld [vmem:[%s14262_s1 + $0x1d0] sm:$0xff]   ;;  %v11597_v26 = vld [vmem:[%s14262_s1 + $0x1e8] sm:$0xff]  }
  0xf4   : > { %10185 = vmatprep.subr.bf16.mxu0 %v11586_v23  ;;  %v2248_v18 = vrot.slane %v2247_v63, 4  ;;  %v2219_v33 = vsel %vm12461_vm11, %v2214_v27, %v12469_v19  ;;  %v2261_v4 = vor.u32 %v2260_v49, %v2257_v57  ;;  %399 = vst [vmem:[#allocation2 + $0xd4] sm:$0x1] %v398_v41  ;;  %v12747_v27 = vld [vmem:[#allocation2 + $0xc8] sm:$0x1] }
  0xf5   : > { %v2272_v47 = vrot.slane %v2271_v44, 4  ;;  %v2620_v49 = vshll.u32 %v12747_v27, 16  ;;  %v11601_v13 = vld [vmem:[%s14262_s1 + $0x88] sm:$0xff]   ;;  %v12796_v41 = vld [vmem:[#allocation2 + $0xd0] sm:$0xf] }
  0xf6   : > { %10154 = vmatmul.mubr.bf16.gmra.mrb[4].mxu0 %v12544_v21  ;;  %v2262_v10 = vrot.slane %v2261_v4, 4  ;;  %v2900_v4 = vshrl.u32 %v12796_v41, 16 }
  0xf7   : > { %10157 = vmatprep.mubr.bf16.mxu0 %v12549_v12  ;;  %10186 = vmatpush3.bf16.msra.mxu0 %v11586_v23  ;;  %v14327_v23 = vld [vmem:[#allocation13_spill] sm:$0xff]  ;;  %v2622_v43 = vrot.slane %v2620_v49, 5  ;;  %v11757_v49 = vld [vmem:[#allocation2 + $0x14] sm:$0x1] }
  0xf8   : > { %10187 = vmatprep.subr.bf16.mxu0 %v11587_v25  ;;  %v2157_v40 = vsel %vm12461_vm11, %v14327_v23, %v12475_v34  ;;  %v2223_v34 = vor.u32 %v12473_v46, %v12469_v19  ;;  %v2205_v46 = vsel %vm12461_vm11, %v12471_v28, %v2204_v9  ;;  %v12677_v9 = vld [vmem:[#allocation2 + $0xbc] sm:$0x1]  ;;  %v2267_v62 = vsel %vm12461_vm11, %v2262_v10, %v2266_v15 }
  0xf9   : > { %v12643_v38 = vcombine.low %v2147_v37, %v2157_v40  ;;  %v12675_v20 = vcombine.low %v2195_v16, %v2205_v46  ;;  %v2274_v5 = vshll.u32 %v12677_v9, 16  ;;  %v11598_v37 = vld [vmem:[%s14262_s1 + $0x1f0] sm:$0xff]   ;;  %v11599_v23 = vld [vmem:[%s14262_s1 + $0x1f8] sm:$0xff]   ;;  %v11600_v40 = vld [vmem:[%s14262_s1 + $0x80] sm:$0xff]  }
  0xfa   : > { %v2224_v53 = vrot.slane %v2223_v34, 4  ;;  %v12741_v34 = vld [vmem:[#allocation2 + $0xc4] sm:$0xf] }
  0xfb   : > { %10188 = vmatpush3.bf16.msra.mxu0 %v11587_v25  ;;  %v2226_v25 = vshll.u32 %v12637_v35, 16  ;;  %v2276_v59 = vrot.slane %v2274_v5, 5  ;;  %v2610_v7 = vshll.u32 %v12741_v34, 16  ;;  %v2614_v58 = vshrl.u32 %v12741_v34, 16  ;;  %v12803_v10 = vld [vmem:[#allocation2 + $0xd4] sm:$0x1] }
  0xfc   : > { %10189 = vmatprep.subr.bf16.mxu0 %v11588_v42 }
  0xfd   : > { %v2616_v63 = vrot.slane %v2614_v58, 4  ;;  %v3173_v58 = vld [vmem:[#allocation2 + $0xc] sm:$0xe] }
  0xfe   : > { %10158 = vmatmul.mubr.bf16.gmra.mrb[8].mxu0 %v12574_v61 }
  0xff   : > { %10161 = vmatprep.mubr.bf16.mxu0 %v12579_v51  ;;  %10190 = vmatpush3.bf16.msra.mxu0 %v11588_v42  ;;  %v2250_v42 = vshll.u32 %v12639_v2, 16 }
 0x100   : > { %10191 = vmatprep.subr.bf16.mxu0 %v11589_v48 }
 0x101   : > { %v2252_v28 = vrot.slane %v2250_v42, 5  ;;  %v2604_v42 = vshll.u32 %v1885_v0, 16 }
 0x103   : > { %10192 = vmatpush3.bf16.msra.mxu0 %v11589_v48  ;;  %v2228_v48 = vrot.slane %v2226_v25, 5  ;;  %v2253_v19 = vsel %vm12461_vm11, %v2248_v18, %v2252_v28  ;;  %v2601_v25 = vshrl.u32 %v1885_v0, 16  ;;  %v2606_v46 = vrot.slane %v2604_v42, 5  ;;  %v11755_v0 = vld [vmem:[#allocation2 + $0x10] sm:$0xf] }
 0x104   : > { %10193 = vmatprep.subr.bf16.mxu0 %v11590_v60 }
 0x105   : > { %v2229_v50 = vsel %vm12461_vm11, %v2224_v53, %v2228_v48  ;;  %v2603_v16 = vrot.slane %v2601_v25, 4  ;;  %v3250_v25 = vrot.slane %v11755_v0, 5 }
 0x106   : > { %10162 = vmatmul.mubr.bf16.gmra.mrb[12].mxu0 %v12605_v3 }
 0x107   : > { %10165 = vmatprep.mubr.bf16.mxu0 %v12610_v39  ;;  %10194 = vmatpush3.bf16.msra.mxu0 %v11590_v60  ;;  %v2238_v60 = vrot.slane %v2237_v45, 4  ;;  %v2612_v45 = vrot.slane %v2610_v7, 5  ;;  %v2607_v53 = vor.u32 %v2606_v46, %v2603_v16  ;;  %v11756_v16 = vld [vmem:[#allocation2 + $0x1c] sm:$0xf] }
 0x108   : > { %10195 = vmatprep.subr.bf16.mxu0 %v11591_v14  ;;  %v3257_v46 = vrot.slane %v11756_v16, 5 }
 0x109   : > { %v2243_v11 = vsel %vm12461_vm11, %v2238_v60, %v12518_v24  ;;  %v2277_v24 = vsel %vm12461_vm11, %v2272_v47, %v2276_v59  ;;  %v2617_v57 = vor.u32 %v2616_v63, %v2612_v45  ;;  %v2608_v48 = vrot.slane %v2607_v53, 4  ;;  %v11753_v59 = vld [vmem:[#allocation2 + $0x4] sm:$0xf] }
 0x10a   : > { %v12696_v52 = vcombine.low %v2243_v11, %v2253_v19  ;;  %v12704_v36 = vcombine.low %v2267_v62, %v2277_v24  ;;  %v2902_v19 = vrot.slane %v2900_v4, 4  ;;  %v3243_v62 = vrot.slane %v11753_v59, 5  ;;  %v3172_v24 = vld [vmem:[#allocation2] sm:$0xe] }
 0x10b   : > { %10196 = vmatpush3.bf16.msra.mxu0 %v11591_v14  ;;  %v12694_v14 = vcombine.low %v2219_v33, %v2229_v50  ;;  %v2618_v15 = vrot.slane %v2617_v57, 4  ;;  %v2613_v60 = vsel %vm12461_vm11, %v2608_v48, %v2612_v45  ;;  %v11602_v33 = vld [vmem:[%s14262_s1 + $0x90] sm:$0xff]   ;;  %v8900_v53 = vrot.slane %v3173_v58, 9 }
 0x10c   : > { %10229 = vmatprep.subr.bf16.mxu0 %v12618_v1  ;;  %v3252_v57 = vrot.slane %v3250_v25, 4  ;;  %v3253_v48 = vrot.slane %v11757_v49, 5  ;;  %v11767_v49 = vld [vmem:[#allocation2 + $0x58] sm:$0xf] }
 0x10d   : > { %v2623_v18 = vsel %vm12461_vm11, %v2618_v15, %v2622_v43  ;;  %v3259_v43 = vrot.slane %v3257_v46, 4 }
 0x10e   : > { %10166 = vmatmul.mubr.bf16.gmra.mrb[16].mxu0 %v12641_v8  ;;  %v12758_v28 = vcombine.low %v2613_v60, %v2623_v18  ;;  %v11758_v60 = vld [vmem:[#allocation2 + $0x20] sm:$0x1] }
 0x10f   : > { %10169 = vmatprep.mubr.bf16.mxu0 %v12643_v38  ;;  %v3260_v18 = vrot.slane %v11758_v60, 5  ;;  %v3179_v60 = vld [vmem:[#allocation2 + $0x54] sm:$0xe] }
 0x116   : > { %10170 = vmatmul.mubr.bf16.gmra.mrb[20].mxu0 %v12673_v30 }
 0x117   : > { %10173 = vmatprep.mubr.bf16.mxu0 %v12675_v20 }
 0x11e   : > { %10174 = vmatmul.mubr.bf16.gmra.mrb[24].mxu0 %v12694_v14 }
 0x11f   : > { %10177 = vmatprep.mubr.bf16.mxu0 %v12696_v52 }
 0x126   : > { %10178 = vmatmul.mubr.bf16.gmra.mrb[28].mxu0 %v12704_v36 }
 0x127   : > { %10197 = vmatprep.mubr.bf16.mxu0 %v12507_v32  ;;  %v11595_v32 = vld [vmem:[%s14262_s1 + $0x1d8] sm:$0xff]  }
 0x12e   : > { %10198 = vmatmul.mubr.bf16.vlgmr.msra.gmra.mrb[0].mxu0 %v12512_v55 }
 0x12f   : > { %10230 = vmatpush3.bf16.msra.mxu0 %v12618_v1  ;;  %10201 = vmatprep.mubr.bf16.mxu0 %v12544_v21  ;;  %v11596_v1 = vld [vmem:[%s14262_s1 + $0x1e0] sm:$0xff]  }
 0x130   : > { %10231 = vmatprep.subr.bf16.mxu0 %v11593_v29 }
 0x133   : > { %10232 = vmatpush3.bf16.msra.mxu0 %v11593_v29 }
 0x134   : > { %10233 = vmatprep.subr.bf16.mxu0 %v11594_v31 }
 0x136   : > { %10202 = vmatmul.mubr.bf16.gmra.mrb[4].mxu0 %v12549_v12 }
 0x137   : > { %10205 = vmatprep.mubr.bf16.mxu0 %v12574_v61  ;;  %10234 = vmatpush3.bf16.msra.mxu0 %v11594_v31 }
 0x138   : > { %10235 = vmatprep.subr.bf16.mxu0 %v11595_v32 }
 0x13b   : > { %10236 = vmatpush3.bf16.msra.mxu0 %v11595_v32 }
 0x13c   : > { %10237 = vmatprep.subr.bf16.mxu0 %v11596_v1 }
 0x13e   : > { %10206 = vmatmul.mubr.bf16.gmra.mrb[8].mxu0 %v12579_v51 }
 0x13f   : > { %10209 = vmatprep.mubr.bf16.mxu0 %v12605_v3  ;;  %10238 = vmatpush3.bf16.msra.mxu0 %v11596_v1  ;;  %v8899_v1 = vrot.slane %v3172_v24, 9 }
 0x140   : > { %10239 = vmatprep.subr.bf16.mxu0 %v11597_v26 }
 0x141   : > { %v3244_v42 = vsel %vm12808_vm14, %v8899_v1, %v3243_v62 }
 0x143   : > { %10240 = vmatpush3.bf16.msra.mxu0 %v11597_v26  ;;  %v3245_v26 = vrot.slane %v3243_v62, 4 }
 0x144   : > { %10241 = vmatprep.subr.bf16.mxu0 %v11598_v37 }
 0x146   : > { %10210 = vmatmul.mubr.bf16.gmra.mrb[12].mxu0 %v12610_v39 }
 0x147   : > { %10213 = vmatprep.mubr.bf16.mxu0 %v12641_v8  ;;  %10242 = vmatpush3.bf16.msra.mxu0 %v11598_v37  ;;  %v11754_v37 = vld [vmem:[#allocation2 + $0x8] sm:$0x1] }
 0x148   : > { %10243 = vmatprep.subr.bf16.mxu0 %v11599_v23 }
 0x14b   : > { %10244 = vmatpush3.bf16.msra.mxu0 %v11599_v23  ;;  %v3246_v23 = vrot.slane %v11754_v37, 5  ;;  %v11764_v37 = vld [vmem:[#allocation2 + $0x4c] sm:$0xf] }
 0x14c   : > { %10277 = vmatprep.subr.bf16.mxu0 %v11600_v40 }
 0x14d   : > { %v3247_v7 = vsel %vm12808_vm14, %v3245_v26, %v3246_v23  ;;  %v3177_v26 = vld [vmem:[#allocation2 + $0x3c] sm:$0xe]  ;;  %v3285_v23 = vrot.slane %v11764_v37, 5 }
 0x14e   : > { %10214 = vmatmul.mubr.bf16.gmra.mrb[16].mxu0 %v12643_v38  ;;  %v8931_v63 = vcombine.low %v3244_v42, %v3247_v7  ;;  %v11765_v7 = vld [vmem:[#allocation2 + $0x44] sm:$0x1] }
 0x14f   : > { %10217 = vmatprep.mubr.bf16.mxu0 %v12673_v30  ;;  %v3281_v58 = vrot.slane %v11765_v7, 5 }
 0x156   : > { %10218 = vmatmul.mubr.bf16.gmra.mrb[20].mxu0 %v12675_v20 }
 0x157   : > { %10221 = vmatprep.mubr.bf16.mxu0 %v12694_v14 }
 0x15e   : > { %10222 = vmatmul.mubr.bf16.gmra.mrb[24].mxu0 %v12696_v52 }
 0x15f   : > { %10225 = vmatprep.mubr.bf16.mxu0 %v12704_v36 }
 0x166   : > { %10226 = vmatmul.mubr.bf16.gmra.mrb[28].mxu0 %v12758_v28 }
 0x167   : > { %10245 = vmatprep.mubr.bf16.mxu0 %v12512_v55  ;;  %v11603_v55 = vld [vmem:[%s14262_s1 + $0x98] sm:$0xff]  }
 0x16e   : > { %10246 = vmatmul.mubr.bf16.vlgmr.msra.gmra.mrb[0].mxu0 %v12544_v21  ;;  %v11604_v21 = vld [vmem:[%s14262_s1 + $0xa0] sm:$0xff]  }
 0x16f   : > { %10278 = vmatpush3.bf16.msra.mxu0 %v11600_v40  ;;  %10249 = vmatprep.mubr.bf16.mxu0 %v12549_v12  ;;  %v11605_v12 = vld [vmem:[%s14262_s1 + $0xa8] sm:$0xff]  }
 0x170   : > { %10279 = vmatprep.subr.bf16.mxu0 %v11601_v13 }
 0x173   : > { %10280 = vmatpush3.bf16.msra.mxu0 %v11601_v13  ;;  %v3254_v13 = vsel %vm12808_vm14, %v3252_v57, %v3253_v48  ;;  %v3292_v48 = vrot.slane %v11767_v49, 5 }
 0x174   : > { %10281 = vmatprep.subr.bf16.mxu0 %v11602_v33 }
 0x176   : > { %10250 = vmatmul.mubr.bf16.gmra.mrb[4].mxu0 %v12574_v61  ;;  %v11606_v61 = vld [vmem:[%s14262_s1 + $0xb0] sm:$0xff]  }
 0x177   : > { %10253 = vmatprep.mubr.bf16.mxu0 %v12579_v51  ;;  %10282 = vmatpush3.bf16.msra.mxu0 %v11602_v33  ;;  %v11607_v51 = vld [vmem:[%s14262_s1 + $0xb8] sm:$0xff]   ;;  %v11759_v33 = vld [vmem:[#allocation2 + $0x28] sm:$0xf] }
 0x178   : > { %10283 = vmatprep.subr.bf16.mxu0 %v11603_v55 }
 0x17b   : > { %10284 = vmatpush3.bf16.msra.mxu0 %v11603_v55  ;;  %v3264_v55 = vrot.slane %v11759_v33, 5  ;;  %v3180_v33 = vld [vmem:[#allocation2 + $0x60] sm:$0xe] }
 0x17c   : > { %10285 = vmatprep.subr.bf16.mxu0 %v11604_v21 }
 0x17e   : > { %10254 = vmatmul.mubr.bf16.gmra.mrb[8].mxu0 %v12605_v3  ;;  %v12794_v3 = vld [vmem:[%s14262_s1 + $0x140] sm:$0xff]  }
 0x17f   : > { %10257 = vmatprep.mubr.bf16.mxu0 %v12610_v39  ;;  %10286 = vmatpush3.bf16.msra.mxu0 %v11604_v21  ;;  %v1888_v39 = vld [vmem:[#allocation2 + $0xcc] sm:$0xf] }
 0x180   : > { %10287 = vmatprep.subr.bf16.mxu0 %v11605_v12  ;;  %v2890_v50 = vshll.u32 %v1888_v39, 16 }
 0x182   : > { %v2892_v5 = vrot.slane %v2890_v50, 5 }
 0x183   : > { %10288 = vmatpush3.bf16.msra.mxu0 %v11605_v12  ;;  %v3261_v12 = vsel %vm12808_vm14, %v3259_v43, %v3260_v18  ;;  %v11768_v18 = vld [vmem:[#allocation2 + $0x64] sm:$0xf] }
 0x184   : > { %10289 = vmatprep.subr.bf16.mxu0 %v11606_v61 }
 0x186   : > { %10258 = vmatmul.mubr.bf16.gmra.mrb[12].mxu0 %v12641_v8  ;;  %v2887_v8 = vshrl.u32 %v1888_v39, 16 }
 0x187   : > { %10261 = vmatprep.mubr.bf16.mxu0 %v12643_v38  ;;  %10290 = vmatpush3.bf16.msra.mxu0 %v11606_v61  ;;  %v2896_v38 = vshll.u32 %v12796_v41, 16  ;;  %v3175_v61 = vld [vmem:[#allocation2 + $0x24] sm:$0xe] }
 0x188   : > { %10291 = vmatprep.subr.bf16.mxu0 %v11607_v51  ;;  %v2889_v44 = vrot.slane %v2887_v8, 4  ;;  %v3176_v8 = vld [vmem:[#allocation2 + $0x30] sm:$0xe]  ;;  %v8902_v4 = vrot.slane %v3175_v61, 9  ;;  %v3294_v61 = vrot.slane %v3292_v48, 4 }
 0x189   : > { %v2898_v11 = vrot.slane %v2896_v38, 5 }
 0x18a   : > { %v2893_v47 = vor.u32 %v2892_v5, %v2889_v44  ;;  %v3266_v44 = vrot.slane %v3264_v55, 4  ;;  %v11761_v5 = vld [vmem:[#allocation2 + $0x2c] sm:$0x1]  ;;  %v3265_v62 = vsel %vm12808_vm14, %v8902_v4, %v3264_v55 }
 0x18b   : > { %10292 = vmatpush3.bf16.msra.mxu0 %v11607_v51  ;;  %v11760_v51 = vld [vmem:[#allocation2 + $0x34] sm:$0xf] }
 0x18c   : > { %10325 = vmatprep.subr.bf16.mxu0 %v12794_v3  ;;  %v2894_v29 = vrot.slane %v2893_v47, 4  ;;  %v3271_v39 = vrot.slane %v11760_v51, 5  ;;  %v8903_v47 = vrot.slane %v3176_v8, 9  ;;  %v11769_v51 = vld [vmem:[#allocation2 + $0x5c] sm:$0x1]  ;;  %v8907_v8 = vrot.slane %v3180_v33, 9 }
 0x18e   : > { %10262 = vmatmul.mubr.bf16.gmra.mrb[16].mxu0 %v12673_v30  ;;  %v2903_v30 = vor.u32 %v2902_v19, %v2898_v11  ;;  %v11609_v19 = vld [vmem:[%s14262_s1 + $0x148] sm:$0xff]  }
 0x18f   : > { %10265 = vmatprep.mubr.bf16.mxu0 %v12675_v20  ;;  %v2906_v20 = vshll.u32 %v12803_v10, 16 }
 0x190   : > { %v2904_v31 = vrot.slane %v2903_v30, 4  ;;  %v3273_v30 = vrot.slane %v3271_v39, 4 }
 0x191   : > { %v2908_v32 = vrot.slane %v2906_v20, 5  ;;  %v11762_v20 = vld [vmem:[#allocation2 + $0x38] sm:$0x1] }
 0x192   : > { %v3274_v59 = vrot.slane %v11762_v20, 5 }
 0x193   : > { %v2909_v40 = vsel %vm12461_vm11, %v2904_v31, %v2908_v32  ;;  %v3272_v32 = vsel %vm12808_vm14, %v8903_v47, %v3271_v39  ;;  %v3295_v39 = vrot.slane %v11769_v51, 5 }
 0x194   : > { %v3275_v1 = vsel %vm12808_vm14, %v3273_v30, %v3274_v59  ;;  %v11771_v30 = vld [vmem:[#allocation2 + $0x70] sm:$0xf] }
 0x195   : > { %v12853_v0 = vcombine.low %v3272_v32, %v3275_v1  ;;  %v3296_v47 = vsel %vm12808_vm14, %v3294_v61, %v3295_v39  ;;  %v3306_v20 = vrot.slane %v11771_v30, 5  ;;  %v11614_v32 = vld [vmem:[%s14262_s1 + $0x170] sm:$0xff]   ;;  %v3182_v1 = vld [vmem:[#allocation2 + $0x78] sm:$0xe]  ;;  %v11777_v61 = vld [vmem:[#allocation2 + $0x8c] sm:$0x1] }
 0x196   : > { %10266 = vmatmul.mubr.bf16.gmra.mrb[20].mxu0 %v12694_v14  ;;  %v14329_v14 = vmov 0  ;;  %v3323_v51 = vrot.slane %v11777_v61, 5  ;;  %v3680_v61 = vrot.slane %v12741_v34, 5  ;;  %v3952_v34 = vrot.slane %v12796_v41, 5  ;;  %v11625_v41 = vld [vmem:[%s14264_s3 + $0xc8] sm:$0xff]  }
 0x197   : > { %10269 = vmatprep.mubr.bf16.mxu0 %v12696_v52  ;;  %v14330_v14 = vsel %vm12808_vm14, 4294967295, %v14329_v14  ;;  %v2899_v52 = vsel %vm12461_vm11, %v2894_v29, %v2898_v11  ;;  %v3267_v11 = vrot.slane %v11761_v5, 5  ;;  %v11763_v29 = vld [vmem:[#allocation2 + $0x40] sm:$0xf] }
 0x198   : > { %14331 = vst [vmem:[#allocation8_spill] sm:$0xff] %v14330_v14  ;;  %v8890_v45 = vcombine.low %v2899_v52, %v2909_v40  ;;  %v3278_v31 = vrot.slane %v11763_v29, 5  ;;  %v3178_v52 = vld [vmem:[#allocation2 + $0x48] sm:$0xe]  ;;  %v11772_v29 = vld [vmem:[#allocation2 + $0x7c] sm:$0xf] }
 0x199   : > { %v3268_v24 = vsel %vm12808_vm14, %v3266_v44, %v3267_v11  ;;  %v8905_v16 = vrot.slane %v3178_v52, 9  ;;  %v11770_v44 = vld [vmem:[#allocation2 + $0x68] sm:$0x1]  ;;  %v11773_v52 = vld [vmem:[#allocation2 + $0x74] sm:$0x1] }
 0x19a   : > { %v12851_v40 = vcombine.low %v3265_v62, %v3268_v24  ;;  %v3280_v42 = vrot.slane %v3278_v31, 4  ;;  %v3302_v5 = vrot.slane %v11770_v44, 5  ;;  %v11613_v11 = vld [vmem:[%s14262_s1 + $0x168] sm:$0xff]  }
 0x19b   : > { %v3181_v24 = vld [vmem:[#allocation2 + $0x6c] sm:$0xe] }
 0x19c   : > { %v3282_v57 = vsel %vm12808_vm14, %v3280_v42, %v3281_v58  ;;  %v8908_v37 = vrot.slane %v3181_v24, 9  ;;  %v8909_v42 = vrot.slane %v3182_v1, 9  ;;  %v11774_v58 = vld [vmem:[#allocation2 + $0x80] sm:$0x1]  ;;  %v3337_v1 = vrot.slane %v12637_v35, 5 }
 0x19e   : > { %10270 = vmatmul.mubr.bf16.gmra.mrb[24].mxu0 %v12704_v36  ;;  %v3174_v36 = vld [vmem:[#allocation2 + $0x18] sm:$0xe] }
 0x19f   : > { %10273 = vmatprep.mubr.bf16.mxu0 %v12758_v28  ;;  %v8901_v15 = vrot.slane %v3174_v36, 9  ;;  %v3251_v28 = vsel %vm12808_vm14, %v8900_v53, %v3250_v25  ;;  %v8904_v25 = vrot.slane %v3177_v26, 9  ;;  %v11766_v36 = vld [vmem:[#allocation2 + $0x50] sm:$0x1] }
 0x1a0   : > { %v12830_v50 = vcombine.low %v3251_v28, %v3254_v13  ;;  %v3299_v28 = vrot.slane %v11768_v18, 5  ;;  %v11612_v13 = vld [vmem:[%s14262_s1 + $0x160] sm:$0xff]   ;;  %v3184_v18 = vld [vmem:[#allocation2 + $0x90] sm:$0xe] }
 0x1a1   : > { %v3258_v21 = vsel %vm12808_vm14, %v8901_v15, %v3257_v46  ;;  %v3287_v46 = vrot.slane %v3285_v23, 4  ;;  %v3279_v53 = vsel %vm12808_vm14, %v8904_v25, %v3278_v31  ;;  %v3286_v15 = vsel %vm12808_vm14, %v8905_v16, %v3285_v23 }
 0x1a2   : > { %v12832_v38 = vcombine.low %v3258_v21, %v3261_v12  ;;  %v12871_v55 = vcombine.low %v3279_v53, %v3282_v57  ;;  %v8906_v12 = vrot.slane %v3179_v60, 9  ;;  %v3301_v4 = vrot.slane %v3299_v28, 4  ;;  %v11616_v60 = vld [vmem:[%s14262_s1 + $0x200] sm:$0xff]  }
 0x1a3   : > { %v3300_v59 = vsel %vm12808_vm14, %v8907_v8, %v3299_v28  ;;  %v3313_v31 = vrot.slane %v11772_v29, 5  ;;  %v3308_v23 = vrot.slane %v3306_v20, 4  ;;  %v3309_v25 = vrot.slane %v11773_v52, 5 }
 0x1a4   : > { %v3303_v62 = vsel %vm12808_vm14, %v3301_v4, %v3302_v5  ;;  %v3316_v16 = vrot.slane %v11774_v58, 5  ;;  %v8911_v39 = vrot.slane %v3184_v18, 9  ;;  %v3330_v4 = vrot.slane %v12540_v22, 5  ;;  %v3185_v22 = vld [vmem:[#allocation2 + $0x9c] sm:$0xe]  ;;  %v11621_v18 = vld [vmem:[%s14262_s1 + $0x228] sm:$0xff]  }
 0x1a5   : > { %v3315_v7 = vrot.slane %v3313_v31, 4  ;;  %v3314_v57 = vsel %vm12808_vm14, %v8909_v42, %v3313_v31  ;;  %v8912_v31 = vrot.slane %v3185_v22, 9  ;;  %v3344_v52 = vrot.slane %v12639_v2, 5 }
 0x1a6   : > { %10274 = vmatmul.mubr.bf16.gmra.mrb[28].mxu0 %v8890_v45  ;;  %v3288_v45 = vrot.slane %v11766_v36, 5  ;;  %v3307_v36 = vsel %vm12808_vm14, %v8908_v37, %v3306_v20  ;;  %v11779_v20 = vld [vmem:[#allocation2 + $0xac] sm:$0xf] }
 0x1a7   : > { %10293 = vmatprep.mubr.bf16.mxu0 %v8931_v63  ;;  %v11611_v63 = vld [vmem:[%s14262_s1 + $0x158] sm:$0xff]   ;;  %v3317_v49 = vsel %vm12808_vm14, %v3315_v7, %v3316_v16  ;;  %v3348_v7 = vrot.slane %v12603_v17, 5  ;;  %v3187_v16 = vld [vmem:[#allocation2 + $0xb4] sm:$0xe] }
 0x1a8   : > { %v3289_v43 = vsel %vm12808_vm14, %v3287_v46, %v3288_v45  ;;  %v11615_v46 = vld [vmem:[%s14262_s1 + $0x178] sm:$0xff]   ;;  %v3310_v45 = vsel %vm12808_vm14, %v3308_v23, %v3309_v25 }
 0x1a9   : > { %v12873_v21 = vcombine.low %v3286_v15, %v3289_v43  ;;  %v11776_v15 = vld [vmem:[#allocation2 + $0x94] sm:$0xf]  ;;  %v12911_v28 = vcombine.low %v3307_v36, %v3310_v45  ;;  %v8914_v36 = vrot.slane %v3187_v16, 9  ;;  %v3350_v45 = vrot.slane %v3348_v7, 4 }
 0x1aa   : > { %v3327_v43 = vrot.slane %v11776_v15, 5  ;;  %v11617_v15 = vld [vmem:[%s14262_s1 + $0x208] sm:$0xff]  }
 0x1ab   : > { %v3349_v17 = vsel %vm12808_vm14, %v8914_v36, %v3348_v7  ;;  %v422_v7 = vld [vmem:[#allocation3 + $0x3c] sm:$0x1] }
 0x1ac   : > { %v3329_v8 = vrot.slane %v3327_v43, 4 }
 0x1ae   : > { %10294 = vmatmul.mubr.bf16.vlgmr.msra.gmra.mrb[0].mxu0 %v12830_v50  ;;  %v3331_v30 = vsel %vm12808_vm14, %v3329_v8, %v3330_v4  ;;  %v3682_v8 = vrot.slane %v3680_v61, 4  ;;  %v3683_v4 = vrot.slane %v12747_v27, 5  ;;  %v3189_v27 = vld [vmem:[#allocation2 + $0xcc] sm:$0xe] }
 0x1af   : > { %10326 = vmatpush3.bf16.msra.mxu0 %v12794_v3  ;;  %10297 = vmatprep.mubr.bf16.mxu0 %v12832_v38  ;;  %v11610_v3 = vld [vmem:[%s14262_s1 + $0x150] sm:$0xff]  }
 0x1b0   : > { %10327 = vmatprep.subr.bf16.mxu0 %v11609_v19 }
 0x1b3   : > { %10328 = vmatpush3.bf16.msra.mxu0 %v11609_v19  ;;  %v3293_v19 = vsel %vm12808_vm14, %v8906_v12, %v3292_v48  ;;  %v3183_v48 = vld [vmem:[#allocation2 + $0x84] sm:$0xe] }
 0x1b4   : > { %10329 = vmatprep.subr.bf16.mxu0 %v11610_v3  ;;  %v12891_v26 = vcombine.low %v3293_v19, %v3296_v47  ;;  %v8910_v33 = vrot.slane %v3183_v48, 9  ;;  %v3328_v47 = vsel %vm12808_vm14, %v8911_v39, %v3327_v43  ;;  %v413_v48 = vld [vmem:[#allocation3 + $0x18] sm:$0x1]  ;;  %v11619_v43 = vld [vmem:[%s14262_s1 + $0x218] sm:$0xff]  }
 0x1b5   : > { %v12928_v29 = vcombine.low %v3328_v47, %v3331_v30  ;;  %v464_v30 = vld [vmem:[#allocation3 + $0x14] sm:$0x1] }
 0x1b6   : > { %10298 = vmatmul.mubr.bf16.gmra.mrb[4].mxu0 %v12851_v40  ;;  %v465_v22 = vsel %vm11873_vm5, 0, %v464_v30 }
 0x1b7   : > { %10301 = vmatprep.mubr.bf16.mxu0 %v12853_v0  ;;  %10330 = vmatpush3.bf16.msra.mxu0 %v11610_v3  ;;  %v12893_v3 = vcombine.low %v3300_v59, %v3303_v62  ;;  %v3341_v59 = vrot.slane %v11779_v20, 5  ;;  %v3186_v62 = vld [vmem:[#allocation2 + $0xa8] sm:$0xe]  ;;  %466 = vst [vmem:[#allocation3 + $0x14] sm:$0x1] %v465_v22 }
 0x1b8   : > { %10331 = vmatprep.subr.bf16.mxu0 %v11611_v63  ;;  %v8913_v37 = vrot.slane %v3186_v62, 9  ;;  %v419_v20 = vld [vmem:[#allocation3 + $0x30] sm:$0x1]  ;;  %v416_v62 = vld [vmem:[#allocation3 + $0x24] sm:$0x1] }
 0x1b9   : > { %v3343_v23 = vrot.slane %v3341_v59, 4  ;;  %v506_v22 = vld [vmem:[#allocation3 + $0xbc] sm:$0x1] }
 0x1ba   : > { %v3342_v58 = vsel %vm12808_vm14, %v8913_v37, %v3341_v59  ;;  %v420_v59 = vsel %vm11861_vm3, 0, %v419_v20  ;;  %v470_v37 = vld [vmem:[#allocation3 + $0x2c] sm:$0x1]  ;;  %v507_v20 = vsel %vm11873_vm5, 0, %v506_v22 }
 0x1bb   : > { %10332 = vmatpush3.bf16.msra.mxu0 %v11611_v63  ;;  %v11775_v63 = vld [vmem:[#allocation2 + $0x88] sm:$0xf]  ;;  %v3345_v35 = vsel %vm12808_vm14, %v3343_v23, %v3344_v52  ;;  %421 = vst [vmem:[#allocation3 + $0x30] sm:$0x1] %v420_v59  ;;  %v471_v23 = vsel %vm11873_vm5, 0, %v470_v37  ;;  %v11630_v52 = vld [vmem:[%s14264_s3 + $0xf0] sm:$0xff]  }
 0x1bc   : > { %10333 = vmatprep.subr.bf16.mxu0 %v11612_v13  ;;  %v3320_v53 = vrot.slane %v11775_v63, 5  ;;  %v3351_v63 = vrot.slane %v12677_v9, 5  ;;  %v414_v9 = vsel %vm11861_vm3, 0, %v413_v48  ;;  %472 = vst [vmem:[#allocation3 + $0x2c] sm:$0x1] %v471_v23 }
 0x1bd   : > { %415 = vst [vmem:[#allocation3 + $0x18] sm:$0x1] %v414_v9  ;;  %v482_v48 = vld [vmem:[#allocation3 + $0x5c] sm:$0x1]  ;;  %508 = vst [vmem:[#allocation3 + $0xbc] sm:$0x1] %v507_v20 }
 0x1be   : > { %10302 = vmatmul.mubr.bf16.gmra.mrb[8].mxu0 %v12871_v55  ;;  %v3322_v12 = vrot.slane %v3320_v53, 4  ;;  %v3321_v44 = vsel %vm12808_vm14, %v8910_v33, %v3320_v53  ;;  %v3352_v53 = vsel %vm12808_vm14, %v3350_v45, %v3351_v63  ;;  %v11622_v33 = vld [vmem:[%s14262_s1 + $0x230] sm:$0xff]   ;;  %v431_v45 = vld [vmem:[#allocation3 + $0x60] sm:$0x1]  ;;  %v483_v9 = vsel %vm11873_vm5, 0, %v482_v48 }
 0x1bf   : > { %10305 = vmatprep.mubr.bf16.mxu0 %v12873_v21  ;;  %10334 = vmatpush3.bf16.msra.mxu0 %v11612_v13  ;;  %v12913_v13 = vcombine.low %v3314_v57, %v3317_v49  ;;  %v12954_v57 = vcombine.low %v3349_v17, %v3352_v53  ;;  %v11624_v49 = vld [vmem:[%s14264_s3 + $0xc0] sm:$0xff]   ;;  %v432_v63 = vsel %vm11861_vm3, 0, %v431_v45  ;;  %v428_v17 = vld [vmem:[#allocation3 + $0x54] sm:$0x1]  ;;  %484 = vst [vmem:[#allocation3 + $0x5c] sm:$0x1] %v483_v9 }
 0x1c0   : > { %10335 = vmatprep.subr.bf16.mxu0 %v11613_v11  ;;  %v3324_v5 = vsel %vm12808_vm14, %v3322_v12, %v3323_v51  ;;  %10901 = vmatprep.subr.bf16.mxu1 %v11624_v49  ;;  %v11623_v12 = vld [vmem:[%s14262_s1 + $0x238] sm:$0xff]   ;;  %v3188_v51 = vld [vmem:[#allocation2 + $0xc0] sm:$0xe]  ;;  %433 = vst [vmem:[#allocation3 + $0x60] sm:$0x1] %v432_v63  ;;  %v429_v53 = vsel %vm11861_vm3, 0, %v428_v17 }
 0x1c1   : > { %v12926_v24 = vcombine.low %v3321_v44, %v3324_v5  ;;  %10909 = vmatpush3.bf16.msra.mxu1 %v11624_v49  ;;  %v8955_v39 = vrot.slane %v3188_v51, 9  ;;  %v3684_v5 = vsel %vm12808_vm14, %v3682_v8, %v3683_v4  ;;  %430 = vst [vmem:[#allocation3 + $0x54] sm:$0x1] %v429_v53  ;;  %v443_v51 = vld [vmem:[#allocation3 + $0x90] sm:$0x1] }
 0x1c2   : > { %10902 = vmatprep.subr.bf16.mxu1 %v11625_v41  ;;  %v440_v8 = vld [vmem:[#allocation3 + $0x84] sm:$0x1]  ;;  %v407_v59 = vld [vmem:[#allocation3] sm:$0x1] }
 0x1c3   : > { %10336 = vmatpush3.bf16.msra.mxu0 %v11613_v11  ;;  %v11778_v11 = vld [vmem:[#allocation2 + $0xa0] sm:$0xf]  ;;  %v3681_v44 = vsel %vm12808_vm14, %v8955_v39, %v3680_v61  ;;  %v444_v39 = vsel %vm11861_vm3, 0, %v443_v51  ;;  %v441_v4 = vsel %vm11861_vm3, 0, %v440_v8 }
 0x1c4   : > { %10337 = vmatprep.subr.bf16.mxu0 %v11614_v32  ;;  %v3334_v19 = vrot.slane %v11778_v11, 5  ;;  %v8972_v11 = vcombine.low %v3681_v44, %v3684_v5  ;;  %445 = vst [vmem:[#allocation3 + $0x90] sm:$0x1] %v444_v39  ;;  %v497_v44 = vld [vmem:[#allocation3 + $0x98] sm:$0x1] }
 0x1c5   : > { %10910 = vmatpush3.bf16.msra.mxu1 %v11625_v41  ;;  %442 = vst [vmem:[#allocation3 + $0x84] sm:$0x1] %v441_v4  ;;  %v498_v5 = vsel %vm11873_vm5, 0, %v497_v44 }
 0x1c6   : > { %10306 = vmatmul.mubr.bf16.gmra.mrb[12].mxu0 %v12891_v26  ;;  %v3335_v25 = vsel %vm12808_vm14, %v8912_v31, %v3334_v19  ;;  %499 = vst [vmem:[#allocation3 + $0x98] sm:$0x1] %v498_v5 }
 0x1c7   : > { %10309 = vmatprep.mubr.bf16.mxu0 %v12893_v3  ;;  %10338 = vmatpush3.bf16.msra.mxu0 %v11614_v32  ;;  %v3336_v32 = vrot.slane %v3334_v19, 4  ;;  %v11627_v19 = vld [vmem:[%s14264_s3 + $0xd8] sm:$0xff]  }
 0x1c8   : > { %10339 = vmatprep.subr.bf16.mxu0 %v11615_v46 }
 0x1c9   : > { %v3338_v42 = vsel %vm12808_vm14, %v3336_v32, %v3337_v1  ;;  %v11628_v32 = vld [vmem:[%s14264_s3 + $0xe0] sm:$0xff]   ;;  %v11629_v1 = vld [vmem:[%s14264_s3 + $0xe8] sm:$0xff]  }
 0x1ca   : > { %v12943_v2 = vcombine.low %v3335_v25, %v3338_v42  ;;  %v425_v25 = vld [vmem:[#allocation3 + $0x48] sm:$0x1] }
 0x1cb   : > { %10340 = vmatpush3.bf16.msra.mxu0 %v11615_v46  ;;  %v12945_v46 = vcombine.low %v3342_v58, %v3345_v35  ;;  %v426_v42 = vsel %vm11861_vm3, 0, %v425_v25  ;;  %v423_v58 = vsel %vm11861_vm3, 0, %v422_v7  ;;  %v479_v35 = vld [vmem:[#allocation3 + $0x50] sm:$0x1] }
 0x1cc   : > { %10373 = vmatprep.subr.bf16.mxu0 %v11616_v60  ;;  %427 = vst [vmem:[#allocation3 + $0x48] sm:$0x1] %v426_v42  ;;  %424 = vst [vmem:[#allocation3 + $0x3c] sm:$0x1] %v423_v58  ;;  %v480_v16 = vsel %vm11873_vm5, 0, %v479_v35 }
 0x1cd   : > { %481 = vst [vmem:[#allocation3 + $0x50] sm:$0x1] %v480_v16 }
 0x1ce   : > { %10310 = vmatmul.mubr.bf16.gmra.mrb[16].mxu0 %v12911_v28 }
 0x1cf   : > { %10313 = vmatprep.mubr.bf16.mxu0 %v12913_v13 }
 0x1d6   : > { %10314 = vmatmul.mubr.bf16.gmra.mrb[20].mxu0 %v12926_v24 }
 0x1d7   : > { %10317 = vmatprep.mubr.bf16.mxu0 %v12928_v29 }
 0x1de   : > { %10318 = vmatmul.mubr.bf16.gmra.mrb[24].mxu0 %v12943_v2 }
 0x1df   : > { %10321 = vmatprep.mubr.bf16.mxu0 %v12945_v46 }
 0x1e6   : > { %10322 = vmatmul.mubr.bf16.gmra.mrb[28].mxu0 %v12954_v57 }
 0x1e7   : > { %10341 = vmatprep.mubr.bf16.mxu0 %v12830_v50  ;;  %v11618_v50 = vld [vmem:[%s14262_s1 + $0x210] sm:$0xff]  }
 0x1ee   : > { %10342 = vmatmul.mubr.bf16.vlgmr.msra.gmra.mrb[0].mxu0 %v12832_v38 }
 0x1ef   : > { %10374 = vmatpush3.bf16.msra.mxu0 %v11616_v60  ;;  %10345 = vmatprep.mubr.bf16.mxu0 %v12851_v40  ;;  %v11620_v60 = vld [vmem:[%s14262_s1 + $0x220] sm:$0xff]  }
 0x1f0   : > { %10375 = vmatprep.subr.bf16.mxu0 %v11617_v15 }
 0x1f3   : > { %10376 = vmatpush3.bf16.msra.mxu0 %v11617_v15  ;;  %v437_v15 = vld [vmem:[#allocation3 + $0x78] sm:$0x1] }
 0x1f4   : > { %10377 = vmatprep.subr.bf16.mxu0 %v11618_v50 }
 0x1f6   : > { %10346 = vmatmul.mubr.bf16.gmra.mrb[4].mxu0 %v12853_v0 }
 0x1f7   : > { %10349 = vmatprep.mubr.bf16.mxu0 %v12871_v55  ;;  %10378 = vmatpush3.bf16.msra.mxu0 %v11618_v50  ;;  %v438_v50 = vsel %vm11861_vm3, 0, %v437_v15 }
 0x1f8   : > { %10379 = vmatprep.subr.bf16.mxu0 %v11619_v43  ;;  %439 = vst [vmem:[#allocation3 + $0x78] sm:$0x1] %v438_v50 }
 0x1fb   : > { %10380 = vmatpush3.bf16.msra.mxu0 %v11619_v43  ;;  %v434_v43 = vld [vmem:[#allocation3 + $0x6c] sm:$0x1] }
 0x1fc   : > { %10381 = vmatprep.subr.bf16.mxu0 %v11620_v60 }
 0x1fe   : > { %10350 = vmatmul.mubr.bf16.gmra.mrb[8].mxu0 %v12873_v21 }
 0x1ff   : > { %10353 = vmatprep.mubr.bf16.mxu0 %v12891_v26  ;;  %10382 = vmatpush3.bf16.msra.mxu0 %v11620_v60  ;;  %v435_v60 = vsel %vm11861_vm3, 0, %v434_v43  ;;  %v4714_v43 = vld [vmem:[#allocation3 + $0x18] sm:$0xf] }
 0x200   : > { %10383 = vmatprep.subr.bf16.mxu0 %v11621_v18  ;;  %436 = vst [vmem:[#allocation3 + $0x6c] sm:$0x1] %v435_v60 }
 0x203   : > { %10384 = vmatpush3.bf16.msra.mxu0 %v11621_v18  ;;  %v491_v18 = vld [vmem:[#allocation3 + $0x80] sm:$0x1] }
 0x204   : > { %10385 = vmatprep.subr.bf16.mxu0 %v11622_v33 }
 0x206   : > { %10354 = vmatmul.mubr.bf16.gmra.mrb[12].mxu0 %v12893_v3 }
 0x207   : > { %10357 = vmatprep.mubr.bf16.mxu0 %v12911_v28  ;;  %10386 = vmatpush3.bf16.msra.mxu0 %v11622_v33  ;;  %v492_v33 = vsel %vm11873_vm5, 0, %v491_v18 }
 0x208   : > { %10387 = vmatprep.subr.bf16.mxu0 %v11623_v12  ;;  %493 = vst [vmem:[#allocation3 + $0x80] sm:$0x1] %v492_v33 }
 0x20b   : > { %10388 = vmatpush3.bf16.msra.mxu0 %v11623_v12  ;;  %v488_v12 = vld [vmem:[#allocation3 + $0x74] sm:$0x1] }
 0x20c   : > { %10421 = vmatprep.subr.bf16.mxu0 %v11624_v49  ;;  %v489_v61 = vsel %vm11873_vm5, 0, %v488_v12 }
 0x20d   : > { %490 = vst [vmem:[#allocation3 + $0x74] sm:$0x1] %v489_v61 }
 0x20e   : > { %10358 = vmatmul.mubr.bf16.gmra.mrb[16].mxu0 %v12913_v13 }
 0x20f   : > { %10361 = vmatprep.mubr.bf16.mxu0 %v12926_v24 }
 0x216   : > { %10362 = vmatmul.mubr.bf16.gmra.mrb[20].mxu0 %v12928_v29 }
 0x217   : > { %10365 = vmatprep.mubr.bf16.mxu0 %v12943_v2 }
 0x21e   : > { %10366 = vmatmul.mubr.bf16.gmra.mrb[24].mxu0 %v12945_v46 }
 0x21f   : > { %10369 = vmatprep.mubr.bf16.mxu0 %v12954_v57 }
 0x226   : > { %10370 = vmatmul.mubr.bf16.gmra.mrb[28].mxu0 %v8972_v11 }
 0x227   : > { %10389 = vmatprep.mubr.bf16.mxu0 %v12832_v38  ;;  %v8981_v38 = vrot.slane %v3189_v27, 9  ;;  %v449_v27 = vld [vmem:[#allocation3 + $0xa8] sm:$0x1] }
 0x22e   : > { %10390 = vmatmul.mubr.bf16.vlgmr.msra.gmra.mrb[0].mxu0 %v12851_v40  ;;  %v3954_v40 = vrot.slane %v3952_v34, 4 }
 0x22f   : > { %10393 = vmatprep.mubr.bf16.mxu0 %v12853_v0  ;;  %10422 = vmatpush3.bf16.msra.mxu0 %v11624_v49  ;;  %v3955_v0 = vrot.slane %v12803_v10, 5  ;;  %v11626_v10 = vld [vmem:[%s14264_s3 + $0xd0] sm:$0xff]  }
 0x230   : > { %10423 = vmatprep.subr.bf16.mxu0 %v11625_v41  ;;  %10903 = vmatprep.subr.bf16.mxu1 %v11626_v10 }
 0x231   : > { %10911 = vmatpush3.bf16.msra.mxu1 %v11626_v10 }
 0x232   : > { %10904 = vmatprep.subr.bf16.mxu1 %v11627_v19 }
 0x233   : > { %10424 = vmatpush3.bf16.msra.mxu0 %v11625_v41 }
 0x234   : > { %10425 = vmatprep.subr.bf16.mxu0 %v11626_v10 }
 0x235   : > { %10912 = vmatpush3.bf16.msra.mxu1 %v11627_v19 }
 0x236   : > { %10394 = vmatmul.mubr.bf16.gmra.mrb[4].mxu0 %v12871_v55  ;;  %v3953_v55 = vsel %vm12808_vm14, %v8981_v38, %v3952_v34  ;;  %10905 = vmatprep.subr.bf16.mxu1 %v11628_v32  ;;  %v450_v38 = vsel %vm11861_vm3, 0, %v449_v27 }
 0x237   : > { %10397 = vmatprep.mubr.bf16.mxu0 %v12873_v21  ;;  %v3956_v21 = vsel %vm12808_vm14, %v3954_v40, %v3955_v0  ;;  %10426 = vmatpush3.bf16.msra.mxu0 %v11626_v10  ;;  %v446_v40 = vld [vmem:[#allocation3 + $0x9c] sm:$0x1]  ;;  %451 = vst [vmem:[#allocation3 + $0xa8] sm:$0x1] %v450_v38  ;;  %v455_v10 = vld [vmem:[#allocation3 + $0xc0] sm:$0x1] }
 0x238   : > { %10427 = vmatprep.subr.bf16.mxu0 %v11627_v19  ;;  %v447_v0 = vsel %vm11861_vm3, 0, %v446_v40 }
 0x239   : > { %10913 = vmatpush3.bf16.msra.mxu1 %v11628_v32  ;;  %448 = vst [vmem:[#allocation3 + $0x9c] sm:$0x1] %v447_v0 }
 0x23a   : > { %10906 = vmatprep.subr.bf16.mxu1 %v11629_v1 }
 0x23b   : > { %10428 = vmatpush3.bf16.msra.mxu0 %v11627_v19 }
 0x23c   : > { %10429 = vmatprep.subr.bf16.mxu0 %v11628_v32 }
 0x23d   : > { %10914 = vmatpush3.bf16.msra.mxu1 %v11629_v1 }
 0x23e   : > { %10398 = vmatmul.mubr.bf16.gmra.mrb[8].mxu0 %v12891_v26  ;;  %v8998_v26 = vcombine.low %v3953_v55, %v3956_v21  ;;  %10907 = vmatprep.subr.bf16.mxu1 %v11630_v52  ;;  %v503_v55 = vld [vmem:[#allocation3 + $0xb0] sm:$0x1] }
 0x23f   : > { %10401 = vmatprep.mubr.bf16.mxu0 %v12893_v3  ;;  %v410_v3 = vld [vmem:[#allocation3 + $0xc] sm:$0x1]  ;;  %10430 = vmatpush3.bf16.msra.mxu0 %v11628_v32  ;;  %v504_v21 = vsel %vm11873_vm5, 0, %v503_v55 }
 0x240   : > { %10431 = vmatprep.subr.bf16.mxu0 %v11629_v1  ;;  %505 = vst [vmem:[#allocation3 + $0xb0] sm:$0x1] %v504_v21 }
 0x241   : > { %10915 = vmatpush3.bf16.msra.mxu1 %v11630_v52 }
 0x243   : > { %10432 = vmatpush3.bf16.msra.mxu0 %v11629_v1 }
 0x244   : > { %10433 = vmatprep.subr.bf16.mxu0 %v11630_v52 }
 0x246   : > { %10402 = vmatmul.mubr.bf16.gmra.mrb[12].mxu0 %v12911_v28  ;;  %v411_v28 = vsel %vm11861_vm3, 0, %v410_v3  ;;  %v13102_v3 = vld [vmem:[%s14264_s3] sm:$0xff]  }
 0x247   : > { %10405 = vmatprep.mubr.bf16.mxu0 %v12913_v13  ;;  %v467_v13 = vld [vmem:[#allocation3 + $0x20] sm:$0x1]  ;;  %412 = vst [vmem:[#allocation3 + $0xc] sm:$0x1] %v411_v28  ;;  %10434 = vmatpush3.bf16.msra.mxu0 %v11630_v52  ;;  %v456_v28 = vsel %vm11861_vm3, 0, %v455_v10 }
 0x248   : > { %v468_v47 = vsel %vm11873_vm5, 0, %v467_v13  ;;  %v452_v13 = vld [vmem:[#allocation3 + $0xb4] sm:$0x1]  ;;  %457 = vst [vmem:[#allocation3 + $0xc0] sm:$0x1] %v456_v28 }
 0x249   : > { %469 = vst [vmem:[#allocation3 + $0x20] sm:$0x1] %v468_v47  ;;  %v453_v19 = vsel %vm11861_vm3, 0, %v452_v13  ;;  %v509_v47 = vld [vmem:[#allocation3 + $0xc8] sm:$0x1] }
 0x24a   : > { %454 = vst [vmem:[#allocation3 + $0xb4] sm:$0x1] %v453_v19  ;;  %v510_v30 = vsel %vm11873_vm5, 0, %v509_v47 }
 0x24b   : > { %511 = vst [vmem:[#allocation3 + $0xc8] sm:$0x1] %v510_v30 }
 0x24e   : > { %10406 = vmatmul.mubr.bf16.gmra.mrb[16].mxu0 %v12926_v24  ;;  %v417_v24 = vsel %vm11861_vm3, 0, %v416_v62  ;;  %v408_v62 = vsel %vm11861_vm3, 0, %v407_v59  ;;  %v4707_v8 = vld [vmem:[#allocation3 + $0xc] sm:$0xf] }
 0x24f   : > { %10409 = vmatprep.mubr.bf16.mxu0 %v12928_v29  ;;  %v473_v29 = vld [vmem:[#allocation3 + $0x38] sm:$0x1]  ;;  %418 = vst [vmem:[#allocation3 + $0x24] sm:$0x1] %v417_v24  ;;  %409 = vst [vmem:[#allocation3] sm:$0x1] %v408_v62 }
 0x250   : > { %v474_v31 = vsel %vm11873_vm5, 0, %v473_v29  ;;  %v13118_v24 = vld [vmem:[%s14263_s2] ss:$0 sm:$0xff]  ;;  %v4718_v27 = vld [vmem:[#allocation3 + $0x20] sm:$0x1] }
 0x251   : > { %475 = vst [vmem:[#allocation3 + $0x38] sm:$0x1] %v474_v31 }
 0x256   : > { %10410 = vmatmul.mubr.bf16.gmra.mrb[20].mxu0 %v12943_v2  ;;  %v11631_v2 = vld [vmem:[%s14264_s3 + $0xf8] sm:$0xff]  }
 0x257   : > { %10413 = vmatprep.mubr.bf16.mxu0 %v12945_v46  ;;  %v476_v46 = vld [vmem:[#allocation3 + $0x44] sm:$0x1]  ;;  %10435 = vmatprep.subr.bf16.mxu0 %v11631_v2 }
 0x258   : > { %v477_v36 = vsel %vm11873_vm5, 0, %v476_v46  ;;  %10908 = vmatprep.subr.bf16.mxu1 %v11631_v2  ;;  %10436 = vmatpush3.bf16.msra.mxu0 %v11631_v2 }
 0x259   : > { %478 = vst [vmem:[#allocation3 + $0x44] sm:$0x1] %v477_v36  ;;  %10916 = vmatpush3.bf16.msra.mxu1 %v11631_v2 }
 0x25a   : > { %10469 = vmatprep.subr.bf16.mxu1 %v13102_v3 }
 0x25e   : > { %10414 = vmatmul.mubr.bf16.gmra.mrb[24].mxu0 %v12954_v57  ;;  %v485_v57 = vld [vmem:[#allocation3 + $0x68] sm:$0x1] }
 0x25f   : > { %10417 = vmatprep.mubr.bf16.mxu0 %v8972_v11  ;;  %v486_v49 = vsel %vm11873_vm5, 0, %v485_v57  ;;  %v494_v11 = vld [vmem:[#allocation3 + $0x8c] sm:$0x1] }
 0x260   : > { %487 = vst [vmem:[#allocation3 + $0x68] sm:$0x1] %v486_v49  ;;  %v495_v34 = vsel %vm11873_vm5, 0, %v494_v11 }
 0x261   : > { %496 = vst [vmem:[#allocation3 + $0x8c] sm:$0x1] %v495_v34 }
 0x266   : > { %10418 = vmatmul.mubr.bf16.gmra.mrb[28].mxu0 %v8998_v26  ;;  %v500_v26 = vld [vmem:[#allocation3 + $0xa4] sm:$0x1] }
 0x267   : > { %v501_v41 = vsel %vm11873_vm5, 0, %v500_v26 }
 0x268   : > { %502 = vst [vmem:[#allocation3 + $0xa4] sm:$0x1] %v501_v41  ;;  %v4711_v41 = vld [vmem:[#allocation3 + $0x14] sm:$0x1] }
 0x301   : > { %v10391_v29 = vpop.f32.mrb[0].mxu0 }
 0x302   : > { %v4228_v31 = vadd.f32 %v10391_v29, %v13118_v24  ;;  %v4060_v32 = vpop.f32.mrb[1].mxu0 }
 0x303   : > { %v4226_v1 = vadd.f32 %v13118_v24, %v4060_v32  ;;  %v10392_v37 = vpop.f32.mrb[2].mxu0 }
 0x304   : > { %v4260_v23 = vmax.f32 %v4228_v31, 0.0  ;;  %v4229_v52 = vadd.f32 %v10392_v37, %v13118_v24  ;;  %v4063_v25 = vpop.f32.mrb[3].mxu0 }
 0x305   : > { %v4258_v42 = vmax.f32 %v4226_v1, 0.0  ;;  %v4227_v7 = vadd.f32 %v13118_v24, %v4063_v25 }
 0x306   : > { %v9376_v58 = vpack.c.bf16 %v4260_v23, %v4260_v23  ;;  %v4261_v35 = vmax.f32 %v4229_v52, 0.0 }
 0x307   : > { %v9374_v16 = vpack.c.bf16 %v4258_v42, %v4258_v42  ;;  %v4259_v2 = vmax.f32 %v4227_v7, 0.0  ;;  %v4728_v7 = vld [vmem:[#allocation3 + $0x30] sm:$0xf] }
 0x308   : > { %v4404_v46 = vshrl.u32 %v9376_v58, 16  ;;  %v9377_v36 = vpack.c.bf16 %v4261_v35, %v4261_v35  ;;  %v4407_v45 = vshll.u32 %v9376_v58, 16 }
 0x309   : > { %v4387_v63 = vshrl.u32 %v9374_v16, 16  ;;  %v4390_v17 = vshll.u32 %v9374_v16, 16  ;;  %v9375_v53 = vpack.c.bf16 %v4259_v2, %v4259_v2  ;;  %v10395_v57 = vpop.f32.mrb[4].mxu0 }
 0x30a   : > { %v4406_v49 = vrot.slane %v4404_v46, 7  ;;  %v4412_v48 = vshrl.u32 %v9377_v36, 16  ;;  %v4415_v9 = vshll.u32 %v9377_v36, 16  ;;  %v4232_v15 = vadd.f32 %v10395_v57, %v13118_v24  ;;  %v4076_v50 = vpop.f32.mrb[5].mxu0 }
 0x30b   : > { %v4389_v60 = vrot.slane %v4387_v63, 7  ;;  %v4395_v18 = vshrl.u32 %v9375_v53, 16  ;;  %v4398_v33 = vshll.u32 %v9375_v53, 16  ;;  %v4230_v12 = vadd.f32 %v13118_v24, %v4076_v50  ;;  %v10396_v61 = vpop.f32.mrb[6].mxu0 }
 0x30c   : > { %v4409_v51 = vor.u32 %v4407_v45, %v4406_v49  ;;  %v4410_v39 = vrot.slane %v4406_v49, 4  ;;  %v4414_v4 = vrot.slane %v4412_v48, 7  ;;  %v4264_v44 = vmax.f32 %v4232_v15, 0.0  ;;  %v4079_v5 = vpop.f32.mrb[7].mxu0  ;;  %v4721_v45 = vld [vmem:[#allocation3 + $0x24] sm:$0xf] }
 0x30d   : > { %v4392_v11 = vor.u32 %v4390_v17, %v4389_v60  ;;  %v4393_v34 = vrot.slane %v4389_v60, 4  ;;  %v4397_v38 = vrot.slane %v4395_v18, 7  ;;  %v4262_v40 = vmax.f32 %v4230_v12, 0.0 }
 0x30e   : > { %v4715_v55 = vsel %vm11898_vm8, %v4409_v51, %v4714_v43  ;;  %v4417_v21 = vor.u32 %v4415_v9, %v4414_v4  ;;  %v4419_v26 = vrot.slane %v4414_v4, 4  ;;  %v9380_v10 = vpack.c.bf16 %v4264_v44, %v4264_v44  ;;  %v4732_v44 = vld [vmem:[#allocation3 + $0x38] sm:$0x1] }
 0x30f   : > { %4716 = vst [vmem:[#allocation3 + $0x18] sm:$0xf] %v4715_v55  ;;  %v4708_v28 = vsel %vm11898_vm8, %v4392_v11, %v4707_v8  ;;  %v4400_v13 = vor.u32 %v4398_v33, %v4397_v38  ;;  %v4402_v19 = vrot.slane %v4397_v38, 4  ;;  %v9378_v47 = vpack.c.bf16 %v4262_v40, %v4262_v40 }
 0x310   : > { %4709 = vst [vmem:[#allocation3 + $0xc] sm:$0xf] %v4708_v28  ;;  %v4418_v22 = vsel %vm11886_vm7, %v4410_v39, %v4417_v21  ;;  %v4719_v20 = vsel %vm11861_vm3, %v4419_v26, %v4718_v27  ;;  %v4438_v59 = vshrl.u32 %v9380_v10, 16  ;;  %v4441_v31 = vshll.u32 %v9380_v10, 16 }
 0x311   : > { %4717 = vst [vmem:[#allocation3 + $0x1c] sm:$0xf] %v4418_v22  ;;  %4720 = vst [vmem:[#allocation3 + $0x20] sm:$0x1] %v4719_v20  ;;  %v4401_v62 = vsel %vm11886_vm7, %v4393_v34, %v4400_v13  ;;  %v4712_v29 = vsel %vm11861_vm3, %v4402_v19, %v4711_v41  ;;  %v4421_v32 = vshrl.u32 %v9378_v47, 16  ;;  %v10399_v1 = vpop.f32.mrb[8].mxu0  ;;  %v4233_v23 = vadd.f32 %v10396_v61, %v13118_v24 }
 0x312   : > { %4710 = vst [vmem:[#allocation3 + $0x10] sm:$0xf] %v4401_v62  ;;  %4713 = vst [vmem:[#allocation3 + $0x14] sm:$0x1] %v4712_v29  ;;  %v13138_v37 = vrot.slane %v4438_v59, 7  ;;  %v4231_v52 = vadd.f32 %v13118_v24, %v4079_v5  ;;  %v4236_v25 = vadd.f32 %v10399_v1, %v13118_v24  ;;  %v4092_v42 = vpop.f32.mrb[9].mxu0 }
 0x313   : > { %v13143_v58 = vrot.slane %v4421_v32, 7  ;;  %v4424_v35 = vshll.u32 %v9378_v47, 16  ;;  %v4234_v16 = vadd.f32 %v13118_v24, %v4092_v42  ;;  %v10400_v2 = vpop.f32.mrb[10].mxu0  ;;  %v4265_v63 = vmax.f32 %v4233_v23, 0.0  ;;  %v4725_v5 = vld [vmem:[#allocation3 + $0x2c] sm:$0x1] }
 0x314   : > { %v4443_v46 = vor.u32 %v4441_v31, %v13138_v37  ;;  %v4444_v36 = vrot.slane %v13138_v37, 4  ;;  %v4263_v17 = vmax.f32 %v4231_v52, 0.0  ;;  %v4095_v53 = vpop.f32.mrb[11].mxu0  ;;  %v4268_v48 = vmax.f32 %v4236_v25, 0.0  ;;  %v4742_v41 = vld [vmem:[#allocation3 + $0x48] sm:$0xf] }
 0x315   : > { %v4426_v57 = vor.u32 %v4424_v35, %v13143_v58  ;;  %v4427_v49 = vrot.slane %v13143_v58, 4  ;;  %v4266_v9 = vmax.f32 %v4234_v16, 0.0  ;;  %v9381_v50 = vpack.c.bf16 %v4265_v63, %v4265_v63  ;;  %v4735_v37 = vld [vmem:[#allocation3 + $0x3c] sm:$0xf] }
 0x316   : > { %v4729_v15 = vsel %vm11898_vm8, %v4443_v46, %v4728_v7  ;;  %v9379_v43 = vpack.c.bf16 %v4263_v17, %v4263_v17  ;;  %v4237_v60 = vadd.f32 %v10400_v2, %v13118_v24  ;;  %v9384_v33 = vpack.c.bf16 %v4268_v48, %v4268_v48 }
 0x317   : > { %4730 = vst [vmem:[#allocation3 + $0x30] sm:$0xf] %v4729_v15  ;;  %v4722_v18 = vsel %vm11898_vm8, %v4426_v57, %v4721_v45  ;;  %v9382_v12 = vpack.c.bf16 %v4266_v9, %v4266_v9  ;;  %v4235_v61 = vadd.f32 %v13118_v24, %v4095_v53  ;;  %v4446_v51 = vshrl.u32 %v9381_v50, 16 }
 0x318   : > { %4723 = vst [vmem:[#allocation3 + $0x24] sm:$0xf] %v4722_v18  ;;  %v4449_v39 = vshll.u32 %v9381_v50, 16  ;;  %v4429_v8 = vshrl.u32 %v9379_v43, 16  ;;  %v4432_v4 = vshll.u32 %v9379_v43, 16  ;;  %v4472_v11 = vshrl.u32 %v9384_v33, 16 }
 0x319   : > { %v4475_v34 = vshll.u32 %v9384_v33, 16  ;;  %v4455_v27 = vshrl.u32 %v9382_v12, 16  ;;  %v4458_v38 = vshll.u32 %v9382_v12, 16  ;;  %v10403_v40 = vpop.f32.mrb[12].mxu0  ;;  %v13156_v55 = vld [vmem:[#allocation3 + $0xc] sm:$0xff]   ;;  %v4448_v21 = vrot.slane %v4446_v51, 7 }
 0x31a   : > { %v4431_v26 = vrot.slane %v4429_v8, 7  ;;  %v4269_v10 = vmax.f32 %v4237_v60, 0.0  ;;  %v4267_v28 = vmax.f32 %v4235_v61, 0.0  ;;  %v4108_v13 = vpop.f32.mrb[13].mxu0  ;;  %v13158_v19 = vld [vmem:[#allocation3 + $0x18] sm:$0xff]   ;;  %v13160_v47 = vrot.slane %v4472_v11, 7  ;;  %10437 = vmatprep.mubr.bf16.mxu0 %v13156_v55 }
 0x31b   : > { %v13162_v22 = vrot.slane %v4455_v27, 7  ;;  %v4240_v20 = vadd.f32 %v10403_v40, %v13118_v24  ;;  %v4238_v59 = vadd.f32 %v13118_v24, %v4108_v13  ;;  %v10404_v62 = vpop.f32.mrb[14].mxu0  ;;  %v4451_v29 = vor.u32 %v4449_v39, %v4448_v21  ;;  %10438 = vmatmul.mubr.bf16.vlgmr.msra.gmra.mrb[32].mxu0 %v13158_v19  ;;  %v4746_v60 = vld [vmem:[#allocation3 + $0x50] sm:$0x1]  ;;  %v4756_v13 = vld [vmem:[#allocation3 + $0x60] sm:$0xf] }
 0x31c   : > { %v4453_v31 = vrot.slane %v4448_v21, 4  ;;  %v4434_v32 = vor.u32 %v4432_v4, %v4431_v26  ;;  %v4436_v1 = vrot.slane %v4431_v26, 4  ;;  %v4111_v23 = vpop.f32.mrb[15].mxu0  ;;  %v4477_v52 = vor.u32 %v4475_v34, %v13160_v47  ;;  %v4739_v4 = vld [vmem:[#allocation3 + $0x44] sm:$0x1] }
 0x31d   : > { %v4478_v25 = vrot.slane %v13160_v47, 4  ;;  %v4460_v42 = vor.u32 %v4458_v38, %v13162_v22  ;;  %v4461_v7 = vrot.slane %v13162_v22, 4  ;;  %v4452_v58 = vsel %vm11886_vm7, %v4444_v36, %v4451_v29  ;;  %v4749_v47 = vld [vmem:[#allocation3 + $0x54] sm:$0xf] }
 0x31e   : > { %v4733_v35 = vsel %vm11861_vm3, %v4453_v31, %v4732_v44  ;;  %v4435_v16 = vsel %vm11886_vm7, %v4427_v49, %v4434_v32  ;;  %v4726_v2 = vsel %vm11861_vm3, %v4436_v1, %v4725_v5  ;;  %4731 = vst [vmem:[#allocation3 + $0x34] sm:$0xf] %v4452_v58  ;;  %v4743_v46 = vsel %vm11898_vm8, %v4477_v52, %v4742_v41 }
 0x31f   : > { %4734 = vst [vmem:[#allocation3 + $0x38] sm:$0x1] %v4733_v35  ;;  %4724 = vst [vmem:[#allocation3 + $0x28] sm:$0xf] %v4435_v16  ;;  %v4736_v45 = vsel %vm11898_vm8, %v4460_v42, %v4735_v37  ;;  %v9385_v36 = vpack.c.bf16 %v4269_v10, %v4269_v10  ;;  %v9383_v63 = vpack.c.bf16 %v4267_v28, %v4267_v28  ;;  %v4272_v17 = vmax.f32 %v4240_v20, 0.0 }
 0x320   : > { %4727 = vst [vmem:[#allocation3 + $0x2c] sm:$0x1] %v4726_v2  ;;  %4744 = vst [vmem:[#allocation3 + $0x48] sm:$0xf] %v4743_v46  ;;  %v4270_v53 = vmax.f32 %v4238_v59, 0.0  ;;  %v4241_v57 = vadd.f32 %v10404_v62, %v13118_v24  ;;  %v4239_v49 = vadd.f32 %v13118_v24, %v4111_v23 }
 0x321   : > { %4737 = vst [vmem:[#allocation3 + $0x3c] sm:$0xf] %v4736_v45  ;;  %v4480_v48 = vshrl.u32 %v9385_v36, 16  ;;  %v4483_v9 = vshll.u32 %v9385_v36, 16  ;;  %v4463_v15 = vshrl.u32 %v9383_v63, 16  ;;  %v4466_v50 = vshll.u32 %v9383_v63, 16 }
 0x322   : > { %v10407_v43 = vpop.f32.mrb[16].mxu0  ;;  %v9388_v18 = vpack.c.bf16 %v4272_v17, %v4272_v17  ;;  %v9386_v33 = vpack.c.bf16 %v4270_v53, %v4270_v53  ;;  %v4273_v12 = vmax.f32 %v4241_v57, 0.0  ;;  %v4271_v61 = vmax.f32 %v4239_v49, 0.0 }
 0x323   : > { %v4124_v51 = vpop.f32.mrb[17].mxu0  ;;  %v4482_v39 = vrot.slane %v4480_v48, 7  ;;  %v4465_v8 = vrot.slane %v4463_v15, 7  ;;  %v4244_v44 = vadd.f32 %v10407_v43, %v13118_v24  ;;  %v4753_v43 = vld [vmem:[#allocation3 + $0x5c] sm:$0x1] }
 0x324   : > { %v4242_v5 = vadd.f32 %v13118_v24, %v4124_v51  ;;  %v10408_v11 = vpop.f32.mrb[18].mxu0  ;;  %v4506_v34 = vshrl.u32 %v9388_v18, 16  ;;  %v4509_v27 = vshll.u32 %v9388_v18, 16  ;;  %v4489_v38 = vshrl.u32 %v9386_v33, 16 }
 0x325   : > { %v4492_v40 = vshll.u32 %v9386_v33, 16  ;;  %v4127_v21 = vpop.f32.mrb[19].mxu0  ;;  %v4485_v26 = vor.u32 %v4483_v9, %v4482_v39  ;;  %v4487_v41 = vrot.slane %v4482_v39, 4  ;;  %v4468_v10 = vor.u32 %v4466_v50, %v4465_v8  ;;  %v13190_v31 = vld [vmem:[#allocation3 + $0x30] sm:$0xff]   ;;  %v4760_v50 = vld [vmem:[#allocation3 + $0x68] sm:$0x1] }
 0x326   : > { %v4470_v28 = vrot.slane %v4465_v8, 4  ;;  %v4508_v22 = vrot.slane %v4506_v34, 7  ;;  %v4491_v20 = vrot.slane %v4489_v38, 7  ;;  %v9389_v59 = vpack.c.bf16 %v4273_v12, %v4273_v12  ;;  %v13188_v29 = vld [vmem:[#allocation3 + $0x24] sm:$0xff]  }
 0x327   : > { %v9387_v62 = vpack.c.bf16 %v4271_v61, %v4271_v61  ;;  %v4486_v32 = vsel %vm11886_vm7, %v4478_v25, %v4485_v26  ;;  %v4747_v1 = vsel %vm11861_vm3, %v4487_v41, %v4746_v60  ;;  %v4469_v37 = vsel %vm11886_vm7, %v4461_v7, %v4468_v10  ;;  %10441 = vmatprep.mubr.bf16.mxu0 %v13188_v29  ;;  %v4770_v26 = vld [vmem:[#allocation3 + $0x78] sm:$0xf] }
 0x328   : > { %v4740_v23 = vsel %vm11861_vm3, %v4470_v28, %v4739_v4  ;;  %4745 = vst [vmem:[#allocation3 + $0x4c] sm:$0xf] %v4486_v32  ;;  %4748 = vst [vmem:[#allocation3 + $0x50] sm:$0x1] %v4747_v1  ;;  %v4511_v52 = vor.u32 %v4509_v27, %v4508_v22  ;;  %v4512_v42 = vrot.slane %v4508_v22, 4  ;;  %v4494_v58 = vor.u32 %v4492_v40, %v4491_v20 }
 0x329   : > { %4738 = vst [vmem:[#allocation3 + $0x40] sm:$0xf] %v4469_v37  ;;  %4741 = vst [vmem:[#allocation3 + $0x44] sm:$0x1] %v4740_v23  ;;  %v4495_v35 = vrot.slane %v4491_v20, 4  ;;  %v4514_v25 = vshrl.u32 %v9389_v59, 16  ;;  %10442 = vmatmul.mubr.bf16.gmra.mrb[36].mxu0 %v13190_v31  ;;  %v4245_v48 = vadd.f32 %v10408_v11, %v13118_v24  ;;  %v4243_v9 = vadd.f32 %v13118_v24, %v4127_v21 }
 0x32a   : > { %v4517_v16 = vshll.u32 %v9389_v59, 16  ;;  %v4497_v2 = vshrl.u32 %v9387_v62, 16  ;;  %v4500_v46 = vshll.u32 %v9387_v62, 16  ;;  %v10411_v7 = vpop.f32.mrb[20].mxu0  ;;  %v4757_v45 = vsel %vm11898_vm8, %v4511_v52, %v4756_v13  ;;  %v4763_v20 = vld [vmem:[#allocation3 + $0x6c] sm:$0xf] }
 0x32b   : > { %v4750_v36 = vsel %vm11898_vm8, %v4494_v58, %v4749_v47  ;;  %v4276_v63 = vmax.f32 %v4244_v44, 0.0  ;;  %v4274_v17 = vmax.f32 %v4242_v5, 0.0  ;;  %v4140_v53 = vpop.f32.mrb[21].mxu0  ;;  %4758 = vst [vmem:[#allocation3 + $0x60] sm:$0xf] %v4757_v45  ;;  %v4516_v57 = vrot.slane %v4514_v25, 7 }
 0x32c   : > { %4751 = vst [vmem:[#allocation3 + $0x54] sm:$0xf] %v4750_v36  ;;  %v4499_v49 = vrot.slane %v4497_v2, 7  ;;  %v10412_v15 = vpop.f32.mrb[22].mxu0  ;;  %v4248_v33 = vadd.f32 %v10411_v7, %v13118_v24  ;;  %v4246_v12 = vadd.f32 %v13118_v24, %v4140_v53  ;;  %v4277_v13 = vmax.f32 %v4245_v48, 0.0 }
 0x32d   : > { %v9392_v60 = vpack.c.bf16 %v4276_v63, %v4276_v63  ;;  %v9390_v18 = vpack.c.bf16 %v4274_v17, %v4274_v17  ;;  %v4143_v61 = vpop.f32.mrb[23].mxu0  ;;  %v4519_v51 = vor.u32 %v4517_v16, %v4516_v57  ;;  %v4521_v39 = vrot.slane %v4516_v57, 4 }
 0x32e   : > { %v4502_v8 = vor.u32 %v4500_v46, %v4499_v49  ;;  %v4504_v4 = vrot.slane %v4499_v49, 4  ;;  %v4275_v47 = vmax.f32 %v4243_v9, 0.0  ;;  %v4280_v59 = vmax.f32 %v4248_v33, 0.0 }
 0x32f   : > { %v4540_v44 = vshrl.u32 %v9392_v60, 16  ;;  %v4543_v5 = vshll.u32 %v9392_v60, 16  ;;  %v4523_v34 = vshrl.u32 %v9390_v18, 16  ;;  %v4526_v11 = vshll.u32 %v9390_v18, 16  ;;  %v13224_v22 = vld [vmem:[#allocation3 + $0x48] sm:$0xff]  }
 0x330   : > { %v4520_v27 = vsel %vm11886_vm7, %v4512_v42, %v4519_v51  ;;  %v4761_v38 = vsel %vm11861_vm3, %v4521_v39, %v4760_v50  ;;  %v4503_v40 = vsel %vm11886_vm7, %v4495_v35, %v4502_v8  ;;  %v4754_v21 = vsel %vm11861_vm3, %v4504_v4, %v4753_v43  ;;  %v13218_v41 = vld [vmem:[#allocation3 + $0x3c] sm:$0xff]   ;;  %v4767_v50 = vld [vmem:[#allocation3 + $0x74] sm:$0x1]  ;;  %v4784_v51 = vld [vmem:[#allocation3 + $0x90] sm:$0xf] }
 0x331   : > { %4759 = vst [vmem:[#allocation3 + $0x64] sm:$0xf] %v4520_v27  ;;  %4762 = vst [vmem:[#allocation3 + $0x68] sm:$0x1] %v4761_v38  ;;  %v13220_v10 = vrot.slane %v4540_v44, 7  ;;  %v13222_v28 = vrot.slane %v4523_v34, 7  ;;  %v4249_v32 = vadd.f32 %v10412_v15, %v13118_v24  ;;  %v4247_v1 = vadd.f32 %v13118_v24, %v4143_v61  ;;  %10445 = vmatprep.mubr.bf16.mxu0 %v13218_v41 }
 0x332   : > { %4752 = vst [vmem:[#allocation3 + $0x58] sm:$0xf] %v4503_v40  ;;  %4755 = vst [vmem:[#allocation3 + $0x5c] sm:$0x1] %v4754_v21  ;;  %v4278_v62 = vmax.f32 %v4246_v12, 0.0  ;;  %v10415_v37 = vpop.f32.mrb[24].mxu0  ;;  %10446 = vmatmul.mubr.bf16.gmra.mrb[40].mxu0 %v13224_v22  ;;  %v9393_v25 = vpack.c.bf16 %v4277_v13, %v4277_v13  ;;  %v9391_v16 = vpack.c.bf16 %v4275_v47, %v4275_v47 }
 0x333   : > { %v4545_v23 = vor.u32 %v4543_v5, %v13220_v10  ;;  %v4546_v52 = vrot.slane %v13220_v10, 4  ;;  %v4528_v42 = vor.u32 %v4526_v11, %v13222_v28  ;;  %v4529_v58 = vrot.slane %v13222_v28, 4  ;;  %v4156_v35 = vpop.f32.mrb[25].mxu0  ;;  %v4774_v15 = vld [vmem:[#allocation3 + $0x80] sm:$0x1] }
 0x334   : > { %v9396_v2 = vpack.c.bf16 %v4280_v59, %v4280_v59  ;;  %v9394_v46 = vpack.c.bf16 %v4278_v62, %v4278_v62  ;;  %v13234_v7 = vpop.f32.mrb[26].mxu0  ;;  %v4281_v63 = vmax.f32 %v4249_v32, 0.0  ;;  %v4279_v17 = vmax.f32 %v4247_v1, 0.0  ;;  %v4777_v10 = vld [vmem:[#allocation3 + $0x84] sm:$0xf] }
 0x335   : > { %v4771_v45 = vsel %vm11898_vm8, %v4545_v23, %v4770_v26  ;;  %v4764_v36 = vsel %vm11898_vm8, %v4528_v42, %v4763_v20  ;;  %v4159_v53 = vpop.f32.mrb[27].mxu0  ;;  %v4548_v57 = vshrl.u32 %v9393_v25, 16  ;;  %v4551_v49 = vshll.u32 %v9393_v25, 16 }
 0x336   : > { %4772 = vst [vmem:[#allocation3 + $0x78] sm:$0xf] %v4771_v45  ;;  %4765 = vst [vmem:[#allocation3 + $0x6c] sm:$0xf] %v4764_v36  ;;  %v4531_v48 = vshrl.u32 %v9391_v16, 16  ;;  %v4534_v9 = vshll.u32 %v9391_v16, 16  ;;  %v9397_v39 = vpack.c.bf16 %v4281_v63, %v4281_v63  ;;  %v9395_v8 = vpack.c.bf16 %v4279_v17, %v4279_v17 }
 0x337   : > { %v4574_v43 = vshrl.u32 %v9396_v2, 16  ;;  %v4577_v60 = vshll.u32 %v9396_v2, 16  ;;  %v4557_v18 = vshrl.u32 %v9394_v46, 16  ;;  %v4560_v33 = vshll.u32 %v9394_v46, 16 }
 0x338   : > { %v4550_v12 = vrot.slane %v4548_v57, 7  ;;  %v4533_v61 = vrot.slane %v4531_v48, 7  ;;  %v4252_v34 = vadd.f32 %v10415_v37, %v13118_v24  ;;  %v4250_v11 = vadd.f32 %v13118_v24, %v4156_v35  ;;  %v13246_v27 = vld [vmem:[#allocation3 + $0x60] sm:$0xff]   ;;  %v4788_v48 = vld [vmem:[#allocation3 + $0x98] sm:$0x1] }
 0x339   : > { %v13240_v4 = vld [vmem:[#allocation3 + $0x54] sm:$0xff]   ;;  %v4576_v44 = vrot.slane %v4574_v43, 7  ;;  %v13242_v5 = vrot.slane %v4557_v18, 7  ;;  %v10419_v28 = vpop.f32.mrb[28].mxu0  ;;  %v4582_v25 = vshrl.u32 %v9397_v39, 16  ;;  %v4585_v16 = vshll.u32 %v9397_v39, 16 }
 0x33a   : > { %v4553_v38 = vor.u32 %v4551_v49, %v4550_v12  ;;  %v4555_v40 = vrot.slane %v4550_v12, 4  ;;  %v4536_v21 = vor.u32 %v4534_v9, %v4533_v61  ;;  %v4538_v26 = vrot.slane %v4533_v61, 4  ;;  %10449 = vmatprep.mubr.bf16.mxu0 %v13240_v4  ;;  %v4172_v62 = vpop.f32.mrb[29].mxu0 }
 0x33b   : > { %v4579_v13 = vor.u32 %v4577_v60, %v4576_v44  ;;  %v4580_v47 = vrot.slane %v4576_v44, 4  ;;  %v4562_v20 = vor.u32 %v4560_v33, %v13242_v5  ;;  %v4563_v59 = vrot.slane %v13242_v5, 4  ;;  %10450 = vmatmul.mubr.bf16.gmra.mrb[44].mxu0 %v13246_v27  ;;  %v13260_v42 = vpop.f32.mrb[30].mxu0  ;;  %v4781_v33 = vld [vmem:[#allocation3 + $0x8c] sm:$0x1] }
 0x33c   : > { %v4554_v32 = vsel %vm11886_vm7, %v4546_v52, %v4553_v38  ;;  %v4775_v1 = vsel %vm11861_vm3, %v4555_v40, %v4774_v15  ;;  %v4537_v37 = vsel %vm11886_vm7, %v4529_v58, %v4536_v21  ;;  %v4768_v23 = vsel %vm11861_vm3, %v4538_v26, %v4767_v50  ;;  %v13266_v2 = vpop.f32.mrb[31].mxu0  ;;  %v4798_v5 = vld [vmem:[#allocation3 + $0xa8] sm:$0xf]  ;;  %v11643_v38 = vld [vmem:[%s14264_s3 + $0x8] sm:$0xff]  }
 0x33d   : > { %4773 = vst [vmem:[#allocation3 + $0x7c] sm:$0xf] %v4554_v32  ;;  %4776 = vst [vmem:[#allocation3 + $0x80] sm:$0x1] %v4775_v1  ;;  %v4785_v35 = vsel %vm11898_vm8, %v4579_v13, %v4784_v51  ;;  %v4778_v52 = vsel %vm11898_vm8, %v4562_v20, %v4777_v10  ;;  %v4565_v58 = vshrl.u32 %v9395_v8, 16  ;;  %v4568_v46 = vshll.u32 %v9395_v8, 16 }
 0x33e   : > { %4766 = vst [vmem:[#allocation3 + $0x70] sm:$0xf] %v4537_v37  ;;  %4769 = vst [vmem:[#allocation3 + $0x74] sm:$0x1] %v4768_v23  ;;  %v4284_v45 = vmax.f32 %v4252_v34, 0.0  ;;  %v4282_v36 = vmax.f32 %v4250_v11, 0.0  ;;  %v4253_v17 = vadd.f32 %v13234_v7, %v13118_v24  ;;  %v4251_v57 = vadd.f32 %v13118_v24, %v4159_v53 }
 0x33f   : > { %4786 = vst [vmem:[#allocation3 + $0x90] sm:$0xf] %v4785_v35  ;;  %4779 = vst [vmem:[#allocation3 + $0x84] sm:$0xf] %v4778_v52  ;;  %v4584_v63 = vrot.slane %v4582_v25, 7  ;;  %v4256_v49 = vadd.f32 %v10419_v28, %v13118_v24  ;;  %v4567_v9 = vrot.slane %v4565_v58, 7  ;;  %v4254_v43 = vadd.f32 %v13118_v24, %v4172_v62 }
 0x340   : > { %v9400_v15 = vpack.c.bf16 %v4284_v45, %v4284_v45  ;;  %v9398_v50 = vpack.c.bf16 %v4282_v36, %v4282_v36  ;;  %v4285_v12 = vmax.f32 %v4253_v17, 0.0  ;;  %v4283_v61 = vmax.f32 %v4251_v57, 0.0  ;;  %v4791_v10 = vld [vmem:[#allocation3 + $0x9c] sm:$0xf]  ;;  %v4802_v57 = vld [vmem:[#allocation3 + $0xb0] sm:$0x1] }
 0x341   : > { %v4587_v60 = vor.u32 %v4585_v16, %v4584_v63  ;;  %v4589_v18 = vrot.slane %v4584_v63, 4  ;;  %v4570_v51 = vor.u32 %v4568_v46, %v4567_v9  ;;  %v4572_v39 = vrot.slane %v4567_v9, 4 }
 0x342   : > { %v4608_v8 = vshrl.u32 %v9400_v15, 16  ;;  %v4611_v44 = vshll.u32 %v9400_v15, 16  ;;  %v4591_v34 = vshrl.u32 %v9398_v50, 16  ;;  %v4594_v11 = vshll.u32 %v9398_v50, 16  ;;  %v11646_v15 = vld [vmem:[%s14264_s3 + $0x10] sm:$0xff]  }
 0x343   : > { %v4588_v7 = vsel %vm11886_vm7, %v4580_v47, %v4587_v60  ;;  %v4789_v53 = vsel %vm11861_vm3, %v4589_v18, %v4788_v48  ;;  %v4571_v40 = vsel %vm11886_vm7, %v4563_v59, %v4570_v51  ;;  %v4782_v21 = vsel %vm11861_vm3, %v4572_v39, %v4781_v33 }
 0x344   : > { %4787 = vst [vmem:[#allocation3 + $0x94] sm:$0xf] %v4588_v7  ;;  %4790 = vst [vmem:[#allocation3 + $0x98] sm:$0x1] %v4789_v53  ;;  %v4610_v26 = vrot.slane %v4608_v8, 7  ;;  %v9401_v28 = vpack.c.bf16 %v4285_v12, %v4285_v12  ;;  %v4593_v47 = vrot.slane %v4591_v34, 7  ;;  %v9399_v20 = vpack.c.bf16 %v4283_v61, %v4283_v61 }
 0x345   : > { %v13284_v13 = vld [vmem:[#allocation3 + $0x6c] sm:$0xff]   ;;  %4780 = vst [vmem:[#allocation3 + $0x88] sm:$0xf] %v4571_v40  ;;  %4783 = vst [vmem:[#allocation3 + $0x8c] sm:$0x1] %v4782_v21  ;;  %v4288_v62 = vmax.f32 %v4256_v49, 0.0  ;;  %v4257_v48 = vadd.f32 %v13260_v42, %v13118_v24  ;;  %v4255_v9 = vadd.f32 %v13118_v24, %v13266_v2 }
 0x346   : > { %v4286_v32 = vmax.f32 %v4254_v43, 0.0  ;;  %v13286_v1 = vld [vmem:[#allocation3 + $0x78] sm:$0xff]   ;;  %v4613_v37 = vor.u32 %v4611_v44, %v4610_v26  ;;  %v4614_v23 = vrot.slane %v4610_v26, 4  ;;  %v4616_v35 = vshrl.u32 %v9401_v28, 16  ;;  %10453 = vmatprep.mubr.bf16.mxu1 %v13284_v13  ;;  %v4795_v43 = vld [vmem:[#allocation3 + $0xa4] sm:$0x1] }
 0x347   : > { %v4619_v59 = vshll.u32 %v9401_v28, 16  ;;  %v4596_v52 = vor.u32 %v4594_v11, %v4593_v47  ;;  %v4597_v25 = vrot.slane %v4593_v47, 4  ;;  %v4599_v16 = vshrl.u32 %v9399_v20, 16  ;;  %10454 = vmatmul.mubr.bf16.vlgmr.msra.gmra.mrb[0].mxu1 %v13286_v1  ;;  %v4812_v53 = vld [vmem:[#allocation3 + $0xc0] sm:$0xf] }
 0x348   : > { %v4602_v58 = vshll.u32 %v9399_v20, 16  ;;  %v4799_v46 = vsel %vm11898_vm8, %v4613_v37, %v4798_v5  ;;  %v4618_v45 = vrot.slane %v4616_v35, 7  ;;  %v9404_v36 = vpack.c.bf16 %v4288_v62, %v4288_v62  ;;  %10470 = vmatpush3.bf16.msra.mxu1 %v13102_v3  ;;  %v4805_v21 = vld [vmem:[#allocation3 + $0xb4] sm:$0xf]  ;;  %v11650_v37 = vld [vmem:[%s14264_s3 + $0x20] sm:$0xff]  }
 0x349   : > { %v9402_v63 = vpack.c.bf16 %v4286_v32, %v4286_v32  ;;  %4800 = vst [vmem:[#allocation3 + $0xa8] sm:$0xf] %v4799_v46  ;;  %v4792_v17 = vsel %vm11898_vm8, %v4596_v52, %v4791_v10  ;;  %v4601_v49 = vrot.slane %v4599_v16, 7  ;;  %10471 = vmatprep.subr.bf16.mxu1 %v11643_v38  ;;  %v4289_v39 = vmax.f32 %v4257_v48, 0.0 }
 0x34a   : > { %4793 = vst [vmem:[#allocation3 + $0x9c] sm:$0xf] %v4792_v17  ;;  %v4621_v50 = vor.u32 %v4619_v59, %v4618_v45  ;;  %v4623_v3 = vrot.slane %v4618_v45, 4  ;;  %v4642_v60 = vshrl.u32 %v9404_v36, 16  ;;  %v4645_v18 = vshll.u32 %v9404_v36, 16 }
 0x34b   : > { %v4604_v33 = vor.u32 %v4602_v58, %v4601_v49  ;;  %v4606_v12 = vrot.slane %v4601_v49, 4  ;;  %v4625_v61 = vshrl.u32 %v9402_v63, 16  ;;  %v4628_v51 = vshll.u32 %v9402_v63, 16  ;;  %v13312_v11 = vld [vmem:[#allocation3 + $0x90] sm:$0xff]   ;;  %v4816_v59 = vld [vmem:[#allocation3 + $0xc8] sm:$0x1] }
 0x34c   : > { %v4622_v42 = vsel %vm11886_vm7, %v4614_v23, %v4621_v50  ;;  %v4803_v24 = vsel %vm11861_vm3, %v4623_v3, %v4802_v57  ;;  %v4644_v2 = vrot.slane %v4642_v60, 7  ;;  %10472 = vmatpush3.bf16.msra.mxu1 %v11643_v38  ;;  %v13306_v8 = vld [vmem:[#allocation3 + $0x84] sm:$0xff]   ;;  %v4287_v34 = vmax.f32 %v4255_v9, 0.0  ;;  %v4809_v45 = vld [vmem:[#allocation3 + $0xbc] sm:$0x1]  ;;  %v11651_v9 = vld [vmem:[%s14264_s3 + $0x28] sm:$0xff]  }
 0x34d   : > { %4801 = vst [vmem:[#allocation3 + $0xac] sm:$0xf] %v4622_v42  ;;  %4804 = vst [vmem:[#allocation3 + $0xb0] sm:$0x1] %v4803_v24  ;;  %v4605_v44 = vsel %vm11886_vm7, %v4597_v25, %v4604_v33  ;;  %v4796_v7 = vsel %vm11861_vm3, %v4606_v12, %v4795_v43  ;;  %v4627_v5 = vrot.slane %v4625_v61, 7  ;;  %10473 = vmatprep.subr.bf16.mxu1 %v11646_v15  ;;  %v11647_v38 = vld [vmem:[%s14264_s3 + $0x18] sm:$0xff]   ;;  %10457 = vmatprep.mubr.bf16.mxu1 %v13306_v8 }
 0x34e   : > { %4794 = vst [vmem:[#allocation3 + $0xa0] sm:$0xf] %v4605_v44  ;;  %4797 = vst [vmem:[#allocation3 + $0xa4] sm:$0x1] %v4796_v7  ;;  %v4647_v40 = vor.u32 %v4645_v18, %v4644_v2  ;;  %v9405_v26 = vpack.c.bf16 %v4289_v39, %v4289_v39  ;;  %v9403_v28 = vpack.c.bf16 %v4287_v34, %v4287_v34  ;;  %v4648_v16 = vrot.slane %v4644_v2, 4  ;;  %v11654_v18 = vld [vmem:[%s14264_s3 + $0x30] sm:$0xff]  }
 0x34f   : > { %v4630_v10 = vor.u32 %v4628_v51, %v4627_v5  ;;  %10458 = vmatmul.mubr.bf16.gmra.mrb[4].mxu1 %v13312_v11  ;;  %v4631_v36 = vrot.slane %v4627_v5, 4  ;;  %v458_v3 = vld [vmem:[#allocation3 + $0xcc] sm:$0x1]  ;;  %v461_v60 = vld [vmem:[#allocation3 + $0x8] sm:$0x1]  ;;  %v11655_v33 = vld [vmem:[%s14264_s3 + $0x38] sm:$0xff]  }
 0x350   : > { %v4813_v47 = vsel %vm11898_vm8, %v4647_v40, %v4812_v53  ;;  %v4650_v20 = vshrl.u32 %v9405_v26, 16  ;;  %10474 = vmatpush3.bf16.msra.mxu1 %v11646_v15  ;;  %v4633_v32 = vshrl.u32 %v9403_v28, 16  ;;  %v4653_v35 = vshll.u32 %v9405_v26, 16  ;;  %v11656_v12 = vld [vmem:[#allocation3] sm:$0xff]   ;;  %v11657_v51 = vld [vmem:[%s14264_s3 + $0x180] sm:$0xff]   ;;  %v11658_v42 = vld [vmem:[%s14264_s3 + $0x188] sm:$0xff]  }
 0x351   : > { %4814 = vst [vmem:[#allocation3 + $0xc0] sm:$0xf] %v4813_v47  ;;  %v4806_v62 = vsel %vm11898_vm8, %v4630_v10, %v4805_v21  ;;  %10475 = vmatprep.subr.bf16.mxu1 %v11647_v38  ;;  %v4636_v25 = vshll.u32 %v9403_v28, 16  ;;  %v459_v43 = vsel %vm11861_vm3, 0, %v458_v3  ;;  %v462_v30 = vsel %vm11873_vm5, 0, %v461_v60  ;;  %v11659_v24 = vld [vmem:[%s14264_s3 + $0x190] sm:$0xff]  }
 0x352   : > { %4807 = vst [vmem:[#allocation3 + $0xb4] sm:$0xf] %v4806_v62  ;;  %v4652_v23 = vrot.slane %v4650_v20, 7  ;;  %v4635_v52 = vrot.slane %v4633_v32, 7  ;;  %460 = vst [vmem:[#allocation3 + $0xcc] sm:$0x1] %v459_v43 }
 0x353   : > { %463 = vst [vmem:[#allocation3 + $0x8] sm:$0x1] %v462_v30  ;;  %v11660_v2 = vld [vmem:[%s14264_s3 + $0x198] sm:$0xff]   ;;  %v11662_v39 = vld [vmem:[%s14264_s3 + $0x1a8] sm:$0xff]   ;;  %v11663_v44 = vld [vmem:[%s14264_s3 + $0x1b0] sm:$0xff]  }
 0x354   : > { %v4655_v58 = vor.u32 %v4653_v35, %v4652_v23  ;;  %v4657_v46 = vrot.slane %v4652_v23, 4  ;;  %10476 = vmatpush3.bf16.msra.mxu1 %v11647_v38  ;;  %v4638_v0 = vor.u32 %v4636_v25, %v4635_v52  ;;  %v4640_v63 = vrot.slane %v4635_v52, 4  ;;  %v13332_v48 = vld [vmem:[#allocation3 + $0xa8] sm:$0xff]   ;;  %v11664_v7 = vld [vmem:[%s14264_s3 + $0x1b8] sm:$0xff]   ;;  %v13403_v5 = vld [vmem:[#allocation3 + $0x34] sm:$0xf] }
 0x355   : > { %v13326_v17 = vld [vmem:[#allocation3 + $0x9c] sm:$0xff]   ;;  %10477 = vmatprep.subr.bf16.mxu1 %v11650_v37  ;;  %v13394_v53 = vld [vmem:[%s14264_s3 + $0x40] sm:$0xff]   ;;  %v7008_v34 = vld [vmem:[#allocation3 + $0x30] sm:$0xe]  ;;  %v7100_v21 = vrot.slane %v13403_v5, 5 }
 0x356   : > { %v4656_v57 = vsel %vm11886_vm7, %v4648_v16, %v4655_v58  ;;  %v4817_v49 = vsel %vm11861_vm3, %v4657_v46, %v4816_v59  ;;  %v4639_v15 = vsel %vm11886_vm7, %v4631_v36, %v4638_v0  ;;  %v4810_v50 = vsel %vm11861_vm3, %v4640_v63, %v4809_v45  ;;  %10461 = vmatprep.mubr.bf16.mxu1 %v13326_v17  ;;  %v13405_v38 = vld [vmem:[#allocation3 + $0x38] sm:$0x1]  ;;  %v13407_v40 = vld [vmem:[#allocation3 + $0x40] sm:$0xf]  ;;  %v13410_v26 = vld [vmem:[#allocation3 + $0x4c] sm:$0xf] }
 0x357   : > { %4815 = vst [vmem:[#allocation3 + $0xc4] sm:$0xf] %v4656_v57  ;;  %4818 = vst [vmem:[#allocation3 + $0xc8] sm:$0x1] %v4817_v49  ;;  %10462 = vmatmul.mubr.bf16.gmra.mrb[8].mxu1 %v13332_v48  ;;  %v7009_v10 = vld [vmem:[#allocation3 + $0x3c] sm:$0xe] }
 0x358   : > { %4808 = vst [vmem:[#allocation3 + $0xb8] sm:$0xf] %v4639_v15  ;;  %4811 = vst [vmem:[#allocation3 + $0xbc] sm:$0x1] %v4810_v50  ;;  %10478 = vmatpush3.bf16.msra.mxu1 %v11650_v37  ;;  %v7010_v28 = vld [vmem:[#allocation3 + $0x48] sm:$0xe] }
 0x359   : > { %10479 = vmatprep.subr.bf16.mxu1 %v11651_v9  ;;  %v13413_v47 = vld [vmem:[#allocation3 + $0x44] sm:$0x1]  ;;  %v13415_v20 = vld [vmem:[#allocation3 + $0x50] sm:$0x1]  ;;  %v9208_v62 = vrot.slane %v7008_v34, 9  ;;  %v7102_v37 = vrot.slane %v7100_v21, 4 }
 0x35a   : > { %v13418_v32 = vld [vmem:[#allocation3 + $0x58] sm:$0xf]  ;;  %v7103_v23 = vrot.slane %v13405_v38, 5  ;;  %v7107_v35 = vrot.slane %v13407_v40, 5  ;;  %v13422_v59 = vld [vmem:[#allocation3 + $0x5c] sm:$0x1] }
 0x35b   : > { %v7101_v52 = vsel %vm12808_vm14, %v9208_v62, %v7100_v21  ;;  %v9209_v25 = vrot.slane %v7009_v10, 9  ;;  %v7114_v16 = vrot.slane %v13410_v26, 5  ;;  %v7011_v58 = vld [vmem:[#allocation3 + $0x54] sm:$0xe]  ;;  %v13427_v46 = vld [vmem:[#allocation3 + $0x64] sm:$0xf] }
 0x35c   : > { %10480 = vmatpush3.bf16.msra.mxu1 %v11651_v9  ;;  %v7109_v45 = vrot.slane %v7107_v35, 4  ;;  %v7110_v36 = vrot.slane %v13413_v47, 5  ;;  %v9210_v0 = vrot.slane %v7010_v28, 9  ;;  %v11666_v63 = vld [vmem:[%s14264_s3 + $0x48] sm:$0xff]   ;;  %v13435_v57 = vld [vmem:[#allocation3 + $0x68] sm:$0x1] }
 0x35d   : > { %10481 = vmatprep.subr.bf16.mxu1 %v11654_v18  ;;  %v7108_v9 = vsel %vm12808_vm14, %v9209_v25, %v7107_v35  ;;  %v7116_v15 = vrot.slane %v7114_v16, 4  ;;  %v7117_v50 = vrot.slane %v13415_v20, 5  ;;  %v7012_v3 = vld [vmem:[#allocation3 + $0x60] sm:$0xe]  ;;  %v13442_v43 = vld [vmem:[#allocation3 + $0x70] sm:$0xf] }
 0x35e   : > { %v13355_v61 = vld [vmem:[#allocation3 + $0xc0] sm:$0xff]   ;;  %v7111_v60 = vsel %vm12808_vm14, %v7109_v45, %v7110_v36  ;;  %v7115_v30 = vsel %vm12808_vm14, %v9210_v0, %v7114_v16  ;;  %v9212_v34 = vrot.slane %v7012_v3, 9  ;;  %v7131_v21 = vrot.slane %v13435_v57, 5  ;;  %v7014_v10 = vld [vmem:[#allocation3 + $0x78] sm:$0xe] }
 0x35f   : > { %v13353_v6 = vld [vmem:[#allocation3 + $0xb4] sm:$0xff]   ;;  %v13466_v62 = vld [vmem:[#allocation3 + $0x80] sm:$0x1]  ;;  %v13473_v25 = vld [vmem:[#allocation3 + $0x88] sm:$0xf] }
 0x360   : > { %10465 = vmatprep.mubr.bf16.mxu1 %v13353_v6  ;;  %10482 = vmatpush3.bf16.msra.mxu1 %v11654_v18  ;;  %v9211_v18 = vrot.slane %v7011_v58, 9  ;;  %v11667_v28 = vld [vmem:[%s14264_s3 + $0x50] sm:$0xff]   ;;  %v13483_v36 = vld [vmem:[#allocation3 + $0x94] sm:$0xf] }
 0x361   : > { %10466 = vmatmul.mubr.bf16.gmra.mrb[12].mxu1 %v13355_v61  ;;  %10483 = vmatprep.subr.bf16.mxu1 %v11655_v33 }
 0x362   : > { %10485 = vmatprep.mubr.bf16.mxu1 %v11656_v12  ;;  %v7013_v12 = vld [vmem:[#allocation3 + $0x6c] sm:$0xe] }
 0x363   : > { %v9213_v35 = vrot.slane %v7013_v12, 9  ;;  %v13496_v12 = vld [vmem:[#allocation3 + $0xa4] sm:$0x1] }
 0x364   : > { %10484 = vmatpush3.bf16.msra.mxu1 %v11655_v33  ;;  %v7121_v33 = vrot.slane %v13418_v32, 5 }
 0x365   : > { %10517 = vmatprep.subr.bf16.mxu1 %v11657_v51 }
 0x369   : > { %10486 = vmatmul.mubr.bf16.vlgmr.msra.gmra.mrb[16].mxu1 %v13156_v55  ;;  %v11661_v55 = vld [vmem:[%s14264_s3 + $0x1a0] sm:$0xff]  }
 0x36a   : > { %10489 = vmatprep.mubr.bf16.mxu1 %v13158_v19  ;;  %10518 = vmatpush3.bf16.msra.mxu1 %v11657_v51  ;;  %v13449_v51 = vld [vmem:[#allocation3 + $0x74] sm:$0x1] }
 0x36b   : > { %10519 = vmatprep.subr.bf16.mxu1 %v11658_v42 }
 0x36e   : > { %10520 = vmatpush3.bf16.msra.mxu1 %v11658_v42  ;;  %v13451_v42 = vld [vmem:[#allocation3 + $0x7c] sm:$0xf] }
 0x36f   : > { %10521 = vmatprep.subr.bf16.mxu1 %v11659_v24  ;;  %v7142_v45 = vrot.slane %v13451_v42, 5 }
 0x371   : > { %10490 = vmatmul.mubr.bf16.gmra.mrb[20].mxu1 %v13188_v29 }
 0x372   : > { %10493 = vmatprep.mubr.bf16.mxu1 %v13190_v31  ;;  %10522 = vmatpush3.bf16.msra.mxu1 %v11659_v24  ;;  %v13453_v24 = vcombine.low %v7108_v9, %v7111_v60  ;;  %v9214_v9 = vrot.slane %v7014_v10, 9  ;;  %v7144_v60 = vrot.slane %v7142_v45, 4 }
 0x373   : > { %10523 = vmatprep.subr.bf16.mxu1 %v11660_v2 }
 0x374   : > { %14335 = vst [vmem:[#allocation10_spill] sm:$0xff] %v13453_v24 }
 0x376   : > { %10524 = vmatpush3.bf16.msra.mxu1 %v11660_v2  ;;  %v7118_v2 = vsel %vm12808_vm14, %v7116_v15, %v7117_v50  ;;  %v7015_v15 = vld [vmem:[#allocation3 + $0x84] sm:$0xe]  ;;  %v13489_v50 = vld [vmem:[#allocation3 + $0x98] sm:$0x1] }
 0x377   : > { %10525 = vmatprep.subr.bf16.mxu1 %v11661_v55 }
 0x379   : > { %10494 = vmatmul.mubr.bf16.gmra.mrb[24].mxu1 %v13218_v41 }
 0x37a   : > { %10497 = vmatprep.mubr.bf16.mxu1 %v13224_v22  ;;  %10526 = vmatpush3.bf16.msra.mxu1 %v11661_v55  ;;  %v7124_v55 = vrot.slane %v13422_v59, 5 }
 0x37b   : > { %10527 = vmatprep.subr.bf16.mxu1 %v11662_v39 }
 0x37e   : > { %10528 = vmatpush3.bf16.msra.mxu1 %v11662_v39  ;;  %v7128_v39 = vrot.slane %v13427_v46, 5 }
 0x37f   : > { %10529 = vmatprep.subr.bf16.mxu1 %v11663_v44 }
 0x380   : > { %v7129_v58 = vsel %vm12808_vm14, %v9212_v34, %v7128_v39  ;;  %v13505_v34 = vld [vmem:[#allocation3 + $0xac] sm:$0xf] }
 0x381   : > { %10498 = vmatmul.mubr.bf16.gmra.mrb[28].mxu1 %v13240_v4 }
 0x382   : > { %10501 = vmatprep.mubr.bf16.mxu1 %v13246_v27  ;;  %10530 = vmatpush3.bf16.msra.mxu1 %v11663_v44  ;;  %v13459_v44 = vcombine.low %v7115_v30, %v7118_v2  ;;  %v7145_v30 = vrot.slane %v13466_v62, 5 }
 0x383   : > { %10531 = vmatprep.subr.bf16.mxu1 %v11664_v7 }
 0x384   : > { %14336 = vst [vmem:[#allocation11_spill] sm:$0xff] %v13459_v44  ;;  %v7146_v10 = vsel %vm12808_vm14, %v7144_v60, %v7145_v30  ;;  %v7018_v60 = vld [vmem:[#allocation3 + $0xa8] sm:$0xe]  ;;  %v13525_v30 = vld [vmem:[#allocation3 + $0xb8] sm:$0xf] }
 0x386   : > { %10532 = vmatpush3.bf16.msra.mxu1 %v11664_v7  ;;  %v7123_v7 = vrot.slane %v7121_v33, 4 }
 0x387   : > { %10565 = vmatprep.subr.bf16.mxu1 %v13394_v53 }
 0x388   : > { %v7125_v16 = vsel %vm12808_vm14, %v7123_v7, %v7124_v55  ;;  %v7149_v7 = vrot.slane %v13473_v25, 5 }
 0x389   : > { %10502 = vmatmul.mubr.bf16.gmra.mrb[0].mxu1 %v13284_v13 }
 0x38a   : > { %10505 = vmatprep.mubr.bf16.mxu1 %v13286_v1 }
 0x391   : > { %10506 = vmatmul.mubr.bf16.gmra.mrb[4].mxu1 %v13306_v8 }
 0x392   : > { %10509 = vmatprep.mubr.bf16.mxu1 %v13312_v11 }
 0x399   : > { %10510 = vmatmul.mubr.bf16.gmra.mrb[8].mxu1 %v13326_v17 }
 0x39a   : > { %10513 = vmatprep.mubr.bf16.mxu1 %v13332_v48 }
 0x3a1   : > { %10514 = vmatmul.mubr.bf16.gmra.mrb[12].mxu1 %v13353_v6 }
 0x3a2   : > { %10533 = vmatprep.mubr.bf16.mxu1 %v13158_v19  ;;  %v7104_v19 = vsel %vm12808_vm14, %v7102_v37, %v7103_v23  ;;  %v7122_v37 = vsel %vm12808_vm14, %v9211_v18, %v7121_v33  ;;  %v7130_v23 = vrot.slane %v7128_v39, 4  ;;  %v7016_v18 = vld [vmem:[#allocation3 + $0x90] sm:$0xe]  ;;  %v13494_v33 = vld [vmem:[#allocation3 + $0xa0] sm:$0xf]  ;;  %v7143_v39 = vsel %vm12808_vm14, %v9214_v9, %v7142_v45 }
 0x3a3   : > { %v13437_v49 = vcombine.low %v7101_v52, %v7104_v19  ;;  %v7135_v52 = vrot.slane %v13442_v43, 5  ;;  %v7138_v19 = vrot.slane %v13449_v51, 5  ;;  %v9216_v45 = vrot.slane %v7016_v18, 9 }
 0x3a4   : > { %v7159_v9 = vrot.slane %v13489_v50, 5 }
 0x3a5   : > { %14334 = vst [vmem:[#allocation7_spill] sm:$0xff] %v13437_v49  ;;  %v7137_v0 = vrot.slane %v7135_v52, 4  ;;  %v7136_v2 = vsel %vm12808_vm14, %v9213_v35, %v7135_v52  ;;  %v7017_v35 = vld [vmem:[#allocation3 + $0x9c] sm:$0xe]  ;;  %v11668_v52 = vld [vmem:[%s14264_s3 + $0x58] sm:$0xff]  }
 0x3a6   : > { %v9217_v18 = vrot.slane %v7017_v35, 9 }
 0x3a7   : > { %v7139_v55 = vsel %vm12808_vm14, %v7137_v0, %v7138_v19 }
 0x3a9   : > { %10534 = vmatmul.mubr.bf16.vlgmr.msra.gmra.mrb[16].mxu1 %v13188_v29  ;;  %v13475_v29 = vld [vmem:[#allocation3 + $0x8c] sm:$0x1] }
 0x3aa   : > { %10537 = vmatprep.mubr.bf16.mxu1 %v13190_v31  ;;  %10566 = vmatpush3.bf16.msra.mxu1 %v13394_v53  ;;  %v13485_v31 = vcombine.low %v7122_v37, %v7125_v16  ;;  %v7132_v53 = vsel %vm12808_vm14, %v7130_v23, %v7131_v21  ;;  %v13507_v21 = vcombine.low %v7136_v2, %v7139_v55  ;;  %v9215_v37 = vrot.slane %v7015_v15, 9  ;;  %v13515_v16 = vld [vmem:[#allocation3 + $0xb0] sm:$0x1] }
 0x3ab   : > { %10567 = vmatprep.subr.bf16.mxu1 %v11666_v63  ;;  %v13491_v3 = vcombine.low %v7129_v58, %v7132_v53  ;;  %v7156_v23 = vrot.slane %v13483_v36, 5  ;;  %v13517_v58 = vcombine.low %v7143_v39, %v7146_v10  ;;  %v7152_v19 = vrot.slane %v13475_v29, 5  ;;  %v13535_v10 = vld [vmem:[#allocation3 + $0xc4] sm:$0xf] }
 0x3ac   : > { %14337 = vst [vmem:[#allocation9_spill] sm:$0xff] %v13485_v31  ;;  %14339 = vst [vmem:[#allocation13_spill] sm:$0xff] %v13507_v21  ;;  %v7150_v53 = vsel %vm12808_vm14, %v9215_v37, %v7149_v7  ;;  %v7163_v15 = vrot.slane %v13494_v33, 5  ;;  %v7170_v39 = vrot.slane %v13505_v34, 5 }
 0x3ad   : > { %14338 = vst [vmem:[#allocation12_spill] sm:$0xff] %v13491_v3  ;;  %14340 = vst [vmem:[#allocation4_spill] sm:$0xff] %v13517_v58  ;;  %v7158_v0 = vrot.slane %v7156_v23, 4  ;;  %v7157_v55 = vsel %vm12808_vm14, %v9216_v45, %v7156_v23  ;;  %v11669_v23 = vld [vmem:[%s14264_s3 + $0x60] sm:$0xff]   ;;  %v7019_v45 = vld [vmem:[#allocation3 + $0xb4] sm:$0xe] }
 0x3ae   : > { %10568 = vmatpush3.bf16.msra.mxu1 %v11666_v63  ;;  %v7151_v63 = vrot.slane %v7149_v7, 4  ;;  %v13533_v7 = vld [vmem:[#allocation3 + $0xbc] sm:$0x1]  ;;  %v7165_v58 = vrot.slane %v7163_v15, 4 }
 0x3af   : > { %10569 = vmatprep.subr.bf16.mxu1 %v11667_v28 }
 0x3b0   : > { %v7153_v2 = vsel %vm12808_vm14, %v7151_v63, %v7152_v19  ;;  %v7166_v63 = vrot.slane %v13496_v12, 5  ;;  %v7173_v19 = vrot.slane %v13515_v16, 5 }
 0x3b1   : > { %10538 = vmatmul.mubr.bf16.gmra.mrb[20].mxu1 %v13218_v41  ;;  %v13537_v37 = vcombine.low %v7150_v53, %v7153_v2  ;;  %v7160_v41 = vsel %vm12808_vm14, %v7158_v0, %v7159_v9  ;;  %v13548_v53 = vld [vmem:[#allocation3 + $0xc8] sm:$0x1]  ;;  %v7164_v0 = vsel %vm12808_vm14, %v9217_v18, %v7163_v15  ;;  %v7177_v2 = vrot.slane %v13525_v30, 5 }
 0x3b2   : > { %10541 = vmatprep.mubr.bf16.mxu1 %v13224_v22  ;;  %10570 = vmatpush3.bf16.msra.mxu1 %v11667_v28  ;;  %v13545_v35 = vcombine.low %v7157_v55, %v7160_v41  ;;  %v9218_v22 = vrot.slane %v7018_v60, 9  ;;  %v7172_v28 = vrot.slane %v7170_v39, 4  ;;  %v7167_v9 = vsel %vm12808_vm14, %v7165_v58, %v7166_v63  ;;  %v11670_v63 = vld [vmem:[%s14264_s3 + $0x68] sm:$0xff]  }
 0x3b3   : > { %14341 = vst [vmem:[#allocation6_spill] sm:$0xff] %v13537_v37  ;;  %10571 = vmatprep.subr.bf16.mxu1 %v11668_v52  ;;  %v7020_v37 = vld [vmem:[#allocation3 + $0xc0] sm:$0xe]  ;;  %v13555_v21 = vcombine.low %v7164_v0, %v7167_v9  ;;  %v7509_v41 = vrot.slane %v13535_v10, 5  ;;  %v9219_v15 = vrot.slane %v7019_v45, 9  ;;  %v7179_v18 = vrot.slane %v7177_v2, 4 }
 0x3b4   : > { %14342 = vst [vmem:[#allocation5_spill] sm:$0xff] %v13545_v35  ;;  %v7171_v60 = vsel %vm12808_vm14, %v9218_v22, %v7170_v39  ;;  %v7174_v55 = vsel %vm12808_vm14, %v7172_v28, %v7173_v19  ;;  %v7180_v58 = vrot.slane %v13533_v7, 5  ;;  %v9260_v0 = vrot.slane %v7020_v37, 9 }
 0x3b5   : > { %14343 = vst [vmem:[#allocation14_spill] sm:$0xff] %v13555_v21  ;;  %v13562_v35 = vcombine.low %v7171_v60, %v7174_v55  ;;  %v7511_v9 = vrot.slane %v7509_v41, 4  ;;  %v7512_v39 = vrot.slane %v13548_v53, 5  ;;  %v7178_v22 = vsel %vm12808_vm14, %v9219_v15, %v7177_v2  ;;  %v11671_v2 = vld [vmem:[%s14264_s3 + $0x70] sm:$0xff]   ;;  %v13597_v60 = vld [vmem:[#allocation3 + $0x4] sm:$0xf] }
 0x3b6   : > { %10572 = vmatpush3.bf16.msra.mxu1 %v11668_v52  ;;  %v7181_v52 = vsel %vm12808_vm14, %v7179_v18, %v7180_v58  ;;  %v7510_v19 = vsel %vm12808_vm14, %v9260_v0, %v7509_v41  ;;  %14347 = vst [vmem:[#allocation18_spill] sm:$0xff] %v13597_v60  ;;  %v5740_v41 = vshrl.u32 %v13597_v60, 16  ;;  %v5675_v15 = vld [vmem:[#allocation3 + $0xc] sm:$0xf]  ;;  %v13603_v18 = vld [vmem:[#allocation3 + $0x10] sm:$0xf] }
 0x3b7   : > { %14344 = vst [vmem:[#allocation15_spill] sm:$0xff] %v13562_v35  ;;  %10573 = vmatprep.subr.bf16.mxu1 %v11669_v23  ;;  %v13574_v28 = vcombine.low %v7178_v22, %v7181_v52  ;;  %v7513_v45 = vsel %vm12808_vm14, %v7511_v9, %v7512_v39  ;;  %14348 = vst [vmem:[#allocation19_spill] sm:$0xff] %v13603_v18  ;;  %v5678_v58 = vld [vmem:[#allocation3 + $0x18] sm:$0xf]  ;;  %v5681_v0 = vld [vmem:[#allocation3 + $0x24] sm:$0xf] }
 0x3b8   : > { %v13581_v37 = vcombine.low %v7510_v19, %v7513_v45  ;;  %v5742_v52 = vrot.slane %v5740_v41, 4  ;;  %v5751_v19 = vshrl.u32 %v5675_v15, 16  ;;  %v5754_v45 = vshll.u32 %v5675_v15, 16 }
 0x3b9   : > { %10542 = vmatmul.mubr.bf16.gmra.mrb[24].mxu1 %v13240_v4  ;;  %14345 = vst [vmem:[#allocation16_spill] sm:$0xff] %v13574_v28  ;;  %v11673_v4 = vld [vmem:[%s14264_s3 + $0x78] sm:$0xff]  }
 0x3ba   : > { %10545 = vmatprep.mubr.bf16.mxu1 %v13246_v27  ;;  %10574 = vmatpush3.bf16.msra.mxu1 %v11669_v23  ;;  %14346 = vst [vmem:[#allocation17_spill] sm:$0xff] %v13581_v37  ;;  %v13594_v27 = vld [vmem:[%s14264_s3 + $0x100] sm:$0xff]   ;;  %v5672_v23 = vld [vmem:[#allocation3] sm:$0xf]  ;;  %v5778_v37 = vshll.u32 %v5678_v58, 16  ;;  %v5753_v31 = vrot.slane %v5751_v19, 4 }
 0x3bb   : > { %10575 = vmatprep.subr.bf16.mxu1 %v11670_v63  ;;  %v5730_v55 = vshll.u32 %v5672_v23, 16  ;;  %v13627_v19 = vld [vmem:[#allocation3 + $0x14] sm:$0x1] }
 0x3bc   : > { %v5780_v49 = vrot.slane %v5778_v37, 5  ;;  %v13630_v37 = vld [vmem:[#allocation3 + $0x20] sm:$0x1]  ;;  %v7082_v56 = vrot.slane %v13627_v19, 5 }
 0x3bd   : > { %v5732_v39 = vrot.slane %v5730_v55, 5  ;;  %v5799_v55 = vshrl.u32 %v5681_v0, 16 }
 0x3be   : > { %10576 = vmatpush3.bf16.msra.mxu1 %v11670_v63  ;;  %v13605_v63 = vld [vmem:[#allocation3 + $0x1c] sm:$0xf] }
 0x3bf   : > { %10577 = vmatprep.subr.bf16.mxu1 %v11671_v2  ;;  %14349 = vst [vmem:[#allocation20_spill] sm:$0xff] %v13605_v63  ;;  %v5784_v28 = vshll.u32 %v13605_v63, 16 }
 0x3c1   : > { %10546 = vmatmul.mubr.bf16.gmra.mrb[28].mxu1 %v13284_v13  ;;  %v5727_v13 = vshrl.u32 %v5672_v23, 16  ;;  %v5775_v23 = vshrl.u32 %v5678_v58, 16 }
 0x3c2   : > { %10549 = vmatprep.mubr.bf16.mxu1 %v13286_v1  ;;  %10578 = vmatpush3.bf16.msra.mxu1 %v11671_v2  ;;  %v5736_v1 = vshll.u32 %v13597_v60, 16  ;;  %v5760_v2 = vshll.u32 %v13603_v18, 16 }
 0x3c3   : > { %10579 = vmatprep.subr.bf16.mxu1 %v11673_v4  ;;  %v5729_v9 = vrot.slane %v5727_v13, 4  ;;  %v5788_v13 = vshrl.u32 %v13605_v63, 16  ;;  %v5777_v24 = vrot.slane %v5775_v23, 4  ;;  %v13622_v63 = vrot.slane %v5784_v28, 5 }
 0x3c4   : > { %v5738_v22 = vrot.slane %v5736_v1, 5  ;;  %v5802_v1 = vshll.u32 %v5681_v0, 16  ;;  %v13620_v44 = vrot.slane %v5760_v2, 5 }
 0x3c5   : > { %v5733_v35 = vor.u32 %v5732_v39, %v5729_v9  ;;  %v5781_v28 = vor.u32 %v5780_v49, %v5777_v24  ;;  %v5836_v49 = vshrl.u32 %v13403_v5, 16 }
 0x3c6   : > { %10580 = vmatpush3.bf16.msra.mxu1 %v11673_v4  ;;  %v5764_v4 = vshrl.u32 %v13603_v18, 16  ;;  %v5743_v21 = vor.u32 %v5742_v52, %v5738_v22  ;;  %v5801_v18 = vrot.slane %v5799_v55, 4  ;;  %v5804_v0 = vrot.slane %v5802_v1, 5  ;;  %v5684_v52 = vld [vmem:[#allocation3 + $0x30] sm:$0xf] }
 0x3c7   : > { %10613 = vmatprep.subr.bf16.mxu1 %v13594_v27  ;;  %v5770_v55 = vshll.u32 %v13627_v19, 16 }
 0x3c8   : > { %v5766_v58 = vrot.slane %v5764_v4, 4  ;;  %v5744_v9 = vrot.slane %v5743_v21, 4  ;;  %v13633_v4 = vld [vmem:[#allocation3 + $0x2c] sm:$0x1]  ;;  %v5823_v21 = vshrl.u32 %v5684_v52, 16 }
 0x3c9   : > { %10550 = vmatmul.mubr.bf16.gmra.mrb[0].mxu1 %v13306_v8  ;;  %v13607_v8 = vld [vmem:[#allocation3 + $0x28] sm:$0xf]  ;;  %14352 = vst [vmem:[#allocation23_spill] sm:$0xff] %v13633_v4 }
 0x3ca   : > { %10553 = vmatprep.mubr.bf16.mxu1 %v13312_v11  ;;  %14350 = vst [vmem:[#allocation21_spill] sm:$0xff] %v13607_v8  ;;  %v13609_v11 = vld [vmem:[#allocation3 + $0x8] sm:$0x1]  ;;  %v5808_v41 = vshll.u32 %v13607_v8, 16  ;;  %v5812_v15 = vshrl.u32 %v13607_v8, 16  ;;  %v5734_v8 = vrot.slane %v5733_v35, 4  ;;  %v5805_v35 = vor.u32 %v5804_v0, %v5801_v18 }
 0x3cb   : > { %14351 = vst [vmem:[#allocation22_spill] sm:$0xff] %v13609_v11  ;;  %v5746_v3 = vshll.u32 %v13609_v11, 16  ;;  %v5818_v18 = vshll.u32 %v13633_v4, 16 }
 0x3cc   : > { %v13624_v14 = vrot.slane %v5808_v41, 5  ;;  %v5814_v60 = vrot.slane %v5812_v15, 4  ;;  %v5782_v41 = vrot.slane %v5781_v28, 4 }
 0x3cd   : > { %v5748_v39 = vrot.slane %v5746_v3, 5  ;;  %v5820_v4 = vrot.slane %v5818_v18, 5 }
 0x3ce   : > { %v5815_v3 = vor.u32 %v5814_v60, %v13624_v14  ;;  %v11672_v60 = vld [vmem:[#allocation3 + $0xcc] sm:$0xff]  }
 0x3cf   : > { %v5749_v23 = vsel %vm12461_vm11, %v5744_v9, %v5748_v39  ;;  %v5772_v39 = vrot.slane %v5770_v55, 5 }
 0x3d1   : > { %10554 = vmatmul.mubr.bf16.gmra.mrb[4].mxu1 %v13326_v17  ;;  %v5756_v17 = vrot.slane %v5754_v45, 5  ;;  %v5767_v45 = vor.u32 %v5766_v58, %v13620_v44  ;;  %v5687_v58 = vld [vmem:[#allocation3 + $0x3c] sm:$0xf] }
 0x3d2   : > { %10557 = vmatprep.mubr.bf16.mxu1 %v13332_v48  ;;  %v5790_v48 = vrot.slane %v5788_v13, 4  ;;  %v5832_v13 = vshll.u32 %v13403_v5, 16  ;;  %v5838_v5 = vrot.slane %v5836_v49, 4  ;;  %v5850_v28 = vshll.u32 %v5687_v58, 16 }
 0x3d3   : > { %v5757_v11 = vor.u32 %v5756_v17, %v5753_v31  ;;  %v5826_v31 = vshll.u32 %v5684_v52, 16  ;;  %v5768_v1 = vrot.slane %v5767_v45, 4  ;;  %v5847_v45 = vshrl.u32 %v5687_v58, 16 }
 0x3d4   : > { %v5791_v2 = vor.u32 %v5790_v48, %v13622_v63  ;;  %v5825_v48 = vrot.slane %v5823_v21, 4  ;;  %v13646_v9 = vrot.slane %v5832_v13, 5  ;;  %v5842_v49 = vshll.u32 %v13405_v38, 16  ;;  %v11675_v38 = vld [vmem:[%s14264_s3 + $0x108] sm:$0xff]  }
 0x3d5   : > { %v5758_v24 = vrot.slane %v5757_v11, 4  ;;  %v5828_v0 = vrot.slane %v5826_v31, 5  ;;  %v5773_v21 = vsel %vm12461_vm11, %v5768_v1, %v5772_v39  ;;  %v5787_v31 = vsel %vm12461_vm11, %v5782_v41, %v13622_v63 }
 0x3d6   : > { %v5792_v17 = vrot.slane %v5791_v2, 4  ;;  %v5856_v2 = vshll.u32 %v13407_v40, 16  ;;  %v5839_v13 = vor.u32 %v5838_v5, %v13646_v9  ;;  %v5884_v63 = vshrl.u32 %v13410_v26, 16 }
 0x3d7   : > { %v5763_v11 = vsel %vm12461_vm11, %v5758_v24, %v13620_v44  ;;  %v5849_v18 = vrot.slane %v5847_v45, 4 }
 0x3d8   : > { %v13669_v1 = vrot.slane %v5856_v2, 5  ;;  %v5840_v58 = vrot.slane %v5839_v13, 4 }
 0x3d9   : > { %10558 = vmatmul.mubr.bf16.gmra.mrb[8].mxu1 %v13353_v6  ;;  %v5739_v6 = vsel %vm12461_vm11, %v5734_v8, %v5738_v22  ;;  %v5806_v22 = vrot.slane %v5805_v35, 4  ;;  %v5816_v8 = vrot.slane %v5815_v3, 4  ;;  %v5860_v35 = vshrl.u32 %v13407_v40, 16  ;;  %v5690_v3 = vld [vmem:[#allocation3 + $0x48] sm:$0xf] }
 0x3da   : > { %10561 = vmatprep.mubr.bf16.mxu1 %v13355_v61  ;;  %v5794_v61 = vshll.u32 %v13630_v37, 16  ;;  %v9130_v15 = vcombine.low %v5739_v6, %v5749_v23  ;;  %v5829_v40 = vor.u32 %v5828_v0, %v5825_v48  ;;  %v5871_v24 = vshrl.u32 %v5690_v3, 16 }
 0x3db   : > { %v5811_v6 = vsel %vm12461_vm11, %v5806_v22, %v13624_v14  ;;  %v5821_v23 = vsel %vm12461_vm11, %v5816_v8, %v5820_v4  ;;  %v5874_v55 = vshll.u32 %v5690_v3, 16  ;;  %v5862_v41 = vrot.slane %v5860_v35, 4  ;;  %v5696_v22 = vld [vmem:[#allocation3 + $0x60] sm:$0xf] }
 0x3dc   : > { %v5796_v52 = vrot.slane %v5794_v61, 5  ;;  %v5880_v61 = vshll.u32 %v13410_v26, 16  ;;  %v13671_v14 = vcombine.low %v5763_v11, %v5773_v21  ;;  %v13675_v4 = vcombine.low %v5811_v6, %v5821_v23  ;;  %v11676_v6 = vld [vmem:[%s14264_s3 + $0x110] sm:$0xff]  }
 0x3dd   : > { %v5830_v8 = vrot.slane %v5829_v40, 4  ;;  %v5844_v26 = vrot.slane %v5842_v49, 5  ;;  %v5866_v48 = vshll.u32 %v13413_v47, 16  ;;  %v5873_v0 = vrot.slane %v5871_v24, 4 }
 0x3de   : > { %v5797_v44 = vsel %vm12461_vm11, %v5792_v17, %v5796_v52  ;;  %v5693_v17 = vld [vmem:[#allocation3 + $0x54] sm:$0xf]  ;;  %v5876_v5 = vrot.slane %v5874_v55, 5  ;;  %v13681_v39 = vrot.slane %v5880_v61, 5  ;;  %v5886_v11 = vrot.slane %v5884_v63, 4 }
 0x3df   : > { %v5863_v45 = vor.u32 %v5862_v41, %v13669_v1  ;;  %v5898_v2 = vshll.u32 %v5693_v17, 16  ;;  %v5904_v35 = vshll.u32 %v13418_v32, 16  ;;  %v5908_v47 = vshrl.u32 %v13418_v32, 16 }
 0x3e0   : > { %v5919_v3 = vshrl.u32 %v5696_v22, 16  ;;  %v5922_v21 = vshll.u32 %v5696_v22, 16  ;;  %v5928_v23 = vshll.u32 %v13427_v46, 16  ;;  %v5845_v40 = vsel %vm12461_vm11, %v5840_v58, %v5844_v26  ;;  %v11677_v22 = vld [vmem:[%s14264_s3 + $0x118] sm:$0xff]  }
 0x3e1   : > { %10562 = vmatmul.mubr.bf16.gmra.mrb[12].mxu1 %v11672_v60  ;;  %v5852_v60 = vrot.slane %v5850_v28, 5  ;;  %v5895_v28 = vshrl.u32 %v5693_v17, 16  ;;  %v5877_v32 = vor.u32 %v5876_v5, %v5873_v0  ;;  %v5887_v13 = vor.u32 %v5886_v11, %v13681_v39  ;;  %v5699_v17 = vld [vmem:[#allocation3 + $0x6c] sm:$0xf] }
 0x3e2   : > { %10581 = vmatprep.mubr.bf16.mxu1 %v9130_v15  ;;  %v13673_v15 = vcombine.low %v5787_v31, %v5797_v44  ;;  %v5835_v31 = vsel %vm12461_vm11, %v5830_v8, %v13646_v9  ;;  %v5868_v44 = vrot.slane %v5866_v48, 5  ;;  %v5890_v49 = vshll.u32 %v13415_v20, 16 }
 0x3e3   : > { %v5853_v52 = vor.u32 %v5852_v60, %v5849_v18  ;;  %v5864_v55 = vrot.slane %v5863_v45, 4  ;;  %v5897_v9 = vrot.slane %v5895_v28, 4  ;;  %v5900_v61 = vrot.slane %v5898_v2, 5 }
 0x3e4   : > { %v13701_v63 = vrot.slane %v5904_v35, 5  ;;  %v5910_v18 = vrot.slane %v5908_v47, 4  ;;  %v5921_v60 = vrot.slane %v5919_v3, 4  ;;  %v5924_v41 = vrot.slane %v5922_v21, 5 }
 0x3e5   : > { %v5854_v24 = vrot.slane %v5853_v52, 4  ;;  %v13708_v8 = vrot.slane %v5928_v23, 5  ;;  %v5952_v58 = vshll.u32 %v13442_v43, 16  ;;  %v13712_v26 = vcombine.low %v5835_v31, %v5845_v40  ;;  %v5702_v40 = vld [vmem:[#allocation3 + $0x78] sm:$0xf] }
 0x3e6   : > { %v5878_v48 = vrot.slane %v5877_v32, 4  ;;  %v5888_v0 = vrot.slane %v5887_v13, 4  ;;  %v5869_v11 = vsel %vm12461_vm11, %v5864_v55, %v5868_v44  ;;  %v5892_v52 = vrot.slane %v5890_v49, 5 }
 0x3e7   : > { %v5901_v28 = vor.u32 %v5900_v61, %v5897_v9  ;;  %v5911_v35 = vor.u32 %v5910_v18, %v13701_v63  ;;  %v5943_v47 = vshrl.u32 %v5699_v17, 16  ;;  %v5946_v3 = vshll.u32 %v5699_v17, 16 }
 0x3e8   : > { %v5925_v21 = vor.u32 %v5924_v41, %v5921_v60  ;;  %v13729_v44 = vrot.slane %v5952_v58, 5  ;;  %v5893_v32 = vsel %vm12461_vm11, %v5888_v0, %v5892_v52  ;;  %v5914_v13 = vshll.u32 %v13422_v59, 16  ;;  %v11679_v59 = vld [vmem:[%s14264_s3 + $0x128] sm:$0xff]  }
 0x3e9   : > { %10582 = vmatmul.mubr.bf16.vlgmr.msra.gmra.mrb[16].mxu1 %v13671_v14  ;;  %v5902_v49 = vrot.slane %v5901_v28, 4  ;;  %v5976_v55 = vshll.u32 %v13451_v42, 16  ;;  %v5980_v9 = vshrl.u32 %v13451_v42, 16  ;;  %v5945_v61 = vrot.slane %v5943_v47, 4 }
 0x3ea   : > { %10585 = vmatprep.mubr.bf16.mxu1 %v13673_v15  ;;  %10614 = vmatpush3.bf16.msra.mxu1 %v13594_v27  ;;  %v5932_v27 = vshrl.u32 %v13427_v46, 16  ;;  %v5948_v18 = vrot.slane %v5946_v3, 5  ;;  %v5967_v60 = vshrl.u32 %v5702_v40, 16  ;;  %v5970_v41 = vshll.u32 %v5702_v40, 16 }
 0x3eb   : > { %10615 = vmatprep.subr.bf16.mxu1 %v11675_v38  ;;  %v5912_v17 = vrot.slane %v5911_v35, 4  ;;  %v5982_v0 = vrot.slane %v5980_v9, 4  ;;  %v5907_v52 = vsel %vm12461_vm11, %v5902_v49, %v13701_v63  ;;  %v11680_v63 = vld [vmem:[%s14264_s3 + $0x130] sm:$0xff]  }
 0x3ec   : > { %v5934_v20 = vrot.slane %v5932_v27, 4  ;;  %v11678_v27 = vld [vmem:[%s14264_s3 + $0x120] sm:$0xff]   ;;  %v5949_v28 = vor.u32 %v5948_v18, %v5945_v61  ;;  %v5972_v35 = vrot.slane %v5970_v41, 5 }
 0x3ee   : > { %10616 = vmatpush3.bf16.msra.mxu1 %v11675_v38  ;;  %v13703_v46 = vpop.f32.mrb[32].mxu0  ;;  %v5956_v38 = vshrl.u32 %v13442_v43, 16  ;;  %v5859_v43 = vsel %vm12461_vm11, %v5854_v24, %v13669_v1  ;;  %v5935_v31 = vor.u32 %v5934_v20, %v13708_v8  ;;  %v5938_v24 = vshll.u32 %v13435_v57, 16 }
 0x3ef   : > { %10617 = vmatprep.subr.bf16.mxu1 %v11676_v6  ;;  %v13714_v5 = vpop.f32.mrb[33].mxu0  ;;  %v13734_v1 = vcombine.low %v5859_v43, %v5869_v11  ;;  %v5926_v20 = vrot.slane %v5925_v21, 4  ;;  %v5705_v11 = vld [vmem:[#allocation3 + $0x84] sm:$0xf]  ;;  %v5969_v43 = vrot.slane %v5967_v60, 4  ;;  %v5950_v60 = vrot.slane %v5949_v28, 4 }
 0x3f0   : > { %v13719_v45 = vpop.f32.mrb[34].mxu0  ;;  %v5958_v23 = vrot.slane %v5956_v38, 4  ;;  %v5916_v38 = vrot.slane %v5914_v13, 5  ;;  %v5940_v42 = vrot.slane %v5938_v24, 5  ;;  %v5994_v40 = vshll.u32 %v5705_v11, 16 }
 0x3f1   : > { %10586 = vmatmul.mubr.bf16.gmra.mrb[20].mxu1 %v13675_v4  ;;  %v13725_v2 = vpop.f32.mrb[35].mxu0  ;;  %v6024_v24 = vshll.u32 %v13483_v36, 16  ;;  %v5973_v41 = vor.u32 %v5972_v35, %v5969_v43 }
 0x3f2   : > { %10589 = vmatprep.mubr.bf16.mxu1 %v13712_v26  ;;  %10618 = vmatpush3.bf16.msra.mxu1 %v11676_v6  ;;  %v5883_v6 = vsel %vm12461_vm11, %v5878_v48, %v13681_v39  ;;  %v5936_v39 = vrot.slane %v5935_v31, 4  ;;  %v5959_v58 = vor.u32 %v5958_v23, %v13729_v44  ;;  %v13753_v48 = vrot.slane %v5976_v55, 5  ;;  %v5708_v31 = vld [vmem:[#allocation3 + $0x90] sm:$0xf] }
 0x3f3   : > { %10619 = vmatprep.subr.bf16.mxu1 %v11677_v22  ;;  %v13749_v57 = vcombine.low %v5883_v6, %v5893_v32  ;;  %v5917_v47 = vsel %vm12461_vm11, %v5912_v17, %v5916_v38  ;;  %v6000_v6 = vshll.u32 %v13473_v25, 16  ;;  %v6004_v32 = vshrl.u32 %v13473_v25, 16 }
 0x3f4   : > { %v5941_v3 = vsel %vm12461_vm11, %v5936_v39, %v5940_v42  ;;  %v5960_v21 = vrot.slane %v5959_v58, 4  ;;  %v5983_v49 = vor.u32 %v5982_v0, %v13753_v48  ;;  %v6028_v55 = vshrl.u32 %v13483_v36, 16  ;;  %v11681_v36 = vld [vmem:[%s14264_s3 + $0x138] sm:$0xff]  }
 0x3f5   : > { %v13778_v9 = vcombine.low %v5907_v52, %v5917_v47  ;;  %v6015_v39 = vshrl.u32 %v5708_v31, 16  ;;  %v6018_v58 = vshll.u32 %v5708_v31, 16  ;;  %v5996_v42 = vrot.slane %v5994_v40, 5 }
 0x3f6   : > { %10620 = vmatpush3.bf16.msra.mxu1 %v11677_v22  ;;  %v5962_v22 = vshll.u32 %v13449_v51, 16  ;;  %v5931_v51 = vsel %vm12461_vm11, %v5926_v20, %v13708_v8  ;;  %v5986_v20 = vshll.u32 %v13466_v62, 16  ;;  %v6006_v0 = vrot.slane %v6004_v32, 4 }
 0x3f7   : > { %10621 = vmatprep.subr.bf16.mxu1 %v11678_v27  ;;  %v13780_v61 = vcombine.low %v5931_v51, %v5941_v3  ;;  %v6030_v52 = vrot.slane %v6028_v55, 4  ;;  %v5955_v62 = vsel %vm12461_vm11, %v5950_v60, %v13729_v44  ;;  %v5974_v28 = vrot.slane %v5973_v41, 4  ;;  %v5711_v3 = vld [vmem:[#allocation3 + $0x9c] sm:$0xf] }
 0x3f8   : > { %v5964_v8 = vrot.slane %v5962_v22, 5  ;;  %v13792_v22 = vrot.slane %v6000_v6, 5  ;;  %v5988_v35 = vrot.slane %v5986_v20, 5  ;;  %v6017_v47 = vrot.slane %v6015_v39, 4 }
 0x3f9   : > { %10590 = vmatmul.mubr.bf16.gmra.mrb[24].mxu1 %v13734_v1  ;;  %v6020_v51 = vrot.slane %v6018_v58, 5  ;;  %v6048_v40 = vshll.u32 %v13494_v33, 16  ;;  %v6052_v44 = vshrl.u32 %v13494_v33, 16  ;;  %v5979_v55 = vsel %vm12461_vm11, %v5974_v28, %v13753_v48 }
 0x3fa   : > { %10593 = vmatprep.mubr.bf16.mxu1 %v13749_v57  ;;  %10622 = vmatpush3.bf16.msra.mxu1 %v11678_v27  ;;  %v5991_v27 = vshrl.u32 %v5705_v11, 16  ;;  %v5965_v25 = vsel %vm12461_vm11, %v5960_v21, %v5964_v8  ;;  %v13795_v11 = vrot.slane %v6024_v24, 5  ;;  %v13806_v21 = vld [vmem:[%s14264_s3 + $0x1c0] sm:$0xff]   ;;  %v6076_v24 = vshrl.u32 %v13505_v34, 16 }
 0x3fb   : > { %10623 = vmatprep.subr.bf16.mxu1 %v11679_v59  ;;  %v13801_v43 = vcombine.low %v5955_v62, %v5965_v25  ;;  %v6010_v33 = vshll.u32 %v13475_v29, 16  ;;  %v6039_v41 = vshrl.u32 %v5711_v3, 16  ;;  %v6042_v25 = vshll.u32 %v5711_v3, 16 }
 0x3fc   : > { %v13769_v23 = vpop.f32.mrb[36].mxu0  ;;  %v5993_v38 = vrot.slane %v5991_v27, 4  ;;  %v6007_v27 = vor.u32 %v6006_v0, %v13792_v22  ;;  %v6031_v8 = vor.u32 %v6030_v52, %v13795_v11  ;;  %v6021_v39 = vor.u32 %v6020_v51, %v6017_v47 }
 0x3fd   : > { %v13773_v13 = vpop.f32.mrb[37].mxu0  ;;  %v6034_v58 = vshll.u32 %v13489_v50, 16  ;;  %v6054_v52 = vrot.slane %v6052_v44, 4  ;;  %v6078_v28 = vrot.slane %v6076_v24, 4  ;;  %v6012_v50 = vrot.slane %v6010_v33, 5 }
 0x3fe   : > { %v13782_v18 = vpop.f32.mrb[38].mxu0  ;;  %10624 = vmatpush3.bf16.msra.mxu1 %v11679_v59  ;;  %v5984_v59 = vrot.slane %v5983_v49, 4  ;;  %v5997_v31 = vor.u32 %v5996_v42, %v5993_v38  ;;  %v6072_v49 = vshll.u32 %v13505_v34, 16  ;;  %v6008_v48 = vrot.slane %v6007_v27, 4 }
 0x3ff   : > { %v13784_v17 = vpop.f32.mrb[39].mxu0  ;;  %10625 = vmatprep.subr.bf16.mxu1 %v11680_v63  ;;  %v6044_v47 = vrot.slane %v6042_v25, 5  ;;  %v6022_v51 = vrot.slane %v6021_v39, 4  ;;  %v6036_v3 = vrot.slane %v6034_v58, 5  ;;  %v6096_v44 = vshll.u32 %v13525_v30, 16 }
 0x400   : > { %v5989_v6 = vsel %vm12461_vm11, %v5984_v59, %v5988_v35  ;;  %v6050_v59 = vrot.slane %v6048_v40, 5  ;;  %v5998_v29 = vrot.slane %v5997_v31, 4  ;;  %v6074_v62 = vrot.slane %v6072_v49, 5 }
 0x401   : > { %10594 = vmatmul.mubr.bf16.gmra.mrb[28].mxu1 %v13778_v9  ;;  %v13828_v34 = vcombine.low %v5979_v55, %v5989_v6  ;;  %v6041_v35 = vrot.slane %v6039_v41, 4  ;;  %v5717_v55 = vld [vmem:[#allocation3 + $0xb4] sm:$0xf]  ;;  %v6013_v27 = vsel %vm12461_vm11, %v6008_v48, %v6012_v50  ;;  %v6100_v31 = vshrl.u32 %v13525_v30, 16 }
 0x402   : > { %10597 = vmatprep.mubr.bf16.mxu1 %v13780_v61  ;;  %10626 = vmatpush3.bf16.msra.mxu1 %v11680_v63  ;;  %v5714_v63 = vld [vmem:[#allocation3 + $0xa8] sm:$0xf]  ;;  %v6055_v40 = vor.u32 %v6054_v52, %v6050_v59  ;;  %v6079_v33 = vor.u32 %v6078_v28, %v6074_v62  ;;  %v6058_v39 = vshll.u32 %v13496_v12, 16  ;;  %v6087_v58 = vshrl.u32 %v5717_v55, 16 }
 0x403   : > { %10627 = vmatprep.subr.bf16.mxu1 %v11681_v36  ;;  %v6063_v38 = vshrl.u32 %v5714_v63, 16  ;;  %v6066_v42 = vshll.u32 %v5714_v63, 16  ;;  %v6045_v25 = vor.u32 %v6044_v47, %v6041_v35  ;;  %v6027_v30 = vsel %vm12461_vm11, %v6022_v51, %v13795_v11 }
 0x404   : > { %v6082_v52 = vshll.u32 %v13515_v16, 16  ;;  %v6056_v28 = vrot.slane %v6055_v40, 4  ;;  %v6098_v50 = vrot.slane %v6096_v44, 5  ;;  %v6102_v12 = vrot.slane %v6100_v31, 4 }
 0x405   : > { %v13813_v32 = vpop.f32.mrb[40].mxu0  ;;  %v6065_v63 = vrot.slane %v6063_v38, 4  ;;  %v6068_v6 = vrot.slane %v6066_v42, 5  ;;  %v6090_v38 = vshll.u32 %v5717_v55, 16  ;;  %v6080_v35 = vrot.slane %v6079_v33, 4 }
 0x406   : > { %v13821_v60 = vpop.f32.mrb[41].mxu0  ;;  %10628 = vmatpush3.bf16.msra.mxu1 %v11681_v36  ;;  %v6032_v36 = vrot.slane %v6031_v8, 4  ;;  %v6003_v8 = vsel %vm12461_vm11, %v5998_v29, %v13792_v22  ;;  %v6046_v47 = vrot.slane %v6045_v25, 4  ;;  %v6089_v11 = vrot.slane %v6087_v58, 4 }
 0x407   : > { %v13824_v20 = vpop.f32.mrb[42].mxu0  ;;  %10661 = vmatprep.subr.bf16.mxu1 %v13806_v21  ;;  %v13848_v42 = vcombine.low %v6003_v8, %v6013_v27  ;;  %v6069_v48 = vor.u32 %v6068_v6, %v6065_v63  ;;  %v6092_v51 = vrot.slane %v6090_v38, 5  ;;  %v6084_v63 = vrot.slane %v6082_v52, 5  ;;  %v512_v38 = vld [vmem:[#allocation3 + $0xd4] sm:$0x1] }
 0x408   : > { %v13830_v0 = vpop.f32.mrb[43].mxu0  ;;  %v6037_v49 = vsel %vm12461_vm11, %v6032_v36, %v6036_v3  ;;  %v6060_v3 = vrot.slane %v6058_v39, 5  ;;  %v6103_v6 = vor.u32 %v6102_v12, %v6098_v50  ;;  %v6051_v40 = vsel %vm12461_vm11, %v6046_v47, %v6050_v59  ;;  %v11687_v52 = vld [vmem:[%s14264_s3 + $0x1e8] sm:$0xff]   ;;  %v11690_v12 = vld [vmem:[%s14264_s3 + $0x80] sm:$0xff]  }
 0x409   : > { %10598 = vmatmul.mubr.bf16.gmra.mrb[0].mxu1 %v13801_v43  ;;  %v13856_v29 = vcombine.low %v6027_v30, %v6037_v49  ;;  %v6070_v55 = vrot.slane %v6069_v48, 4  ;;  %v6085_v27 = vsel %vm12461_vm11, %v6080_v35, %v6084_v63  ;;  %v6093_v44 = vor.u32 %v6092_v51, %v6089_v11  ;;  %v11683_v48 = vld [vmem:[%s14264_s3 + $0x1c8] sm:$0xff]   ;;  %v5720_v35 = vld [vmem:[#allocation3 + $0xc0] sm:$0xf] }
 0x40a   : > { %10601 = vmatprep.mubr.bf16.mxu1 %v13828_v34  ;;  %v6061_v16 = vsel %vm12461_vm11, %v6056_v28, %v6060_v3  ;;  %v6106_v31 = vshll.u32 %v13533_v7, 16  ;;  %v6104_v25 = vrot.slane %v6103_v6, 4  ;;  %v513_v59 = vsel %vm11873_vm5, 0, %v512_v38  ;;  %v11688_v28 = vld [vmem:[%s14264_s3 + $0x1f0] sm:$0xff]  }
 0x40b   : > { %v13869_v8 = vcombine.low %v6051_v40, %v6061_v16  ;;  %v6075_v49 = vsel %vm12461_vm11, %v6070_v55, %v6074_v62  ;;  %v6094_v39 = vrot.slane %v6093_v44, 4  ;;  %514 = vst [vmem:[#allocation3 + $0xd4] sm:$0x1] %v513_v59  ;;  %v6442_v47 = vshll.u32 %v13535_v10, 16  ;;  %v11692_v38 = vld [vmem:[%s14264_s3 + $0x90] sm:$0xff]  }
 0x40c   : > { %v13873_v33 = vcombine.low %v6075_v49, %v6085_v27  ;;  %v6108_v58 = vrot.slane %v6106_v31, 5  ;;  %v6446_v3 = vshrl.u32 %v13535_v10, 16  ;;  %v6433_v11 = vshrl.u32 %v5720_v35, 16  ;;  %v13966_v59 = vld [vmem:[#allocation3 + $0xd0] sm:$0xf] }
 0x40d   : > { %v6099_v62 = vsel %vm12461_vm11, %v6094_v39, %v6098_v50  ;;  %v11689_v50 = vld [vmem:[%s14264_s3 + $0x1f8] sm:$0xff]   ;;  %v6436_v51 = vshll.u32 %v5720_v35, 16  ;;  %v6444_v55 = vrot.slane %v6442_v47, 5  ;;  %v6452_v44 = vshll.u32 %v13548_v53, 16  ;;  %v11691_v53 = vld [vmem:[%s14264_s3 + $0x88] sm:$0xff]  }
 0x40e   : > { %v13843_v24 = vpop.f32.mrb[44].mxu0  ;;  %v6109_v7 = vsel %vm12461_vm11, %v6104_v25, %v6108_v58  ;;  %v6448_v63 = vrot.slane %v6446_v3, 4  ;;  %v6435_v16 = vrot.slane %v6433_v11, 4  ;;  %v7004_v35 = vld [vmem:[#allocation3] sm:$0xe] }
 0x40f   : > { %v13845_v41 = vpop.f32.mrb[45].mxu0  ;;  %v13883_v30 = vcombine.low %v6099_v62, %v6109_v7  ;;  %v6438_v6 = vrot.slane %v6436_v51, 5  ;;  %v6454_v49 = vrot.slane %v6452_v44, 5  ;;  %v9204_v51 = vrot.slane %v7004_v35, 9  ;;  %v14356_v44 = vld [vmem:[#allocation19_spill] sm:$0xff] }
 0x410   : > { %v13853_v22 = vpop.f32.mrb[46].mxu0  ;;  %v6449_v27 = vor.u32 %v6448_v63, %v6444_v55  ;;  %v14354_v63 = vld [vmem:[#allocation22_spill] sm:$0xff]  ;;  %v14360_v35 = vld [vmem:[#allocation7_spill] sm:$0xff] }
 0x411   : > { %v13858_v36 = vpop.f32.mrb[47].mxu0  ;;  %10602 = vmatmul.mubr.bf16.gmra.mrb[4].mxu1 %v13848_v42  ;;  %v6439_v40 = vor.u32 %v6438_v6, %v6435_v16  ;;  %v7075_v16 = vrot.slane %v14354_v63, 5  ;;  %v11705_v63 = vld [vmem:[%s14264_s3 + $0x178] sm:$0xff]   ;;  %v11727_v6 = vld [vmem:[%s11854_s12 + $0x28] sm:$0xff]  }
 0x412   : > { %10605 = vmatprep.mubr.bf16.mxu1 %v13856_v29  ;;  %v6450_v31 = vrot.slane %v6449_v27, 4 }
 0x413   : > { %v6440_v10 = vrot.slane %v6439_v40, 4 }
 0x414   : > { %v6455_v25 = vsel %vm12461_vm11, %v6450_v31, %v6454_v49  ;;  %v7079_v31 = vrot.slane %v14356_v44, 5  ;;  %v14357_v49 = vld [vmem:[#allocation20_spill] sm:$0xff]  ;;  %v14367_v44 = vld [vmem:[#allocation6_spill] sm:$0xff] }
 0x415   : > { %v6445_v39 = vsel %vm12461_vm11, %v6440_v10, %v6444_v55 }
 0x416   : > { %v9170_v58 = vcombine.low %v6445_v39, %v6455_v25  ;;  %v7086_v25 = vrot.slane %v14357_v49, 5  ;;  %v14370_v49 = vld [vmem:[#allocation15_spill] sm:$0xff] }
 0x419   : > { %10606 = vmatmul.mubr.bf16.gmra.mrb[8].mxu1 %v13869_v8 }
 0x41a   : > { %10609 = vmatprep.mubr.bf16.mxu1 %v13873_v33 }
 0x421   : > { %10610 = vmatmul.mubr.bf16.gmra.mrb[12].mxu1 %v13883_v30 }
 0x422   : > { %10629 = vmatprep.mubr.bf16.mxu1 %v13671_v14  ;;  %v11685_v14 = vld [vmem:[%s14264_s3 + $0x1d8] sm:$0xff]  }
 0x429   : > { %10630 = vmatmul.mubr.bf16.vlgmr.msra.gmra.mrb[16].mxu1 %v13673_v15 }
 0x42a   : > { %10633 = vmatprep.mubr.bf16.mxu1 %v13675_v4  ;;  %10662 = vmatpush3.bf16.msra.mxu1 %v13806_v21  ;;  %v11686_v21 = vld [vmem:[%s14264_s3 + $0x1e0] sm:$0xff]  }
 0x42b   : > { %10663 = vmatprep.subr.bf16.mxu1 %v11683_v48 }
 0x42e   : > { %10664 = vmatpush3.bf16.msra.mxu1 %v11683_v48 }
 0x42f   : > { %10665 = vmatprep.subr.bf16.mxu1 %v11684_v54 }
 0x431   : > { %10634 = vmatmul.mubr.bf16.gmra.mrb[20].mxu1 %v13712_v26 }
 0x432   : > { %10637 = vmatprep.mubr.bf16.mxu1 %v13734_v1  ;;  %10666 = vmatpush3.bf16.msra.mxu1 %v11684_v54 }
 0x433   : > { %10667 = vmatprep.subr.bf16.mxu1 %v11685_v14 }
 0x436   : > { %10668 = vmatpush3.bf16.msra.mxu1 %v11685_v14 }
 0x437   : > { %10669 = vmatprep.subr.bf16.mxu1 %v11686_v21 }
 0x439   : > { %10638 = vmatmul.mubr.bf16.gmra.mrb[24].mxu1 %v13749_v57 }
 0x43a   : > { %10641 = vmatprep.mubr.bf16.mxu1 %v13778_v9  ;;  %10670 = vmatpush3.bf16.msra.mxu1 %v11686_v21 }
 0x43b   : > { %10671 = vmatprep.subr.bf16.mxu1 %v11687_v52 }
 0x43e   : > { %10672 = vmatpush3.bf16.msra.mxu1 %v11687_v52  ;;  %v13972_v52 = vld [vmem:[#allocation3 + $0xd4] sm:$0x1] }
 0x43f   : > { %10673 = vmatprep.subr.bf16.mxu1 %v11688_v28 }
 0x441   : > { %10642 = vmatmul.mubr.bf16.gmra.mrb[28].mxu1 %v13780_v61 }
 0x442   : > { %10645 = vmatprep.mubr.bf16.mxu1 %v13801_v43  ;;  %10674 = vmatpush3.bf16.msra.mxu1 %v11688_v28 }
 0x443   : > { %10675 = vmatprep.subr.bf16.mxu1 %v11689_v50 }
 0x446   : > { %10676 = vmatpush3.bf16.msra.mxu1 %v11689_v50  ;;  %v14353_v50 = vld [vmem:[#allocation18_spill] sm:$0xff] }
 0x447   : > { %10709 = vmatprep.subr.bf16.mxu1 %v11690_v12 }
 0x449   : > { %10646 = vmatmul.mubr.bf16.gmra.mrb[0].mxu1 %v13828_v34 }
 0x44a   : > { %10649 = vmatprep.mubr.bf16.mxu1 %v13848_v42 }
 0x451   : > { %10650 = vmatmul.mubr.bf16.gmra.mrb[4].mxu1 %v13856_v29 }
 0x452   : > { %10653 = vmatprep.mubr.bf16.mxu1 %v13869_v8 }
 0x459   : > { %10654 = vmatmul.mubr.bf16.gmra.mrb[8].mxu1 %v13873_v33 }
 0x45a   : > { %10657 = vmatprep.mubr.bf16.mxu1 %v13883_v30 }
 0x461   : > { %10658 = vmatmul.mubr.bf16.gmra.mrb[12].mxu1 %v9170_v58 }
 0x462   : > { %10677 = vmatprep.mubr.bf16.mxu1 %v13673_v15  ;;  %v11693_v15 = vld [vmem:[%s14264_s3 + $0x98] sm:$0xff]  }
 0x469   : > { %10678 = vmatmul.mubr.bf16.vlgmr.msra.gmra.mrb[16].mxu1 %v13675_v4  ;;  %v11694_v4 = vld [vmem:[%s14264_s3 + $0xa0] sm:$0xff]  }
 0x46a   : > { %10681 = vmatprep.mubr.bf16.mxu1 %v13712_v26  ;;  %10710 = vmatpush3.bf16.msra.mxu1 %v11690_v12  ;;  %v11695_v26 = vld [vmem:[%s14264_s3 + $0xa8] sm:$0xff]   ;;  %v7072_v12 = vrot.slane %v14353_v50, 5 }
 0x46b   : > { %10711 = vmatprep.subr.bf16.mxu1 %v11691_v53 }
 0x46c   : > { %v7074_v55 = vrot.slane %v7072_v12, 4  ;;  %v7073_v27 = vsel %vm12808_vm14, %v9204_v51, %v7072_v12  ;;  %v14362_v51 = vld [vmem:[#allocation11_spill] sm:$0xff] }
 0x46e   : > { %10712 = vmatpush3.bf16.msra.mxu1 %v11691_v53  ;;  %v7076_v40 = vsel %vm12808_vm14, %v7074_v55, %v7075_v16  ;;  %v7088_v53 = vrot.slane %v7086_v25, 4  ;;  %v11704_v55 = vld [vmem:[%s14264_s3 + $0x170] sm:$0xff]   ;;  %v14363_v16 = vld [vmem:[#allocation9_spill] sm:$0xff] }
 0x46f   : > { %10713 = vmatprep.subr.bf16.mxu1 %v11692_v38  ;;  %v9236_v39 = vcombine.low %v7073_v27, %v7076_v40  ;;  %v14365_v27 = vld [vmem:[#allocation13_spill] sm:$0xff]  ;;  %v14366_v40 = vld [vmem:[#allocation4_spill] sm:$0xff] }
 0x471   : > { %10682 = vmatmul.mubr.bf16.gmra.mrb[20].mxu1 %v13734_v1  ;;  %v11696_v1 = vld [vmem:[%s14264_s3 + $0xb0] sm:$0xff]  }
 0x472   : > { %10685 = vmatprep.mubr.bf16.mxu1 %v13749_v57  ;;  %10714 = vmatpush3.bf16.msra.mxu1 %v11692_v38  ;;  %v11697_v57 = vld [vmem:[%s14264_s3 + $0xb8] sm:$0xff]   ;;  %v7006_v38 = vld [vmem:[#allocation3 + $0x18] sm:$0xe] }
 0x473   : > { %10715 = vmatprep.subr.bf16.mxu1 %v11693_v15 }
 0x476   : > { %10716 = vmatpush3.bf16.msra.mxu1 %v11693_v15  ;;  %v7089_v15 = vrot.slane %v13630_v37, 5  ;;  %v11699_v37 = vld [vmem:[%s14264_s3 + $0x148] sm:$0xff]  }
 0x477   : > { %10717 = vmatprep.subr.bf16.mxu1 %v11694_v4 }
 0x479   : > { %10686 = vmatmul.mubr.bf16.gmra.mrb[24].mxu1 %v13778_v9  ;;  %v11698_v9 = vld [vmem:[%s14264_s3 + $0x140] sm:$0xff]  }
 0x47a   : > { %10689 = vmatprep.mubr.bf16.mxu1 %v13780_v61  ;;  %10718 = vmatpush3.bf16.msra.mxu1 %v11694_v4  ;;  %v5723_v61 = vld [vmem:[#allocation3 + $0xcc] sm:$0xf] }
 0x47b   : > { %10719 = vmatprep.subr.bf16.mxu1 %v11695_v26  ;;  %v6719_v7 = vshrl.u32 %v5723_v61, 16  ;;  %v6722_v62 = vshll.u32 %v5723_v61, 16  ;;  %v9206_v61 = vrot.slane %v7006_v38, 9  ;;  %v11712_v38 = vld [vmem:[%s14264_s3 + $0x230] sm:$0xff]  }
 0x47d   : > { %v6721_v48 = vrot.slane %v6719_v7, 4  ;;  %v6724_v54 = vrot.slane %v6722_v62, 5  ;;  %v7090_v7 = vsel %vm12808_vm14, %v7088_v53, %v7089_v15  ;;  %v7087_v19 = vsel %vm12808_vm14, %v9206_v61, %v7086_v25  ;;  %v14371_v25 = vld [vmem:[#allocation16_spill] sm:$0xff]  ;;  %v11710_v53 = vld [vmem:[%s14264_s3 + $0x220] sm:$0xff]   ;;  %v11713_v15 = vld [vmem:[%s14264_s3 + $0x238] sm:$0xff]  }
 0x47e   : > { %10720 = vmatpush3.bf16.msra.mxu1 %v11695_v26  ;;  %v11717_v61 = vld [vmem:[%s14266_s5 + $0x18] sm:$0xff]  }
 0x47f   : > { %10721 = vmatprep.subr.bf16.mxu1 %v11696_v1  ;;  %v6725_v28 = vor.u32 %v6724_v54, %v6721_v48  ;;  %v7007_v54 = vld [vmem:[#allocation3 + $0x24] sm:$0xe] }
 0x481   : > { %10690 = vmatmul.mubr.bf16.gmra.mrb[28].mxu1 %v13801_v43  ;;  %v6728_v43 = vshll.u32 %v13966_v59, 16  ;;  %v6726_v47 = vrot.slane %v6725_v28, 4  ;;  %v11700_v28 = vld [vmem:[%s14264_s3 + $0x150] sm:$0xff]  }
 0x482   : > { %10693 = vmatprep.mubr.bf16.mxu1 %v13828_v34  ;;  %10722 = vmatpush3.bf16.msra.mxu1 %v11696_v1  ;;  %v6732_v34 = vshrl.u32 %v13966_v59, 16  ;;  %v14358_v1 = vld [vmem:[#allocation21_spill] sm:$0xff] }
 0x483   : > { %10723 = vmatprep.subr.bf16.mxu1 %v11697_v57  ;;  %v6730_v14 = vrot.slane %v6728_v43, 5 }
 0x484   : > { %v6734_v21 = vrot.slane %v6732_v34, 4  ;;  %v14004_v34 = vcombine.low %v7087_v19, %v7090_v7  ;;  %v11718_v7 = vld [vmem:[%s14266_s5 + $0x20] sm:$0xff]   ;;  %v11721_v19 = vld [vmem:[%s14266_s5 + $0x38] sm:$0xff]  }
 0x486   : > { %10724 = vmatpush3.bf16.msra.mxu1 %v11697_v57  ;;  %v7093_v57 = vrot.slane %v14358_v1, 5  ;;  %v11715_v1 = vld [vmem:[%s14266_s5 + $0x8] sm:$0xff]  }
 0x487   : > { %10757 = vmatprep.subr.bf16.mxu1 %v11698_v9 }
 0x488   : > { %v7095_v48 = vrot.slane %v7093_v57, 4 }
 0x489   : > { %10694 = vmatmul.mubr.bf16.gmra.mrb[0].mxu1 %v13848_v42  ;;  %v6735_v42 = vor.u32 %v6734_v21, %v6730_v14 }
 0x48a   : > { %10697 = vmatprep.mubr.bf16.mxu1 %v13856_v29  ;;  %v6738_v29 = vshll.u32 %v13972_v52, 16 }
 0x48b   : > { %v6736_v3 = vrot.slane %v6735_v42, 4  ;;  %v9207_v42 = vrot.slane %v7007_v54, 9 }
 0x48c   : > { %v6740_v11 = vrot.slane %v6738_v29, 5 }
 0x48d   : > { %v7094_v50 = vsel %vm12808_vm14, %v9207_v42, %v7093_v57  ;;  %v11716_v57 = vld [vmem:[%s14266_s5 + $0x10] sm:$0xff]   ;;  %v11722_v42 = vld [vmem:[%s11854_s12] sm:$0xff]  }
 0x491   : > { %10698 = vmatmul.mubr.bf16.gmra.mrb[4].mxu1 %v13869_v8  ;;  %v6731_v8 = vsel %vm12461_vm11, %v6726_v47, %v6730_v14  ;;  %v14359_v14 = vld [vmem:[#allocation23_spill] sm:$0xff]  ;;  %v11702_v47 = vld [vmem:[%s14264_s3 + $0x160] sm:$0xff]  }
 0x492   : > { %10701 = vmatprep.mubr.bf16.mxu1 %v13873_v33  ;;  %v6741_v33 = vsel %vm12461_vm11, %v6736_v3, %v6740_v11  ;;  %v7096_v21 = vrot.slane %v14359_v14, 5  ;;  %v11703_v3 = vld [vmem:[%s14264_s3 + $0x168] sm:$0xff]   ;;  %v14361_v11 = vld [vmem:[#allocation10_spill] sm:$0xff]  ;;  %v7784_v14 = vrot.slane %v13972_v52, 5  ;;  %v11724_v52 = vld [vmem:[%s11854_s12 + $0x10] sm:$0xff]  }
 0x493   : > { %v9195_v10 = vcombine.low %v6731_v8, %v6741_v33  ;;  %v14364_v8 = vld [vmem:[#allocation12_spill] sm:$0xff]  ;;  %v11706_v33 = vld [vmem:[%s14264_s3 + $0x200] sm:$0xff]  }
 0x494   : > { %v7097_v29 = vsel %vm12808_vm14, %v7095_v48, %v7096_v21 }
 0x495   : > { %v14015_v12 = vcombine.low %v7094_v50, %v7097_v29  ;;  %v11723_v29 = vld [vmem:[%s11854_s12 + $0x8] sm:$0xff]   ;;  %v11725_v50 = vld [vmem:[%s11854_s12 + $0x18] sm:$0xff]  }
 0x499   : > { %10702 = vmatmul.mubr.bf16.gmra.mrb[8].mxu1 %v13883_v30  ;;  %v7081_v30 = vrot.slane %v7079_v31, 4 }
 0x49a   : > { %10705 = vmatprep.mubr.bf16.mxu1 %v9170_v58  ;;  %v7005_v58 = vld [vmem:[#allocation3 + $0xc] sm:$0xe] }
 0x49b   : > { %v9205_v4 = vrot.slane %v7005_v58, 9  ;;  %v7083_v26 = vsel %vm12808_vm14, %v7081_v30, %v7082_v56  ;;  %v11708_v30 = vld [vmem:[%s14264_s3 + $0x210] sm:$0xff]   ;;  %v11709_v58 = vld [vmem:[%s14264_s3 + $0x218] sm:$0xff]   ;;  %v11711_v56 = vld [vmem:[%s14264_s3 + $0x228] sm:$0xff]  }
 0x49d   : > { %v7080_v62 = vsel %vm12808_vm14, %v9205_v4, %v7079_v31  ;;  %v14368_v31 = vld [vmem:[#allocation5_spill] sm:$0xff]  ;;  %v11714_v4 = vld [vmem:[%s14266_s5] sm:$0xff]  }
 0x49e   : > { %v9237_v43 = vcombine.low %v7080_v62, %v7083_v26  ;;  %v14372_v26 = vld [vmem:[#allocation17_spill] sm:$0xff]  ;;  %v11719_v62 = vld [vmem:[%s14266_s5 + $0x28] sm:$0xff]  }
 0x4a1   : > { %10706 = vmatmul.mubr.bf16.gmra.mrb[12].mxu1 %v9195_v10  ;;  %v14369_v10 = vld [vmem:[#allocation14_spill] sm:$0xff] }
 0x4a2   : > { %10725 = vmatprep.mubr.bf16.mxu1 %v9236_v39  ;;  %v11707_v39 = vld [vmem:[%s14264_s3 + $0x208] sm:$0xff]  }
 0x4a9   : > { %10726 = vmatmul.mubr.bf16.vlgmr.msra.gmra.mrb[16].mxu1 %v9237_v43 }
 0x4aa   : > { %10729 = vmatprep.mubr.bf16.mxu1 %v14004_v34  ;;  %10758 = vmatpush3.bf16.msra.mxu1 %v11698_v9  ;;  %v11701_v9 = vld [vmem:[%s14264_s3 + $0x158] sm:$0xff]  }
 0x4ab   : > { %10759 = vmatprep.subr.bf16.mxu1 %v11699_v37 }
 0x4ae   : > { %10760 = vmatpush3.bf16.msra.mxu1 %v11699_v37  ;;  %v7781_v37 = vrot.slane %v13966_v59, 5 }
 0x4af   : > { %10761 = vmatprep.subr.bf16.mxu1 %v11700_v28 }
 0x4b0   : > { %v7783_v54 = vrot.slane %v7781_v37, 4 }
 0x4b1   : > { %10730 = vmatmul.mubr.bf16.gmra.mrb[20].mxu1 %v14015_v12 }
 0x4b2   : > { %10733 = vmatprep.mubr.bf16.mxu1 %v14360_v35  ;;  %10762 = vmatpush3.bf16.msra.mxu1 %v11700_v28  ;;  %v7785_v28 = vsel %vm12808_vm14, %v7783_v54, %v7784_v14 }
 0x4b3   : > { %10763 = vmatprep.subr.bf16.mxu1 %v11701_v9 }
 0x4b6   : > { %10764 = vmatpush3.bf16.msra.mxu1 %v11701_v9  ;;  %v11728_v9 = vld [vmem:[%s11854_s12 + $0x30] sm:$0xff]  }
 0x4b7   : > { %10765 = vmatprep.subr.bf16.mxu1 %v11702_v47 }
 0x4b9   : > { %10734 = vmatmul.mubr.bf16.gmra.mrb[24].mxu1 %v14361_v11 }
 0x4ba   : > { %10737 = vmatprep.mubr.bf16.mxu1 %v14362_v51  ;;  %10766 = vmatpush3.bf16.msra.mxu1 %v11702_v47  ;;  %v11730_v47 = vld [vmem:[%s11854_s12 + $0x40] sm:$0xff]  }
 0x4bb   : > { %10767 = vmatprep.subr.bf16.mxu1 %v11703_v3 }
 0x4be   : > { %10768 = vmatpush3.bf16.msra.mxu1 %v11703_v3  ;;  %v11731_v3 = vld [vmem:[%s11854_s12 + $0x48] sm:$0xff]  }
 0x4bf   : > { %10769 = vmatprep.subr.bf16.mxu1 %v11704_v55 }
 0x4c1   : > { %10738 = vmatmul.mubr.bf16.gmra.mrb[28].mxu1 %v14363_v16 }
 0x4c2   : > { %10741 = vmatprep.mubr.bf16.mxu1 %v14364_v8  ;;  %10770 = vmatpush3.bf16.msra.mxu1 %v11704_v55  ;;  %v11734_v55 = vld [vmem:[%s11854_s12 + $0x60] sm:$0xff]  }
 0x4c3   : > { %10771 = vmatprep.subr.bf16.mxu1 %v11705_v63 }
 0x4c6   : > { %10772 = vmatpush3.bf16.msra.mxu1 %v11705_v63  ;;  %v11735_v63 = vld [vmem:[%s11854_s12 + $0x68] sm:$0xff]  }
 0x4c7   : > { %10805 = vmatprep.subr.bf16.mxu1 %v11706_v33 }
 0x4c9   : > { %10742 = vmatmul.mubr.bf16.gmra.mrb[0].mxu1 %v14365_v27 }
 0x4ca   : > { %10745 = vmatprep.mubr.bf16.mxu1 %v14366_v40 }
 0x4d1   : > { %10746 = vmatmul.mubr.bf16.gmra.mrb[4].mxu1 %v14367_v44 }
 0x4d2   : > { %10749 = vmatprep.mubr.bf16.mxu1 %v14368_v31 }
 0x4d9   : > { %10750 = vmatmul.mubr.bf16.gmra.mrb[8].mxu1 %v14369_v10 }
 0x4da   : > { %10753 = vmatprep.mubr.bf16.mxu1 %v14370_v49 }
 0x4e1   : > { %10754 = vmatmul.mubr.bf16.gmra.mrb[12].mxu1 %v14371_v25 }
 0x4e2   : > { %10773 = vmatprep.mubr.bf16.mxu1 %v9237_v43  ;;  %v11720_v43 = vld [vmem:[%s14266_s5 + $0x30] sm:$0xff]  }
 0x4e9   : > { %10774 = vmatmul.mubr.bf16.vlgmr.msra.gmra.mrb[16].mxu1 %v14004_v34 }
 0x4ea   : > { %10777 = vmatprep.mubr.bf16.mxu1 %v14015_v12  ;;  %10806 = vmatpush3.bf16.msra.mxu1 %v11706_v33  ;;  %v14148_v33 = vld [vmem:[%s14267_s6] ss:$0 sm:$0xff] }
 0x4eb   : > { %10807 = vmatprep.subr.bf16.mxu1 %v11707_v39 }
 0x4ee   : > { %10808 = vmatpush3.bf16.msra.mxu1 %v11707_v39 }
 0x4ef   : > { %10809 = vmatprep.subr.bf16.mxu1 %v11708_v30 }
 0x4f1   : > { %10778 = vmatmul.mubr.bf16.gmra.mrb[20].mxu1 %v14360_v35 }
 0x4f2   : > { %10781 = vmatprep.mubr.bf16.mxu1 %v14361_v11  ;;  %10810 = vmatpush3.bf16.msra.mxu1 %v11708_v30 }
 0x4f3   : > { %10811 = vmatprep.subr.bf16.mxu1 %v11709_v58 }
 0x4f6   : > { %10812 = vmatpush3.bf16.msra.mxu1 %v11709_v58 }
 0x4f7   : > { %10813 = vmatprep.subr.bf16.mxu1 %v11710_v53 }
 0x4f9   : > { %10782 = vmatmul.mubr.bf16.gmra.mrb[24].mxu1 %v14362_v51 }
 0x4fa   : > { %10785 = vmatprep.mubr.bf16.mxu1 %v14363_v16  ;;  %10814 = vmatpush3.bf16.msra.mxu1 %v11710_v53 }
 0x4fb   : > { %10815 = vmatprep.subr.bf16.mxu1 %v11711_v56 }
 0x4fe   : > { %10816 = vmatpush3.bf16.msra.mxu1 %v11711_v56 }
 0x4ff   : > { %10817 = vmatprep.subr.bf16.mxu1 %v11712_v38 }
 0x501   : > { %10786 = vmatmul.mubr.bf16.gmra.mrb[28].mxu1 %v14364_v8 }
 0x502   : > { %10789 = vmatprep.mubr.bf16.mxu1 %v14365_v27  ;;  %10818 = vmatpush3.bf16.msra.mxu1 %v11712_v38 }
 0x503   : > { %10819 = vmatprep.subr.bf16.mxu1 %v11713_v15 }
 0x506   : > { %10820 = vmatpush3.bf16.msra.mxu1 %v11713_v15 }
 0x507   : > { %10853 = vmatprep.subr.bf16.mxu1 %v11714_v4 }
 0x509   : > { %10790 = vmatmul.mubr.bf16.gmra.mrb[0].mxu1 %v14366_v40 }
 0x50a   : > { %10793 = vmatprep.mubr.bf16.mxu1 %v14367_v44 }
 0x511   : > { %10794 = vmatmul.mubr.bf16.gmra.mrb[4].mxu1 %v14368_v31 }
 0x512   : > { %10797 = vmatprep.mubr.bf16.mxu1 %v14369_v10 }
 0x519   : > { %10798 = vmatmul.mubr.bf16.gmra.mrb[8].mxu1 %v14370_v49 }
 0x51a   : > { %10801 = vmatprep.mubr.bf16.mxu1 %v14371_v25 }
 0x521   : > { %10802 = vmatmul.mubr.bf16.gmra.mrb[12].mxu1 %v14372_v26 }
 0x522   : > { %10821 = vmatprep.mubr.bf16.mxu1 %v14004_v34  ;;  %v7021_v34 = vld [vmem:[#allocation3 + $0xcc] sm:$0xe] }
 0x523   : > { %v9286_v48 = vrot.slane %v7021_v34, 9 }
 0x525   : > { %v7782_v21 = vsel %vm12808_vm14, %v9286_v48, %v7781_v37 }
 0x526   : > { %v9303_v59 = vcombine.low %v7782_v21, %v7785_v28 }
 0x529   : > { %10822 = vmatmul.mubr.bf16.vlgmr.msra.gmra.mrb[16].mxu1 %v14015_v12  ;;  %v11726_v12 = vld [vmem:[%s11854_s12 + $0x20] sm:$0xff]  }
 0x52a   : > { %10825 = vmatprep.mubr.bf16.mxu1 %v14360_v35  ;;  %10854 = vmatpush3.bf16.msra.mxu1 %v11714_v4  ;;  %v11729_v35 = vld [vmem:[%s11854_s12 + $0x38] sm:$0xff]  }
 0x52b   : > { %10855 = vmatprep.subr.bf16.mxu1 %v11715_v1 }
 0x52e   : > { %10856 = vmatpush3.bf16.msra.mxu1 %v11715_v1  ;;  %v10932_v1 = vadd.f32 %v14148_v33, %v13773_v13  ;;  %v10938_v13 = vadd.f32 %v14148_v33, %v13784_v17  ;;  %v10941_v17 = vadd.f32 %v13813_v32, %v14148_v33 }
 0x52f   : > { %10857 = vmatprep.subr.bf16.mxu1 %v11716_v57 }
 0x531   : > { %10826 = vmatmul.mubr.bf16.gmra.mrb[20].mxu1 %v14361_v11  ;;  %v11732_v11 = vld [vmem:[%s11854_s12 + $0x50] sm:$0xff]  }
 0x532   : > { %10829 = vmatprep.mubr.bf16.mxu1 %v14362_v51  ;;  %10858 = vmatpush3.bf16.msra.mxu1 %v11716_v57  ;;  %v11733_v51 = vld [vmem:[%s11854_s12 + $0x58] sm:$0xff]  }
 0x533   : > { %10859 = vmatprep.subr.bf16.mxu1 %v11717_v61 }
 0x536   : > { %10860 = vmatpush3.bf16.msra.mxu1 %v11717_v61 }
 0x537   : > { %10861 = vmatprep.subr.bf16.mxu1 %v11718_v7 }
 0x539   : > { %10830 = vmatmul.mubr.bf16.gmra.mrb[24].mxu1 %v14363_v16  ;;  %v11736_v16 = vld [vmem:[%s11854_s12 + $0x70] sm:$0xff]  }
 0x53a   : > { %10833 = vmatprep.mubr.bf16.mxu1 %v14364_v8  ;;  %10862 = vmatpush3.bf16.msra.mxu1 %v11718_v7  ;;  %v11737_v8 = vld [vmem:[%s11854_s12 + $0x78] sm:$0xff]  }
 0x53b   : > { %10863 = vmatprep.subr.bf16.mxu1 %v11719_v62 }
 0x53e   : > { %10864 = vmatpush3.bf16.msra.mxu1 %v11719_v62  ;;  %v10935_v62 = vadd.f32 %v13782_v18, %v14148_v33 }
 0x53f   : > { %10865 = vmatprep.subr.bf16.mxu1 %v11720_v43 }
 0x541   : > { %10834 = vmatmul.mubr.bf16.gmra.mrb[28].mxu1 %v14365_v27 }
 0x542   : > { %10837 = vmatprep.mubr.bf16.mxu1 %v14366_v40  ;;  %10866 = vmatpush3.bf16.msra.mxu1 %v11720_v43  ;;  %v10923_v40 = vadd.f32 %v13719_v45, %v14148_v33 }
 0x543   : > { %10867 = vmatprep.subr.bf16.mxu1 %v11721_v19 }
 0x546   : > { %10868 = vmatpush3.bf16.msra.mxu1 %v11721_v19 }
 0x549   : > { %10838 = vmatmul.mubr.bf16.gmra.mrb[0].mxu1 %v14367_v44 }
 0x54a   : > { %10841 = vmatprep.mubr.bf16.mxu1 %v14368_v31 }
 0x551   : > { %10842 = vmatmul.mubr.bf16.gmra.mrb[4].mxu1 %v14369_v10  ;;  %v10926_v10 = vadd.f32 %v14148_v33, %v13725_v2 }
 0x552   : > { %10845 = vmatprep.mubr.bf16.mxu1 %v14370_v49  ;;  %v14158_v49 = vld [vmem:[%s14265_s4] ss:$0 sm:$0xff] }
 0x559   : > { %10846 = vmatmul.mubr.bf16.gmra.mrb[8].mxu1 %v14371_v25 }
 0x55a   : > { %10849 = vmatprep.mubr.bf16.mxu1 %v14372_v26 }
 0x561   : > { %10850 = vmatmul.mubr.bf16.gmra.mrb[12].mxu1 %v9303_v59 }
 0x562   : > { %10869 = vmatprep.mubr.bf16.mxu1 %v11722_v42 }
 0x569   : > { %10870 = vmatmul.mubr.bf16.vlgmr.msra.gmra.mrb[16].mxu1 %v11723_v29 }
 0x56a   : > { %10873 = vmatprep.mubr.bf16.mxu1 %v11724_v52 }
 0x571   : > { %10874 = vmatmul.mubr.bf16.gmra.mrb[20].mxu1 %v11725_v50  ;;  %v10944_v50 = vadd.f32 %v14148_v33, %v13821_v60 }
 0x572   : > { %10877 = vmatprep.mubr.bf16.mxu1 %v11726_v12 }
 0x579   : > { %10878 = vmatmul.mubr.bf16.gmra.mrb[24].mxu1 %v11727_v6 }
 0x57a   : > { %10881 = vmatprep.mubr.bf16.mxu1 %v11728_v9 }
 0x581   : > { %10882 = vmatmul.mubr.bf16.gmra.mrb[28].mxu1 %v11729_v35  ;;  %v10947_v35 = vadd.f32 %v13824_v20, %v14148_v33 }
 0x582   : > { %10885 = vmatprep.mubr.bf16.mxu1 %v11730_v47 }
 0x589   : > { %10886 = vmatmul.mubr.bf16.gmra.mrb[0].mxu1 %v11731_v3 }
 0x58a   : > { %10889 = vmatprep.mubr.bf16.mxu1 %v11732_v11 }
 0x591   : > { %10890 = vmatmul.mubr.bf16.gmra.mrb[4].mxu1 %v11733_v51  ;;  %v10950_v51 = vadd.f32 %v14148_v33, %v13830_v0  ;;  %v10953_v0 = vadd.f32 %v13843_v24, %v14148_v33 }
 0x592   : > { %10893 = vmatprep.mubr.bf16.mxu1 %v11734_v55 }
 0x599   : > { %10894 = vmatmul.mubr.bf16.gmra.mrb[8].mxu1 %v11735_v63 }
 0x59a   : > { %10897 = vmatprep.mubr.bf16.mxu1 %v11736_v16 }
 0x5a1   : > { %10898 = vmatmul.mubr.bf16.gmra.mrb[12].mxu1 %v11737_v8 }
 0x63c   : > { %v10871_v27 = vpop.f32.mrb[16].mxu1 }
 0x63d   : > { %v10917_v44 = vadd.f32 %v10871_v27, %v13703_v46  ;;  %v8281_v31 = vpop.f32.mrb[17].mxu1 }
 0x63e   : > { %v10920_v25 = vadd.f32 %v8281_v31, %v13714_v5  ;;  %v10872_v39 = vpop.f32.mrb[18].mxu1  ;;  %v10929_v5 = vadd.f32 %v13769_v23, %v14148_v33 }
 0x63f   : > { %v10918_v30 = vadd.f32 %v10917_v44, %v14148_v33  ;;  %v10924_v58 = vadd.f32 %v10923_v40, %v10872_v39  ;;  %v8284_v53 = vpop.f32.mrb[19].mxu1 }
 0x640   : > { %v10921_v45 = vadd.f32 %v10920_v25, %v14148_v33  ;;  %v10927_v46 = vadd.f32 %v10926_v10, %v8284_v53  ;;  %v10956_v25 = vadd.f32 %v14148_v33, %v13845_v41  ;;  %v10959_v53 = vadd.f32 %v13853_v22, %v14148_v33 }
 0x641   : > { %v10919_v56 = vadd.f32 %v10918_v30, %v14158_v49  ;;  %v10925_v2 = vadd.f32 %v10924_v58, %v14158_v49 }
 0x642   : > { %v10922_v38 = vadd.f32 %v10921_v45, %v14158_v49  ;;  %v10928_v15 = vadd.f32 %v10927_v46, %v14158_v49 }
 0x643   : > { %v8481_v4 = vmax.f32 %v10919_v56, 0.0  ;;  %v8482_v26 = vmax.f32 %v10925_v2, 0.0  ;;  %v10962_v2 = vadd.f32 %v14148_v33, %v13858_v36 }
 0x644   : > { %v8479_v57 = vmax.f32 %v10922_v38, 0.0  ;;  %v8480_v61 = vmax.f32 %v10928_v15, 0.0  ;;  %v10875_v7 = vpop.f32.mrb[20].mxu1 }
 0x645   : > { %v9446_v23 = vpack.c.bf16 %v8482_v26, %v8481_v4  ;;  %v10930_v43 = vadd.f32 %v10929_v5, %v10875_v7  ;;  %v8297_v19 = vpop.f32.mrb[21].mxu1 }
 0x646   : > { %v9441_v37 = vpack.c.bf16 %v8480_v61, %v8479_v57  ;;  %v10933_v34 = vadd.f32 %v10932_v1, %v8297_v19  ;;  %v10876_v48 = vpop.f32.mrb[22].mxu1 }
 0x647   : > { %9518 = vst [vmem:[%s14176_s14 + $0x8] sm:$0xff] %v9446_v23   ;;  %v10931_v54 = vadd.f32 %v10930_v43, %v14158_v49  ;;  %v10936_v14 = vadd.f32 %v10935_v62, %v10876_v48  ;;  %v8300_v21 = vpop.f32.mrb[23].mxu1 }
 0x648   : > { %9442 = vst [vmem:[%s14176_s14] sm:$0xff] %v9441_v37   ;;  %v10934_v28 = vadd.f32 %v10933_v34, %v14158_v49  ;;  %v10939_v59 = vadd.f32 %v10938_v13, %v8300_v21 }
 0x649   : > { %v10937_v18 = vadd.f32 %v10936_v14, %v14158_v49  ;;  %v8485_v29 = vmax.f32 %v10931_v54, 0.0 }
 0x64a   : > { %v10940_v42 = vadd.f32 %v10939_v59, %v14158_v49  ;;  %v8483_v12 = vmax.f32 %v10934_v28, 0.0 }
 0x64b   : > { %v8486_v52 = vmax.f32 %v10937_v18, 0.0 }
 0x64c   : > { %v8484_v6 = vmax.f32 %v10940_v42, 0.0  ;;  %v10879_v9 = vpop.f32.mrb[24].mxu1 }
 0x64d   : > { %v9456_v47 = vpack.c.bf16 %v8486_v52, %v8485_v29  ;;  %v10942_v3 = vadd.f32 %v10941_v17, %v10879_v9  ;;  %v8313_v11 = vpop.f32.mrb[25].mxu1 }
 0x64e   : > { %v9451_v55 = vpack.c.bf16 %v8484_v6, %v8483_v12  ;;  %v10945_v32 = vadd.f32 %v10944_v50, %v8313_v11  ;;  %v10880_v63 = vpop.f32.mrb[26].mxu1 }
 0x64f   : > { %9520 = vst [vmem:[%s14176_s14 + $0x18] sm:$0xff] %v9456_v47   ;;  %v10943_v16 = vadd.f32 %v10942_v3, %v14158_v49  ;;  %v10948_v60 = vadd.f32 %v10947_v35, %v10880_v63  ;;  %v8316_v8 = vpop.f32.mrb[27].mxu1 }
 0x650   : > { %9519 = vst [vmem:[%s14176_s14 + $0x10] sm:$0xff] %v9451_v55   ;;  %v10946_v27 = vadd.f32 %v10945_v32, %v14158_v49  ;;  %v10951_v40 = vadd.f32 %v10950_v51, %v8316_v8 }
 0x651   : > { %v10949_v20 = vadd.f32 %v10948_v60, %v14158_v49  ;;  %v8489_v31 = vmax.f32 %v10943_v16, 0.0 }
 0x652   : > { %v10952_v44 = vadd.f32 %v10951_v40, %v14158_v49  ;;  %v8487_v39 = vmax.f32 %v10946_v27, 0.0 }
 0x653   : > { %v8490_v10 = vmax.f32 %v10949_v20, 0.0 }
 0x654   : > { %v8488_v30 = vmax.f32 %v10952_v44, 0.0  ;;  %v10883_v58 = vpop.f32.mrb[28].mxu1 }
 0x655   : > { %v9466_v45 = vpack.c.bf16 %v8490_v10, %v8489_v31  ;;  %v10954_v46 = vadd.f32 %v10953_v0, %v10883_v58  ;;  %v8329_v56 = vpop.f32.mrb[29].mxu1 }
 0x656   : > { %v9461_v38 = vpack.c.bf16 %v8488_v30, %v8487_v39  ;;  %v10957_v24 = vadd.f32 %v10956_v25, %v8329_v56  ;;  %v10884_v15 = vpop.f32.mrb[30].mxu1 }
 0x657   : > { %9522 = vst [vmem:[%s14176_s14 + $0x28] sm:$0xff] %v9466_v45   ;;  %v10955_v5 = vadd.f32 %v10954_v46, %v14158_v49  ;;  %v10960_v41 = vadd.f32 %v10959_v53, %v10884_v15  ;;  %v8332_v4 = vpop.f32.mrb[31].mxu1 }
 0x658   : > { %9521 = vst [vmem:[%s14176_s14 + $0x20] sm:$0xff] %v9461_v38   ;;  %v10958_v26 = vadd.f32 %v10957_v24, %v14158_v49  ;;  %v10963_v1 = vadd.f32 %v10962_v2, %v8332_v4 }
 0x659   : > { %v10961_v22 = vadd.f32 %v10960_v41, %v14158_v49  ;;  %v8493_v61 = vmax.f32 %v10955_v5, 0.0 }
 0x65a   : > { %v10964_v57 = vadd.f32 %v10963_v1, %v14158_v49  ;;  %v8491_v7 = vmax.f32 %v10958_v26, 0.0 }
 0x65b   : > { %v8494_v36 = vmax.f32 %v10961_v22, 0.0 }
 0x65c   : > { %v8492_v62 = vmax.f32 %v10964_v57, 0.0  ;;  %v10887_v23 = vpop.f32.mrb[0].mxu1 }
 0x65d   : > { %v9476_v43 = vpack.c.bf16 %v8494_v36, %v8493_v61  ;;  %v8354_v19 = vadd.f32 %v10887_v23, %v14148_v33  ;;  %v8345_v13 = vpop.f32.mrb[1].mxu1 }
 0x65e   : > { %v9471_v37 = vpack.c.bf16 %v8492_v62, %v8491_v7  ;;  %v8346_v34 = vadd.f32 %v14148_v33, %v8345_v13  ;;  %v10888_v48 = vpop.f32.mrb[2].mxu1 }
 0x65f   : > { %9524 = vst [vmem:[%s14176_s14 + $0x38] sm:$0xff] %v9476_v43   ;;  %v10966_v54 = vadd.f32 %v14158_v49, %v8354_v19  ;;  %v8357_v14 = vadd.f32 %v10888_v48, %v14148_v33  ;;  %v8348_v21 = vpop.f32.mrb[3].mxu1 }
 0x660   : > { %9523 = vst [vmem:[%s14176_s14 + $0x30] sm:$0xff] %v9471_v37   ;;  %v10968_v28 = vadd.f32 %v14158_v49, %v8346_v34  ;;  %v8349_v59 = vadd.f32 %v14148_v33, %v8348_v21 }
 0x661   : > { %v10970_v18 = vadd.f32 %v14158_v49, %v8357_v14  ;;  %v8497_v17 = vmax.f32 %v10966_v54, 0.0 }
 0x662   : > { %v10972_v42 = vadd.f32 %v14158_v49, %v8349_v59  ;;  %v8495_v52 = vmax.f32 %v10968_v28, 0.0 }
 0x663   : > { %v8498_v29 = vmax.f32 %v10970_v18, 0.0 }
 0x664   : > { %v8496_v50 = vmax.f32 %v10972_v42, 0.0  ;;  %v10891_v12 = vpop.f32.mrb[4].mxu1 }
 0x665   : > { %v9486_v6 = vpack.c.bf16 %v8498_v29, %v8497_v17  ;;  %v8370_v9 = vadd.f32 %v10891_v12, %v14148_v33  ;;  %v8361_v35 = vpop.f32.mrb[5].mxu1 }
 0x666   : > { %v9481_v47 = vpack.c.bf16 %v8496_v50, %v8495_v52  ;;  %v8362_v3 = vadd.f32 %v14148_v33, %v8361_v35  ;;  %v10892_v11 = vpop.f32.mrb[6].mxu1 }
 0x667   : > { %9526 = vst [vmem:[%s14176_s14 + $0x48] sm:$0xff] %v9486_v6   ;;  %v10974_v51 = vadd.f32 %v14158_v49, %v8370_v9  ;;  %v8373_v55 = vadd.f32 %v10892_v11, %v14148_v33  ;;  %v8364_v32 = vpop.f32.mrb[7].mxu1 }
 0x668   : > { %9525 = vst [vmem:[%s14176_s14 + $0x40] sm:$0xff] %v9481_v47   ;;  %v10976_v63 = vadd.f32 %v14158_v49, %v8362_v3  ;;  %v8365_v16 = vadd.f32 %v14148_v33, %v8364_v32 }
 0x669   : > { %v10978_v60 = vadd.f32 %v14158_v49, %v8373_v55  ;;  %v8501_v27 = vmax.f32 %v10974_v51, 0.0 }
 0x66a   : > { %v10980_v8 = vadd.f32 %v14158_v49, %v8365_v16  ;;  %v8499_v20 = vmax.f32 %v10976_v63, 0.0 }
 0x66b   : > { %v8502_v40 = vmax.f32 %v10978_v60, 0.0 }
 0x66c   : > { %v8500_v44 = vmax.f32 %v10980_v8, 0.0  ;;  %v10895_v0 = vpop.f32.mrb[8].mxu1 }
 0x66d   : > { %v9496_v31 = vpack.c.bf16 %v8502_v40, %v8501_v27  ;;  %v8386_v10 = vadd.f32 %v10895_v0, %v14148_v33  ;;  %v8377_v25 = vpop.f32.mrb[9].mxu1 }
 0x66e   : > { %v9491_v39 = vpack.c.bf16 %v8500_v44, %v8499_v20  ;;  %v8378_v30 = vadd.f32 %v14148_v33, %v8377_v25  ;;  %v10896_v58 = vpop.f32.mrb[10].mxu1 }
 0x66f   : > { %9528 = vst [vmem:[%s14176_s14 + $0x58] sm:$0xff] %v9496_v31   ;;  %v10982_v53 = vadd.f32 %v14158_v49, %v8386_v10  ;;  %v8389_v45 = vadd.f32 %v10896_v58, %v14148_v33  ;;  %v8380_v46 = vpop.f32.mrb[11].mxu1 }
 0x670   : > { %9527 = vst [vmem:[%s14176_s14 + $0x50] sm:$0xff] %v9491_v39   ;;  %v10984_v56 = vadd.f32 %v14158_v49, %v8378_v30  ;;  %v8381_v2 = vadd.f32 %v14148_v33, %v8380_v46 }
 0x671   : > { %v10986_v38 = vadd.f32 %v14158_v49, %v8389_v45  ;;  %v8505_v15 = vmax.f32 %v10982_v53, 0.0 }
 0x672   : > { %v10988_v24 = vadd.f32 %v14158_v49, %v8381_v2  ;;  %v8503_v41 = vmax.f32 %v10984_v56, 0.0 }
 0x673   : > { %v8506_v5 = vmax.f32 %v10986_v38, 0.0 }
 0x674   : > { %v8504_v4 = vmax.f32 %v10988_v24, 0.0  ;;  %v10899_v26 = vpop.f32.mrb[12].mxu1 }
 0x675   : > { %v9506_v1 = vpack.c.bf16 %v8506_v5, %v8505_v15  ;;  %v8402_v22 = vadd.f32 %v10899_v26, %v14148_v33  ;;  %v8393_v57 = vpop.f32.mrb[13].mxu1 }
 0x676   : > { %v9501_v61 = vpack.c.bf16 %v8504_v4, %v8503_v41  ;;  %v8394_v36 = vadd.f32 %v14148_v33, %v8393_v57  ;;  %v10900_v7 = vpop.f32.mrb[14].mxu1 }
 0x677   : > { %9530 = vst [vmem:[%s14176_s14 + $0x68] sm:$0xff] %v9506_v1   ;;  %v10990_v62 = vadd.f32 %v14158_v49, %v8402_v22  ;;  %v8405_v23 = vadd.f32 %v10900_v7, %v14148_v33  ;;  %v8396_v43 = vpop.f32.mrb[15].mxu1 }
 0x678   : > { %9529 = vst [vmem:[%s14176_s14 + $0x60] sm:$0xff] %v9501_v61   ;;  %v10992_v19 = vadd.f32 %v14158_v49, %v8394_v36  ;;  %v8397_v13 = vadd.f32 %v14148_v33, %v8396_v43 }
 0x679   : > { %v10994_v37 = vadd.f32 %v14158_v49, %v8405_v23  ;;  %v8509_v48 = vmax.f32 %v10990_v62, 0.0 }
 0x67a   : > { %v10996_v34 = vadd.f32 %v14158_v49, %v8397_v13  ;;  %v8507_v14 = vmax.f32 %v10992_v19, 0.0 }
 0x67b   : > { %v8510_v54 = vmax.f32 %v10994_v37, 0.0 }
 0x67c   : > { %v8508_v21 = vmax.f32 %v10996_v34, 0.0 }
 0x67d   : > { %v9516_v28 = vpack.c.bf16 %v8510_v54, %v8509_v48 }
 0x67e   : > { %v9511_v59 = vpack.c.bf16 %v8508_v21, %v8507_v14 }
 0x67f   : > { %9532 = vst [vmem:[%s14176_s14 + $0x78] sm:$0xff] %v9516_v28  }
 0x680   : > { %9531 = vst [vmem:[%s14176_s14 + $0x70] sm:$0xff] %v9511_v59  }
 0x681 PF: > { %s17_s24 = sadd.s32 1, %s11786_s24  }
 0x682   : > { %p14_p4 = scmp.ge.s32.totalorder %s17_s24, 4  }
 0x684   :  { %16 = sbr.rel (!%p14_p4) target bundleno = 1 (0x1), region = 98 }

</bundles_post_ra>
